<compile_context>
chip_gen: v7x
topology: tpu7x:2x2x1
jax: 0.10.0
libtpu: 0.0.40
codegen_flags: <defaults>
</compile_context>

<pallas_src>
import jax
import jax.numpy as jnp
from jax.experimental import pallas as pl
from jax.experimental.pallas import tpu as pltpu

# ---- model / problem dims (small, consistent with the module's __init__) ----
D = 32    # args.decoder_dim
DV = 16   # args.value_dim
DK = 24   # args.key_dim
V = 32    # vocab_size + 1  (vocab_size = 31)
L = 8     # encoder / utterance length
N = 2     # batch
T = 4     # decoder time steps

# Row offsets inside the packed 32-lane projection slab (all multiples of 8).
_EMB0 = 0
_WK0 = _EMB0 + V          # 32
_WQ0 = _WK0 + DK          # 56
_WC1H0 = _WQ0 + D         # 88
_WC1C0 = _WC1H0 + D       # 120
_EMBT0 = _WC1C0 + DV      # 136
_WS_ROWS = _EMBT0 + D     # 168


# ----------------------------------------------------------------------------
# Pallas kernel: the whole T-step decode runs in one invocation
# ----------------------------------------------------------------------------
def decoder_kernel(onehot_ref, gumbel_ref, keys_ref, values_ref, mask_ref,
                   wg_ref, ws_ref, b_ref,
                   logits_ref, attns_ref, gen_ref):
    keys = keys_ref[...]       # (N, L, DK)
    values = values_ref[...]   # (N, L, DV)
    mask = mask_ref[...]       # (N, L)

    # --- unpack packed weight slabs (static, sublane-aligned row slices) ---
    w1 = wg_ref[0:(D + DV + D), :]                       # (80, 4D)
    w2 = wg_ref[(D + DV + D):(D + DV + 3 * D), :]        # (64, 4D)
    w3 = wg_ref[(D + DV + 3 * D):(D + DV + 5 * D), :]    # (64, 4D)

    emb = ws_ref[_EMB0:_EMB0 + V, :]        # (V, D)  embedding table
    wkT = ws_ref[_WK0:_WK0 + DK, :]         # (DK, D) key projection
    wqT = ws_ref[_WQ0:_WQ0 + D, :]          # (D, D)  query projection
    wc1h = ws_ref[_WC1H0:_WC1H0 + D, :]     # (D, D)  char proj (h part)
    wc1c = ws_ref[_WC1C0:_WC1C0 + DV, :]    # (DV, D) char proj (ctx part)
    embT = ws_ref[_EMBT0:_EMBT0 + D, :]     # (D, V)  tied output projection

    b = b_ref[...]                                           # (8, 4D)
    # hoisted bias broadcasts (JAX does not CSE broadcast_in_dim inside loops)
    b1 = jnp.broadcast_to(b[0:1, :], (N, 4 * D))
    b2 = jnp.broadcast_to(b[1:2, :], (N, 4 * D))
    b3 = jnp.broadcast_to(b[2:3, :], (N, 4 * D))
    bk = b[3:4, 0:D]
    bq = jnp.broadcast_to(b[3:4, D:2 * D], (N, D))
    bc1 = jnp.broadcast_to(b[3:4, 2 * D:3 * D], (N, D))
    bc2 = jnp.broadcast_to(b[3:4, 3 * D:3 * D + V], (N, V))

    # --- step-invariant precompute (hoisted out of the decode loop) ---
    nk = jnp.dot(keys.reshape(N * L, DK), wkT,
                 preferred_element_type=jnp.float32) + bk
    nk = nk.reshape(N, L, D)                                 # key projection
    neg_pen = (1.0 - mask) * 10000.0
    lane_idx = jax.lax.broadcasted_iota(jnp.int32, (N, V), 1)

    def attention_ctx(queries):
        # calculate_attention + calculate_context
        energy = jnp.sum(nk * queries[:, None, :], axis=2) * mask - neg_pen
        emax = jnp.max(energy, axis=1, keepdims=True)
        exp_e = jnp.exp(energy - emax) * mask
        attn = exp_e / jnp.sum(exp_e, axis=1, keepdims=True)
        ctx = jnp.sum(attn[:, :, None] * values, axis=1)     # (N, DV)
        return attn, ctx

    def lstm(x, w, b_bcast, c):
        # PyTorch LSTMCell with fused gate matmul: [x, h] @ [Wih.T ; Whh.T] + b
        gates = jnp.dot(x, w, preferred_element_type=jnp.float32) + b_bcast
        i = jax.nn.sigmoid(gates[:, 0 * D:1 * D])
        f = jax.nn.sigmoid(gates[:, 1 * D:2 * D])
        g = jnp.tanh(gates[:, 2 * D:3 * D])
        o = jax.nn.sigmoid(gates[:, 3 * D:4 * D])
        c_new = f * c + i * g
        h_new = o * jnp.tanh(c_new)
        return h_new, c_new

    zero = jnp.zeros((N, D), jnp.float32)
    h1 = c1 = h2 = c2 = h3 = c3 = zero
    # initial query from h0 == 0  ->  query_projection reduces to its bias
    _, ctx = attention_ctx(bq)

    gen_cols = []
    for t in range(T):    # unrolled decode loop, state stays in vregs
        # embedding lookup as one-hot matmul (MXU)
        embed = jnp.dot(onehot_ref[t], emb, preferred_element_type=jnp.float32)

        h1, c1 = lstm(jnp.concatenate([embed, ctx, h1], axis=1), w1, b1, c1)
        h2, c2 = lstm(jnp.concatenate([h1, h2], axis=1), w2, b2, c2)
        h3, c3 = lstm(jnp.concatenate([h2, h3], axis=1), w3, b3, c3)

        # attention with the new top hidden state
        queries = jnp.dot(h3, wqT, preferred_element_type=jnp.float32) + bq
        attn, ctx = attention_ctx(queries)

        # char_projection: Linear(D+DV -> D) -> LeakyReLU -> tied Linear(D -> V)
        hidden = (jnp.dot(h3, wc1h, preferred_element_type=jnp.float32)
                  + jnp.dot(ctx, wc1c, preferred_element_type=jnp.float32) + bc1)
        hidden = jax.nn.leaky_relu(hidden)  # default negative_slope = 0.01
        logit = jnp.dot(hidden, embT, preferred_element_type=jnp.float32) + bc2

        # gumbel_argmax: first index of max(logit + gumbel) (torch.max semantics)
        noisy = logit + gumbel_ref[t]
        mx = jnp.max(noisy, axis=1, keepdims=True)
        argm = jnp.min(jnp.where(noisy >= mx, lane_idx, V),
                       axis=1, keepdims=True)                 # (N, 1) int32

        logits_ref[t] = logit          # VMEM stores; HBM writeback happens once
        attns_ref[t] = attn
        gen_cols.append(argm)

    gen_ref[...] = jnp.concatenate(gen_cols, axis=1).astype(jnp.int32)  # (N, T)


# ----------------------------------------------------------------------------
# Wrapper
# ----------------------------------------------------------------------------
def decoder_forward_pallas(params, tokens, keys_lnk, values_lnv, lengths, gumbel):
    # layout conversions identical to the torch forward
    keys_nld = jnp.transpose(keys_lnk, (1, 0, 2)).astype(jnp.float32)      # (N, L, DK)
    values_nld = jnp.transpose(values_lnv, (1, 0, 2)).astype(jnp.float32)  # (N, L, DV)
    mask = (jnp.arange(L)[None, :] < lengths[:, None]).astype(jnp.float32)  # (N, L)
    onehot = jax.nn.one_hot(tokens, V, dtype=jnp.float32)                   # (T, N, V)

    p = params
    # fused gate weights: rows = [Wih1.T;Whh1.T ; Wih2.T;Whh2.T ; Wih3.T;Whh3.T]
    w_gates = jnp.concatenate([
        p['Wih1'].T, p['Whh1'].T,
        p['Wih2'].T, p['Whh2'].T,
        p['Wih3'].T, p['Whh3'].T,
    ], axis=0).astype(jnp.float32)                       # (208, 4D)

    # packed 32-lane projection slab
    w_small = jnp.concatenate([
        p['emb'],            # (V, D)
        p['Wk'].T,           # (DK, D)
        p['Wq'].T,           # (D, D)
        p['Wc1'][:, :D].T,   # (D, D)
        p['Wc1'][:, D:].T,   # (DV, D)
        p['emb'].T,          # (D, V)   (V == D in this config)
    ], axis=0).astype(jnp.float32)                       # (168, 32)

    # one (8, 4D) bias tile; row 3 packs [bk | bq | bc1 | bc2] (3D + V == 4D here)
    biases = jnp.zeros((8, 4 * D), jnp.float32)
    biases = biases.at[0].set(p['bih1'] + p['bhh1'])
    biases = biases.at[1].set(p['bih2'] + p['bhh2'])
    biases = biases.at[2].set(p['bih3'] + p['bhh3'])
    biases = biases.at[3].set(jnp.concatenate([p['bk'], p['bq'], p['bc1'], p['bc2']]))

    vmem_spec = pl.BlockSpec(memory_space=pltpu.MemorySpace.VMEM)
    logits, attns, gen_nt = pl.pallas_call(
        decoder_kernel,
        out_shape=(
            jax.ShapeDtypeStruct((T, N, V), jnp.float32),   # logits
            jax.ShapeDtypeStruct((T, N, L), jnp.float32),   # attns
            jax.ShapeDtypeStruct((N, T), jnp.int32),        # generateds (transposed)
        ),
        in_specs=[vmem_spec] * 8,
        out_specs=(vmem_spec, vmem_spec, vmem_spec),
    )(onehot, gumbel.astype(jnp.float32), keys_nld, values_nld, mask,
      w_gates, w_small, biases)

    return logits, attns, gen_nt.T                       # gen as (T, N)


# ----------------------------------------------------------------------------
# Pure-JAX reference (mirrors the PyTorch forward) for a correctness check
# ----------------------------------------------------------------------------
def decoder_forward_ref(p, tokens, keys_lnk, values_lnv, lengths, gumbel):
    keys = jnp.transpose(keys_lnk, (1, 0, 2))
    values = jnp.transpose(values_lnv, (1, 0, 2))
    mask = (jnp.arange(L)[None, :] < lengths[:, None]).astype(jnp.float32)

    def key_proj(k):
        return jnp.einsum('nlk,dk->nld', k, p['Wk']) + p['bk']

    def lstm(x, state, Wih, Whh, bih, bhh):
        h, c = state
        gates = x @ Wih.T + bih + h @ Whh.T + bhh
        i, f, g, o = jnp.split(gates, 4, axis=1)
        i = jax.nn.sigmoid(i); f = jax.nn.sigmoid(f)
        g = jnp.tanh(g); o = jax.nn.sigmoid(o)
        c2 = f * c + i * g
        h2 = o * jnp.tanh(c2)
        return h2, (h2, c2)

    def attention(nk, m, q):
        energy = jnp.einsum('nld,nd->nl', nk, q) * m
        energy = energy - (1.0 - m) * 10000.0
        emax = jnp.max(energy, axis=1, keepdims=True)
        exp_e = jnp.exp(energy - emax) * m
        return exp_e / exp_e.sum(1, keepdims=True)

    def context(a, v):
        return jnp.einsum('nl,nld->nd', a, v)

    states = [(jnp.zeros((N, D), jnp.float32), jnp.zeros((N, D), jnp.float32))
              for _ in range(3)]
    h0 = states[-1][0]
    q = h0 @ p['Wq'].T + p['bq']
    attn = attention(key_proj(keys), mask, q)
    ctx = context(attn, values)

    logits, attns, gens = [], [], []
    cell_names = [('Wih1', 'Whh1', 'bih1', 'bhh1'),
                  ('Wih2', 'Whh2', 'bih2', 'bhh2'),
                  ('Wih3', 'Whh3', 'bih3', 'bhh3')]
    for i in range(T):
        embed = p['emb'][tokens[i]]
        x = jnp.concatenate([embed, ctx], axis=1)
        new_states = []
        for (wi, wh, bi, bh), st in zip(cell_names, states):
            x, newst = lstm(x, st, p[wi], p[wh], p[bi], p[bh])
            new_states.append(newst)
        states = new_states
        q = x @ p['Wq'].T + p['bq']
        attn = attention(key_proj(keys), mask, q)
        ctx = context(attn, values)
        ht2 = jnp.concatenate([x, ctx], axis=1)
        hidden = jax.nn.leaky_relu(ht2 @ p['Wc1'].T + p['bc1'])
        logit = hidden @ p['emb'].T + p['bc2']
        gen = jnp.argmax(logit + gumbel[i], axis=1)
        logits.append(logit); attns.append(attn); gens.append(gen)
    return jnp.stack(logits), jnp.stack(attns), jnp.stack(gens)


# ----------------------------------------------------------------------------
# Deterministic parameter init (shapes from DecoderModel.__init__)
# ----------------------------------------------------------------------------
def init_params(key):
    ks = jax.random.split(key, 16)

    def w(k, shape, scale=0.1):
        return (scale * jax.random.normal(k, shape)).astype(jnp.float32)

    p = {}
    p['emb'] = w(ks[0], (V, D))                        # embedding, tied to output Linear
    p['Wih1'] = w(ks[1], (4 * D, D + DV)); p['Whh1'] = w(ks[2], (4 * D, D))
    p['bih1'] = w(ks[3], (4 * D,), 0.05);  p['bhh1'] = w(ks[4], (4 * D,), 0.05)
    p['Wih2'] = w(ks[5], (4 * D, D));      p['Whh2'] = w(ks[6], (4 * D, D))
    p['bih2'] = w(ks[7], (4 * D,), 0.05);  p['bhh2'] = jnp.zeros((4 * D,), jnp.float32)
    p['Wih3'] = w(ks[8], (4 * D, D));      p['Whh3'] = w(ks[9], (4 * D, D))
    p['bih3'] = w(ks[10], (4 * D,), 0.05); p['bhh3'] = jnp.zeros((4 * D,), jnp.float32)
    p['Wk'] = w(ks[11], (D, DK));          p['bk'] = w(ks[12], (D,), 0.05)
    p['Wq'] = w(ks[13], (D, D));           p['bq'] = w(ks[14], (D,), 0.05)
    p['Wc1'] = w(ks[15], (D, D + DV));     p['bc1'] = jnp.zeros((D,), jnp.float32)
    p['bc2'] = jnp.zeros((V,), jnp.float32)            # bias of tied output Linear
    return p


if __name__ == "__main__":
    root = jax.random.PRNGKey(0)
    k_par, k_tok, k_key, k_val, k_gum = jax.random.split(root, 5)

    params = init_params(k_par)

    tokens = jax.random.randint(k_tok, (T, N), 0, V)                     # inputs (T, N)
    keys_lnk = jax.random.normal(k_key, (L, N, DK), jnp.float32)          # (L, N, key_dim)
    values_lnv = jax.random.normal(k_val, (L, N, DV), jnp.float32)        # (L, N, value_dim)
    lengths = jnp.array([L, L - 3], dtype=jnp.int32)                      # utterance_lengths

    # Gumbel(0,1) noise for gumbel_argmax (sampled with jax.random instead of torch.rand)
    U = jax.random.uniform(k_gum, (T, N, V), jnp.float32)
    gumbel = -jnp.log(1e-10 - jnp.log(U + 1e-10))
    # TODO(synk): teacher-forcing Bernoulli mixing (training, force_rate<1) and the
    #             future>0 free-running continuation are not implemented.

    logits, attns, gen = decoder_forward_pallas(params, tokens, keys_lnk,
                                                values_lnv, lengths, gumbel)
    jax.block_until_ready((logits, attns, gen))

    # reference check
    logits_r, attns_r, gen_r = decoder_forward_ref(params, tokens, keys_lnk,
                                                   values_lnv, lengths, gumbel)

    assert logits.shape == (T, N, V) and attns.shape == (T, N, L) and gen.shape == (T, N)
    assert bool(jnp.all(jnp.isfinite(logits))) and bool(jnp.all(jnp.isfinite(attns)))
    assert bool(jnp.all(jnp.abs(attns.sum(-1) - 1.0) < 1e-3))
    assert bool(jnp.all((gen >= 0) & (gen < V)))
    assert bool(jnp.allclose(logits, logits_r, atol=1e-2, rtol=1e-2))
    assert bool(jnp.allclose(attns, attns_r, atol=1e-2, rtol=1e-2))

    print("KERNEL_OK")
</pallas_src>

<mosaic_0001>
module attributes {stable_mosaic.version = 11 : i64} {
  func.func @decoder_kernel(%arg0: memref<4x2x32xf32, #tpu.memory_space<vmem>>, %arg1: memref<4x2x32xf32, #tpu.memory_space<vmem>>, %arg2: memref<2x8x24xf32, #tpu.memory_space<vmem>>, %arg3: memref<2x8x16xf32, #tpu.memory_space<vmem>>, %arg4: memref<2x8xf32, #tpu.memory_space<vmem>>, %arg5: memref<208x128xf32, #tpu.memory_space<vmem>>, %arg6: memref<168x32xf32, #tpu.memory_space<vmem>>, %arg7: memref<8x128xf32, #tpu.memory_space<vmem>>, %arg8: memref<4x2x32xf32, #tpu.memory_space<vmem>>, %arg9: memref<4x2x8xf32, #tpu.memory_space<vmem>>, %arg10: memref<2x4xi32, #tpu.memory_space<vmem>>) attributes {dimension_semantics = [], scalar_prefetch = 0 : i64, scratch_operands = 0 : i64, tpu.core_type = #tpu.core_type<tc>} {
    %c0 = arith.constant 0 : index
    %c0_0 = arith.constant 0 : index
    %c0_1 = arith.constant 0 : index
    %0 = vector.load %arg2[%c0, %c0_0, %c0_1] : memref<2x8x24xf32, #tpu.memory_space<vmem>>, vector<2x8x24xf32>
    %c0_2 = arith.constant 0 : index
    %c0_3 = arith.constant 0 : index
    %c0_4 = arith.constant 0 : index
    %1 = vector.load %arg3[%c0_2, %c0_3, %c0_4] : memref<2x8x16xf32, #tpu.memory_space<vmem>>, vector<2x8x16xf32>
    %c0_5 = arith.constant 0 : index
    %c0_6 = arith.constant 0 : index
    %2 = vector.load %arg4[%c0_5, %c0_6] : memref<2x8xf32, #tpu.memory_space<vmem>>, vector<2x8xf32>
    %c0_7 = arith.constant 0 : index
    %c0_8 = arith.constant 0 : index
    %3 = vector.load %arg5[%c0_7, %c0_8] : memref<208x128xf32, #tpu.memory_space<vmem>>, vector<80x128xf32>
    %c80 = arith.constant 80 : index
    %c0_9 = arith.constant 0 : index
    %4 = vector.load %arg5[%c80, %c0_9] : memref<208x128xf32, #tpu.memory_space<vmem>>, vector<64x128xf32>
    %c144 = arith.constant 144 : index
    %c0_10 = arith.constant 0 : index
    %5 = vector.load %arg5[%c144, %c0_10] : memref<208x128xf32, #tpu.memory_space<vmem>>, vector<64x128xf32>
    %c0_11 = arith.constant 0 : index
    %c0_12 = arith.constant 0 : index
    %6 = vector.load %arg6[%c0_11, %c0_12] : memref<168x32xf32, #tpu.memory_space<vmem>>, vector<32x32xf32>
    %c32 = arith.constant 32 : index
    %c0_13 = arith.constant 0 : index
    %7 = vector.load %arg6[%c32, %c0_13] : memref<168x32xf32, #tpu.memory_space<vmem>>, vector<24x32xf32>
    %c56 = arith.constant 56 : index
    %c0_14 = arith.constant 0 : index
    %8 = vector.load %arg6[%c56, %c0_14] : memref<168x32xf32, #tpu.memory_space<vmem>>, vector<32x32xf32>
    %c88 = arith.constant 88 : index
    %c0_15 = arith.constant 0 : index
    %9 = vector.load %arg6[%c88, %c0_15] : memref<168x32xf32, #tpu.memory_space<vmem>>, vector<32x32xf32>
    %c120 = arith.constant 120 : index
    %c0_16 = arith.constant 0 : index
    %10 = vector.load %arg6[%c120, %c0_16] : memref<168x32xf32, #tpu.memory_space<vmem>>, vector<16x32xf32>
    %c136 = arith.constant 136 : index
    %c0_17 = arith.constant 0 : index
    %11 = vector.load %arg6[%c136, %c0_17] : memref<168x32xf32, #tpu.memory_space<vmem>>, vector<32x32xf32>
    %c0_18 = arith.constant 0 : index
    %c0_19 = arith.constant 0 : index
    %12 = vector.load %arg7[%c0_18, %c0_19] : memref<8x128xf32, #tpu.memory_space<vmem>>, vector<8x128xf32>
    %13 = vector.extract_strided_slice %12 {offsets = [0, 0], sizes = [1, 128], strides = [1, 1]} : vector<8x128xf32> to vector<1x128xf32>
    %14 = vector.shape_cast %13 : vector<1x128xf32> to vector<1x128xf32>
    %15 = vector.broadcast %14 : vector<1x128xf32> to vector<2x128xf32>
    %16 = vector.extract_strided_slice %12 {offsets = [1, 0], sizes = [1, 128], strides = [1, 1]} : vector<8x128xf32> to vector<1x128xf32>
    %17 = vector.shape_cast %16 : vector<1x128xf32> to vector<1x128xf32>
    %18 = vector.broadcast %17 : vector<1x128xf32> to vector<2x128xf32>
    %19 = vector.extract_strided_slice %12 {offsets = [2, 0], sizes = [1, 128], strides = [1, 1]} : vector<8x128xf32> to vector<1x128xf32>
    %20 = vector.shape_cast %19 : vector<1x128xf32> to vector<1x128xf32>
    %21 = vector.broadcast %20 : vector<1x128xf32> to vector<2x128xf32>
    %22 = vector.extract_strided_slice %12 {offsets = [3, 0], sizes = [1, 32], strides = [1, 1]} : vector<8x128xf32> to vector<1x32xf32>
    %23 = vector.extract_strided_slice %12 {offsets = [3, 32], sizes = [1, 32], strides = [1, 1]} : vector<8x128xf32> to vector<1x32xf32>
    %24 = vector.shape_cast %23 : vector<1x32xf32> to vector<1x32xf32>
    %25 = vector.broadcast %24 : vector<1x32xf32> to vector<2x32xf32>
    %26 = vector.extract_strided_slice %12 {offsets = [3, 64], sizes = [1, 32], strides = [1, 1]} : vector<8x128xf32> to vector<1x32xf32>
    %27 = vector.shape_cast %26 : vector<1x32xf32> to vector<1x32xf32>
    %28 = vector.broadcast %27 : vector<1x32xf32> to vector<2x32xf32>
    %29 = vector.extract_strided_slice %12 {offsets = [3, 96], sizes = [1, 32], strides = [1, 1]} : vector<8x128xf32> to vector<1x32xf32>
    %30 = vector.shape_cast %29 : vector<1x32xf32> to vector<1x32xf32>
    %31 = vector.broadcast %30 : vector<1x32xf32> to vector<2x32xf32>
    %32 = vector.shape_cast %0 : vector<2x8x24xf32> to vector<16x24xf32>
    %cst = arith.constant dense<0.000000e+00> : vector<16x32xf32>
    %33 = tpu.matmul %32, %7, %cst {dimension_numbers = #tpu.dot_dimension_numbers<[1], [0], [0], [1], [0, 0, 1, 1], [], []>} : vector<16x24xf32>, vector<24x32xf32>, vector<16x32xf32> -> vector<16x32xf32>
    %34 = vector.broadcast %22 : vector<1x32xf32> to vector<16x32xf32>
    %35 = arith.addf %33, %34 : vector<16x32xf32>
    %36 = vector.shape_cast %35 : vector<16x32xf32> to vector<2x8x32xf32>
    %cst_20 = arith.constant 1.000000e+00 : f32
    %37 = vector.broadcast %cst_20 : f32 to vector<2x8xf32>
    %38 = arith.subf %37, %2 : vector<2x8xf32>
    %cst_21 = arith.constant 1.000000e+04 : f32
    %39 = vector.broadcast %cst_21 : f32 to vector<2x8xf32>
    %40 = arith.mulf %38, %39 : vector<2x8xf32>
    %41 = tpu.iota {dimensions = array<i32: 1>} : vector<2x32xi32>
    %cst_22 = arith.constant 0.000000e+00 : f32
    %42 = vector.broadcast %cst_22 : f32 to vector<2x32xf32>
    %43 = vector.shape_cast %25 : vector<2x32xf32> to vector<2x1x32xf32>
    %44 = vector.broadcast %43 : vector<2x1x32xf32> to vector<2x8x32xf32>
    %45 = arith.mulf %36, %44 : vector<2x8x32xf32>
    %cst_23 = arith.constant dense<0.000000e+00> : vector<2x8xf32>
    %46 = vector.multi_reduction <add>, %45, %cst_23 [2] : vector<2x8x32xf32> to vector<2x8xf32>
    %47 = arith.mulf %46, %2 : vector<2x8xf32>
    %48 = arith.subf %47, %40 : vector<2x8xf32>
    %cst_24 = arith.constant dense<0xFF800000> : vector<2xf32>
    %49 = vector.multi_reduction <maximumf>, %48, %cst_24 [1] : vector<2x8xf32> to vector<2xf32>
    %50 = vector.shape_cast %49 : vector<2xf32> to vector<2x1xf32>
    %51 = vector.broadcast %50 : vector<2x1xf32> to vector<2x8xf32>
    %52 = arith.subf %48, %51 : vector<2x8xf32>
    %53 = math.exp %52 : vector<2x8xf32>
    %54 = arith.mulf %53, %2 : vector<2x8xf32>
    %cst_25 = arith.constant dense<0.000000e+00> : vector<2xf32>
    %55 = vector.multi_reduction <add>, %54, %cst_25 [1] : vector<2x8xf32> to vector<2xf32>
    %56 = vector.shape_cast %55 : vector<2xf32> to vector<2x1xf32>
    %57 = vector.broadcast %56 : vector<2x1xf32> to vector<2x8xf32>
    %58 = arith.divf %54, %57 : vector<2x8xf32>
    %59 = vector.shape_cast %58 : vector<2x8xf32> to vector<2x8x1xf32>
    %60 = vector.broadcast %59 : vector<2x8x1xf32> to vector<2x8x16xf32>
    %61 = arith.mulf %60, %1 : vector<2x8x16xf32>
    %cst_26 = arith.constant dense<0.000000e+00> : vector<2x16xf32>
    %62 = vector.multi_reduction <add>, %61, %cst_26 [1] : vector<2x8x16xf32> to vector<2x16xf32>
    %c0_27 = arith.constant 0 : index
    %c0_28 = arith.constant 0 : index
    %c0_29 = arith.constant 0 : index
    %63 = vector.load %arg0[%c0_27, %c0_28, %c0_29] : memref<4x2x32xf32, #tpu.memory_space<vmem>>, vector<1x2x32xf32>
    %64 = vector.shape_cast %63 : vector<1x2x32xf32> to vector<2x32xf32>
    %cst_30 = arith.constant dense<0.000000e+00> : vector<2x32xf32>
    %65 = tpu.matmul %64, %6, %cst_30 {dimension_numbers = #tpu.dot_dimension_numbers<[1], [0], [0], [1], [0, 0, 1, 1], [], []>} : vector<2x32xf32>, vector<32x32xf32>, vector<2x32xf32> -> vector<2x32xf32>
    %66 = tpu.concatenate %65, %62, %42 in 1 : vector<2x32xf32>, vector<2x16xf32>, vector<2x32xf32> -> vector<2x80xf32>
    %cst_31 = arith.constant dense<0.000000e+00> : vector<2x128xf32>
    %67 = tpu.matmul %66, %3, %cst_31 {dimension_numbers = #tpu.dot_dimension_numbers<[1], [0], [0], [1], [0, 0, 1, 1], [], []>} : vector<2x80xf32>, vector<80x128xf32>, vector<2x128xf32> -> vector<2x128xf32>
    %68 = arith.addf %67, %15 : vector<2x128xf32>
    %69 = vector.extract_strided_slice %68 {offsets = [0, 0], sizes = [2, 32], strides = [1, 1]} : vector<2x128xf32> to vector<2x32xf32>
    %70 = arith.negf %69 : vector<2x32xf32>
    %71 = math.exp %70 : vector<2x32xf32>
    %cst_32 = arith.constant 1.000000e+00 : f32
    %72 = vector.broadcast %cst_32 : f32 to vector<2x32xf32>
    %73 = arith.addf %72, %71 : vector<2x32xf32>
    %74 = arith.divf %72, %73 : vector<2x32xf32>
    %75 = vector.extract_strided_slice %68 {offsets = [0, 32], sizes = [2, 32], strides = [1, 1]} : vector<2x128xf32> to vector<2x32xf32>
    %76 = arith.negf %75 : vector<2x32xf32>
    %77 = math.exp %76 : vector<2x32xf32>
    %cst_33 = arith.constant 1.000000e+00 : f32
    %78 = vector.broadcast %cst_33 : f32 to vector<2x32xf32>
    %79 = arith.addf %78, %77 : vector<2x32xf32>
    %80 = arith.divf %78, %79 : vector<2x32xf32>
    %81 = vector.extract_strided_slice %68 {offsets = [0, 64], sizes = [2, 32], strides = [1, 1]} : vector<2x128xf32> to vector<2x32xf32>
    %82 = math.tanh %81 : vector<2x32xf32>
    %83 = vector.extract_strided_slice %68 {offsets = [0, 96], sizes = [2, 32], strides = [1, 1]} : vector<2x128xf32> to vector<2x32xf32>
    %84 = arith.negf %83 : vector<2x32xf32>
    %85 = math.exp %84 : vector<2x32xf32>
    %cst_34 = arith.constant 1.000000e+00 : f32
    %86 = vector.broadcast %cst_34 : f32 to vector<2x32xf32>
    %87 = arith.addf %86, %85 : vector<2x32xf32>
    %88 = arith.divf %86, %87 : vector<2x32xf32>
    %89 = arith.mulf %80, %42 : vector<2x32xf32>
    %90 = arith.mulf %74, %82 : vector<2x32xf32>
    %91 = arith.addf %89, %90 : vector<2x32xf32>
    %92 = math.tanh %91 : vector<2x32xf32>
    %93 = arith.mulf %88, %92 : vector<2x32xf32>
    %94 = tpu.concatenate %93, %42 in 1 : vector<2x32xf32>, vector<2x32xf32> -> vector<2x64xf32>
    %cst_35 = arith.constant dense<0.000000e+00> : vector<2x128xf32>
    %95 = tpu.matmul %94, %4, %cst_35 {dimension_numbers = #tpu.dot_dimension_numbers<[1], [0], [0], [1], [0, 0, 1, 1], [], []>} : vector<2x64xf32>, vector<64x128xf32>, vector<2x128xf32> -> vector<2x128xf32>
    %96 = arith.addf %95, %18 : vector<2x128xf32>
    %97 = vector.extract_strided_slice %96 {offsets = [0, 0], sizes = [2, 32], strides = [1, 1]} : vector<2x128xf32> to vector<2x32xf32>
    %98 = arith.negf %97 : vector<2x32xf32>
    %99 = math.exp %98 : vector<2x32xf32>
    %cst_36 = arith.constant 1.000000e+00 : f32
    %100 = vector.broadcast %cst_36 : f32 to vector<2x32xf32>
    %101 = arith.addf %100, %99 : vector<2x32xf32>
    %102 = arith.divf %100, %101 : vector<2x32xf32>
    %103 = vector.extract_strided_slice %96 {offsets = [0, 32], sizes = [2, 32], strides = [1, 1]} : vector<2x128xf32> to vector<2x32xf32>
    %104 = arith.negf %103 : vector<2x32xf32>
    %105 = math.exp %104 : vector<2x32xf32>
    %cst_37 = arith.constant 1.000000e+00 : f32
    %106 = vector.broadcast %cst_37 : f32 to vector<2x32xf32>
    %107 = arith.addf %106, %105 : vector<2x32xf32>
    %108 = arith.divf %106, %107 : vector<2x32xf32>
    %109 = vector.extract_strided_slice %96 {offsets = [0, 64], sizes = [2, 32], strides = [1, 1]} : vector<2x128xf32> to vector<2x32xf32>
    %110 = math.tanh %109 : vector<2x32xf32>
    %111 = vector.extract_strided_slice %96 {offsets = [0, 96], sizes = [2, 32], strides = [1, 1]} : vector<2x128xf32> to vector<2x32xf32>
    %112 = arith.negf %111 : vector<2x32xf32>
    %113 = math.exp %112 : vector<2x32xf32>
    %cst_38 = arith.constant 1.000000e+00 : f32
    %114 = vector.broadcast %cst_38 : f32 to vector<2x32xf32>
    %115 = arith.addf %114, %113 : vector<2x32xf32>
    %116 = arith.divf %114, %115 : vector<2x32xf32>
    %117 = arith.mulf %108, %42 : vector<2x32xf32>
    %118 = arith.mulf %102, %110 : vector<2x32xf32>
    %119 = arith.addf %117, %118 : vector<2x32xf32>
    %120 = math.tanh %119 : vector<2x32xf32>
    %121 = arith.mulf %116, %120 : vector<2x32xf32>
    %122 = tpu.concatenate %121, %42 in 1 : vector<2x32xf32>, vector<2x32xf32> -> vector<2x64xf32>
    %cst_39 = arith.constant dense<0.000000e+00> : vector<2x128xf32>
    %123 = tpu.matmul %122, %5, %cst_39 {dimension_numbers = #tpu.dot_dimension_numbers<[1], [0], [0], [1], [0, 0, 1, 1], [], []>} : vector<2x64xf32>, vector<64x128xf32>, vector<2x128xf32> -> vector<2x128xf32>
    %124 = arith.addf %123, %21 : vector<2x128xf32>
    %125 = vector.extract_strided_slice %124 {offsets = [0, 0], sizes = [2, 32], strides = [1, 1]} : vector<2x128xf32> to vector<2x32xf32>
    %126 = arith.negf %125 : vector<2x32xf32>
    %127 = math.exp %126 : vector<2x32xf32>
    %cst_40 = arith.constant 1.000000e+00 : f32
    %128 = vector.broadcast %cst_40 : f32 to vector<2x32xf32>
    %129 = arith.addf %128, %127 : vector<2x32xf32>
    %130 = arith.divf %128, %129 : vector<2x32xf32>
    %131 = vector.extract_strided_slice %124 {offsets = [0, 32], sizes = [2, 32], strides = [1, 1]} : vector<2x128xf32> to vector<2x32xf32>
    %132 = arith.negf %131 : vector<2x32xf32>
    %133 = math.exp %132 : vector<2x32xf32>
    %cst_41 = arith.constant 1.000000e+00 : f32
    %134 = vector.broadcast %cst_41 : f32 to vector<2x32xf32>
    %135 = arith.addf %134, %133 : vector<2x32xf32>
    %136 = arith.divf %134, %135 : vector<2x32xf32>
    %137 = vector.extract_strided_slice %124 {offsets = [0, 64], sizes = [2, 32], strides = [1, 1]} : vector<2x128xf32> to vector<2x32xf32>
    %138 = math.tanh %137 : vector<2x32xf32>
    %139 = vector.extract_strided_slice %124 {offsets = [0, 96], sizes = [2, 32], strides = [1, 1]} : vector<2x128xf32> to vector<2x32xf32>
    %140 = arith.negf %139 : vector<2x32xf32>
    %141 = math.exp %140 : vector<2x32xf32>
    %cst_42 = arith.constant 1.000000e+00 : f32
    %142 = vector.broadcast %cst_42 : f32 to vector<2x32xf32>
    %143 = arith.addf %142, %141 : vector<2x32xf32>
    %144 = arith.divf %142, %143 : vector<2x32xf32>
    %145 = arith.mulf %136, %42 : vector<2x32xf32>
    %146 = arith.mulf %130, %138 : vector<2x32xf32>
    %147 = arith.addf %145, %146 : vector<2x32xf32>
    %148 = math.tanh %147 : vector<2x32xf32>
    %149 = arith.mulf %144, %148 : vector<2x32xf32>
    %cst_43 = arith.constant dense<0.000000e+00> : vector<2x32xf32>
    %150 = tpu.matmul %149, %8, %cst_43 {dimension_numbers = #tpu.dot_dimension_numbers<[1], [0], [0], [1], [0, 0, 1, 1], [], []>} : vector<2x32xf32>, vector<32x32xf32>, vector<2x32xf32> -> vector<2x32xf32>
    %151 = arith.addf %150, %25 : vector<2x32xf32>
    %152 = vector.shape_cast %151 : vector<2x32xf32> to vector<2x1x32xf32>
    %153 = vector.broadcast %152 : vector<2x1x32xf32> to vector<2x8x32xf32>
    %154 = arith.mulf %36, %153 : vector<2x8x32xf32>
    %cst_44 = arith.constant dense<0.000000e+00> : vector<2x8xf32>
    %155 = vector.multi_reduction <add>, %154, %cst_44 [2] : vector<2x8x32xf32> to vector<2x8xf32>
    %156 = arith.mulf %155, %2 : vector<2x8xf32>
    %157 = arith.subf %156, %40 : vector<2x8xf32>
    %cst_45 = arith.constant dense<0xFF800000> : vector<2xf32>
    %158 = vector.multi_reduction <maximumf>, %157, %cst_45 [1] : vector<2x8xf32> to vector<2xf32>
    %159 = vector.shape_cast %158 : vector<2xf32> to vector<2x1xf32>
    %160 = vector.broadcast %159 : vector<2x1xf32> to vector<2x8xf32>
    %161 = arith.subf %157, %160 : vector<2x8xf32>
    %162 = math.exp %161 : vector<2x8xf32>
    %163 = arith.mulf %162, %2 : vector<2x8xf32>
    %cst_46 = arith.constant dense<0.000000e+00> : vector<2xf32>
    %164 = vector.multi_reduction <add>, %163, %cst_46 [1] : vector<2x8xf32> to vector<2xf32>
    %165 = vector.shape_cast %164 : vector<2xf32> to vector<2x1xf32>
    %166 = vector.broadcast %165 : vector<2x1xf32> to vector<2x8xf32>
    %167 = arith.divf %163, %166 : vector<2x8xf32>
    %168 = vector.shape_cast %167 : vector<2x8xf32> to vector<2x8x1xf32>
    %169 = vector.broadcast %168 : vector<2x8x1xf32> to vector<2x8x16xf32>
    %170 = arith.mulf %169, %1 : vector<2x8x16xf32>
    %cst_47 = arith.constant dense<0.000000e+00> : vector<2x16xf32>
    %171 = vector.multi_reduction <add>, %170, %cst_47 [1] : vector<2x8x16xf32> to vector<2x16xf32>
    %cst_48 = arith.constant dense<0.000000e+00> : vector<2x32xf32>
    %172 = tpu.matmul %149, %9, %cst_48 {dimension_numbers = #tpu.dot_dimension_numbers<[1], [0], [0], [1], [0, 0, 1, 1], [], []>} : vector<2x32xf32>, vector<32x32xf32>, vector<2x32xf32> -> vector<2x32xf32>
    %cst_49 = arith.constant dense<0.000000e+00> : vector<2x32xf32>
    %173 = tpu.matmul %171, %10, %cst_49 {dimension_numbers = #tpu.dot_dimension_numbers<[1], [0], [0], [1], [0, 0, 1, 1], [], []>} : vector<2x16xf32>, vector<16x32xf32>, vector<2x32xf32> -> vector<2x32xf32>
    %174 = arith.addf %172, %173 : vector<2x32xf32>
    %175 = arith.addf %174, %28 : vector<2x32xf32>
    %cst_50 = arith.constant 0.000000e+00 : f32
    %176 = vector.broadcast %cst_50 : f32 to vector<2x32xf32>
    %177 = arith.cmpf oge, %175, %176 : vector<2x32xf32>
    %cst_51 = arith.constant 0.00999999977 : f32
    %178 = vector.broadcast %cst_51 : f32 to vector<2x32xf32>
    %179 = arith.mulf %178, %175 : vector<2x32xf32>
    %180 = arith.select %177, %175, %179 : vector<2x32xi1>, vector<2x32xf32>
    %cst_52 = arith.constant dense<0.000000e+00> : vector<2x32xf32>
    %181 = tpu.matmul %180, %11, %cst_52 {dimension_numbers = #tpu.dot_dimension_numbers<[1], [0], [0], [1], [0, 0, 1, 1], [], []>} : vector<2x32xf32>, vector<32x32xf32>, vector<2x32xf32> -> vector<2x32xf32>
    %182 = arith.addf %181, %31 : vector<2x32xf32>
    %c0_53 = arith.constant 0 : index
    %c0_54 = arith.constant 0 : index
    %c0_55 = arith.constant 0 : index
    %183 = vector.load %arg1[%c0_53, %c0_54, %c0_55] : memref<4x2x32xf32, #tpu.memory_space<vmem>>, vector<1x2x32xf32>
    %184 = vector.shape_cast %183 : vector<1x2x32xf32> to vector<2x32xf32>
    %185 = arith.addf %182, %184 : vector<2x32xf32>
    %cst_56 = arith.constant dense<0xFF800000> : vector<2xf32>
    %186 = vector.multi_reduction <maximumf>, %185, %cst_56 [1] : vector<2x32xf32> to vector<2xf32>
    %187 = vector.shape_cast %186 : vector<2xf32> to vector<2x1xf32>
    %188 = vector.broadcast %187 : vector<2x1xf32> to vector<2x32xf32>
    %189 = arith.cmpf oge, %185, %188 : vector<2x32xf32>
    %c32_i32 = arith.constant 32 : i32
    %190 = vector.broadcast %c32_i32 : i32 to vector<2x32xi32>
    %191 = arith.select %189, %41, %190 : vector<2x32xi1>, vector<2x32xi32>
    %cst_57 = arith.constant dense<2147483647> : vector<2xi32>
    %192 = vector.multi_reduction <minsi>, %191, %cst_57 [1] : vector<2x32xi32> to vector<2xi32>
    %193 = vector.shape_cast %192 : vector<2xi32> to vector<2x1xi32>
    %c0_58 = arith.constant 0 : index
    %c0_59 = arith.constant 0 : index
    %c0_60 = arith.constant 0 : index
    %194 = vector.load %arg8[%c0_58, %c0_59, %c0_60] : memref<4x2x32xf32, #tpu.memory_space<vmem>>, vector<1x2x32xf32>
    %195 = vector.shape_cast %194 : vector<1x2x32xf32> to vector<2x32xf32>
    %196 = vector.shape_cast %182 : vector<2x32xf32> to vector<1x2x32xf32>
    tpu.vector_store %arg8[%c0_58, %c0_59, %c0_60], %196 {strides = array<i32>} : memref<4x2x32xf32, #tpu.memory_space<vmem>>, vector<1x2x32xf32>,
    %c0_61 = arith.constant 0 : index
    %c0_62 = arith.constant 0 : index
    %c0_63 = arith.constant 0 : index
    %197 = vector.load %arg9[%c0_61, %c0_62, %c0_63] : memref<4x2x8xf32, #tpu.memory_space<vmem>>, vector<1x2x8xf32>
    %198 = vector.shape_cast %197 : vector<1x2x8xf32> to vector<2x8xf32>
    %199 = vector.shape_cast %167 : vector<2x8xf32> to vector<1x2x8xf32>
    tpu.vector_store %arg9[%c0_61, %c0_62, %c0_63], %199 {strides = array<i32>} : memref<4x2x8xf32, #tpu.memory_space<vmem>>, vector<1x2x8xf32>,
    %c1 = arith.constant 1 : index
    %c0_64 = arith.constant 0 : index
    %c0_65 = arith.constant 0 : index
    %200 = vector.load %arg0[%c1, %c0_64, %c0_65] : memref<4x2x32xf32, #tpu.memory_space<vmem>>, vector<1x2x32xf32>
    %201 = vector.shape_cast %200 : vector<1x2x32xf32> to vector<2x32xf32>
    %cst_66 = arith.constant dense<0.000000e+00> : vector<2x32xf32>
    %202 = tpu.matmul %201, %6, %cst_66 {dimension_numbers = #tpu.dot_dimension_numbers<[1], [0], [0], [1], [0, 0, 1, 1], [], []>} : vector<2x32xf32>, vector<32x32xf32>, vector<2x32xf32> -> vector<2x32xf32>
    %203 = tpu.concatenate %202, %171, %93 in 1 : vector<2x32xf32>, vector<2x16xf32>, vector<2x32xf32> -> vector<2x80xf32>
    %cst_67 = arith.constant dense<0.000000e+00> : vector<2x128xf32>
    %204 = tpu.matmul %203, %3, %cst_67 {dimension_numbers = #tpu.dot_dimension_numbers<[1], [0], [0], [1], [0, 0, 1, 1], [], []>} : vector<2x80xf32>, vector<80x128xf32>, vector<2x128xf32> -> vector<2x128xf32>
    %205 = arith.addf %204, %15 : vector<2x128xf32>
    %206 = vector.extract_strided_slice %205 {offsets = [0, 0], sizes = [2, 32], strides = [1, 1]} : vector<2x128xf32> to vector<2x32xf32>
    %207 = arith.negf %206 : vector<2x32xf32>
    %208 = math.exp %207 : vector<2x32xf32>
    %cst_68 = arith.constant 1.000000e+00 : f32
    %209 = vector.broadcast %cst_68 : f32 to vector<2x32xf32>
    %210 = arith.addf %209, %208 : vector<2x32xf32>
    %211 = arith.divf %209, %210 : vector<2x32xf32>
    %212 = vector.extract_strided_slice %205 {offsets = [0, 32], sizes = [2, 32], strides = [1, 1]} : vector<2x128xf32> to vector<2x32xf32>
    %213 = arith.negf %212 : vector<2x32xf32>
    %214 = math.exp %213 : vector<2x32xf32>
    %cst_69 = arith.constant 1.000000e+00 : f32
    %215 = vector.broadcast %cst_69 : f32 to vector<2x32xf32>
    %216 = arith.addf %215, %214 : vector<2x32xf32>
    %217 = arith.divf %215, %216 : vector<2x32xf32>
    %218 = vector.extract_strided_slice %205 {offsets = [0, 64], sizes = [2, 32], strides = [1, 1]} : vector<2x128xf32> to vector<2x32xf32>
    %219 = math.tanh %218 : vector<2x32xf32>
    %220 = vector.extract_strided_slice %205 {offsets = [0, 96], sizes = [2, 32], strides = [1, 1]} : vector<2x128xf32> to vector<2x32xf32>
    %221 = arith.negf %220 : vector<2x32xf32>
    %222 = math.exp %221 : vector<2x32xf32>
    %cst_70 = arith.constant 1.000000e+00 : f32
    %223 = vector.broadcast %cst_70 : f32 to vector<2x32xf32>
    %224 = arith.addf %223, %222 : vector<2x32xf32>
    %225 = arith.divf %223, %224 : vector<2x32xf32>
    %226 = arith.mulf %217, %91 : vector<2x32xf32>
    %227 = arith.mulf %211, %219 : vector<2x32xf32>
    %228 = arith.addf %226, %227 : vector<2x32xf32>
    %229 = math.tanh %228 : vector<2x32xf32>
    %230 = arith.mulf %225, %229 : vector<2x32xf32>
    %231 = tpu.concatenate %230, %121 in 1 : vector<2x32xf32>, vector<2x32xf32> -> vector<2x64xf32>
    %cst_71 = arith.constant dense<0.000000e+00> : vector<2x128xf32>
    %232 = tpu.matmul %231, %4, %cst_71 {dimension_numbers = #tpu.dot_dimension_numbers<[1], [0], [0], [1], [0, 0, 1, 1], [], []>} : vector<2x64xf32>, vector<64x128xf32>, vector<2x128xf32> -> vector<2x128xf32>
    %233 = arith.addf %232, %18 : vector<2x128xf32>
    %234 = vector.extract_strided_slice %233 {offsets = [0, 0], sizes = [2, 32], strides = [1, 1]} : vector<2x128xf32> to vector<2x32xf32>
    %235 = arith.negf %234 : vector<2x32xf32>
    %236 = math.exp %235 : vector<2x32xf32>
    %cst_72 = arith.constant 1.000000e+00 : f32
    %237 = vector.broadcast %cst_72 : f32 to vector<2x32xf32>
    %238 = arith.addf %237, %236 : vector<2x32xf32>
    %239 = arith.divf %237, %238 : vector<2x32xf32>
    %240 = vector.extract_strided_slice %233 {offsets = [0, 32], sizes = [2, 32], strides = [1, 1]} : vector<2x128xf32> to vector<2x32xf32>
    %241 = arith.negf %240 : vector<2x32xf32>
    %242 = math.exp %241 : vector<2x32xf32>
    %cst_73 = arith.constant 1.000000e+00 : f32
    %243 = vector.broadcast %cst_73 : f32 to vector<2x32xf32>
    %244 = arith.addf %243, %242 : vector<2x32xf32>
    %245 = arith.divf %243, %244 : vector<2x32xf32>
    %246 = vector.extract_strided_slice %233 {offsets = [0, 64], sizes = [2, 32], strides = [1, 1]} : vector<2x128xf32> to vector<2x32xf32>
    %247 = math.tanh %246 : vector<2x32xf32>
    %248 = vector.extract_strided_slice %233 {offsets = [0, 96], sizes = [2, 32], strides = [1, 1]} : vector<2x128xf32> to vector<2x32xf32>
    %249 = arith.negf %248 : vector<2x32xf32>
    %250 = math.exp %249 : vector<2x32xf32>
    %cst_74 = arith.constant 1.000000e+00 : f32
    %251 = vector.broadcast %cst_74 : f32 to vector<2x32xf32>
    %252 = arith.addf %251, %250 : vector<2x32xf32>
    %253 = arith.divf %251, %252 : vector<2x32xf32>
    %254 = arith.mulf %245, %119 : vector<2x32xf32>
    %255 = arith.mulf %239, %247 : vector<2x32xf32>
    %256 = arith.addf %254, %255 : vector<2x32xf32>
    %257 = math.tanh %256 : vector<2x32xf32>
    %258 = arith.mulf %253, %257 : vector<2x32xf32>
    %259 = tpu.concatenate %258, %149 in 1 : vector<2x32xf32>, vector<2x32xf32> -> vector<2x64xf32>
    %cst_75 = arith.constant dense<0.000000e+00> : vector<2x128xf32>
    %260 = tpu.matmul %259, %5, %cst_75 {dimension_numbers = #tpu.dot_dimension_numbers<[1], [0], [0], [1], [0, 0, 1, 1], [], []>} : vector<2x64xf32>, vector<64x128xf32>, vector<2x128xf32> -> vector<2x128xf32>
    %261 = arith.addf %260, %21 : vector<2x128xf32>
    %262 = vector.extract_strided_slice %261 {offsets = [0, 0], sizes = [2, 32], strides = [1, 1]} : vector<2x128xf32> to vector<2x32xf32>
    %263 = arith.negf %262 : vector<2x32xf32>
    %264 = math.exp %263 : vector<2x32xf32>
    %cst_76 = arith.constant 1.000000e+00 : f32
    %265 = vector.broadcast %cst_76 : f32 to vector<2x32xf32>
    %266 = arith.addf %265, %264 : vector<2x32xf32>
    %267 = arith.divf %265, %266 : vector<2x32xf32>
    %268 = vector.extract_strided_slice %261 {offsets = [0, 32], sizes = [2, 32], strides = [1, 1]} : vector<2x128xf32> to vector<2x32xf32>
    %269 = arith.negf %268 : vector<2x32xf32>
    %270 = math.exp %269 : vector<2x32xf32>
    %cst_77 = arith.constant 1.000000e+00 : f32
    %271 = vector.broadcast %cst_77 : f32 to vector<2x32xf32>
    %272 = arith.addf %271, %270 : vector<2x32xf32>
    %273 = arith.divf %271, %272 : vector<2x32xf32>
    %274 = vector.extract_strided_slice %261 {offsets = [0, 64], sizes = [2, 32], strides = [1, 1]} : vector<2x128xf32> to vector<2x32xf32>
    %275 = math.tanh %274 : vector<2x32xf32>
    %276 = vector.extract_strided_slice %261 {offsets = [0, 96], sizes = [2, 32], strides = [1, 1]} : vector<2x128xf32> to vector<2x32xf32>
    %277 = arith.negf %276 : vector<2x32xf32>
    %278 = math.exp %277 : vector<2x32xf32>
    %cst_78 = arith.constant 1.000000e+00 : f32
    %279 = vector.broadcast %cst_78 : f32 to vector<2x32xf32>
    %280 = arith.addf %279, %278 : vector<2x32xf32>
    %281 = arith.divf %279, %280 : vector<2x32xf32>
    %282 = arith.mulf %273, %147 : vector<2x32xf32>
    %283 = arith.mulf %267, %275 : vector<2x32xf32>
    %284 = arith.addf %282, %283 : vector<2x32xf32>
    %285 = math.tanh %284 : vector<2x32xf32>
    %286 = arith.mulf %281, %285 : vector<2x32xf32>
    %cst_79 = arith.constant dense<0.000000e+00> : vector<2x32xf32>
    %287 = tpu.matmul %286, %8, %cst_79 {dimension_numbers = #tpu.dot_dimension_numbers<[1], [0], [0], [1], [0, 0, 1, 1], [], []>} : vector<2x32xf32>, vector<32x32xf32>, vector<2x32xf32> -> vector<2x32xf32>
    %288 = arith.addf %287, %25 : vector<2x32xf32>
    %289 = vector.shape_cast %288 : vector<2x32xf32> to vector<2x1x32xf32>
    %290 = vector.broadcast %289 : vector<2x1x32xf32> to vector<2x8x32xf32>
    %291 = arith.mulf %36, %290 : vector<2x8x32xf32>
    %cst_80 = arith.constant dense<0.000000e+00> : vector<2x8xf32>
    %292 = vector.multi_reduction <add>, %291, %cst_80 [2] : vector<2x8x32xf32> to vector<2x8xf32>
    %293 = arith.mulf %292, %2 : vector<2x8xf32>
    %294 = arith.subf %293, %40 : vector<2x8xf32>
    %cst_81 = arith.constant dense<0xFF800000> : vector<2xf32>
    %295 = vector.multi_reduction <maximumf>, %294, %cst_81 [1] : vector<2x8xf32> to vector<2xf32>
    %296 = vector.shape_cast %295 : vector<2xf32> to vector<2x1xf32>
    %297 = vector.broadcast %296 : vector<2x1xf32> to vector<2x8xf32>
    %298 = arith.subf %294, %297 : vector<2x8xf32>
    %299 = math.exp %298 : vector<2x8xf32>
    %300 = arith.mulf %299, %2 : vector<2x8xf32>
    %cst_82 = arith.constant dense<0.000000e+00> : vector<2xf32>
    %301 = vector.multi_reduction <add>, %300, %cst_82 [1] : vector<2x8xf32> to vector<2xf32>
    %302 = vector.shape_cast %301 : vector<2xf32> to vector<2x1xf32>
    %303 = vector.broadcast %302 : vector<2x1xf32> to vector<2x8xf32>
    %304 = arith.divf %300, %303 : vector<2x8xf32>
    %305 = vector.shape_cast %304 : vector<2x8xf32> to vector<2x8x1xf32>
    %306 = vector.broadcast %305 : vector<2x8x1xf32> to vector<2x8x16xf32>
    %307 = arith.mulf %306, %1 : vector<2x8x16xf32>
    %cst_83 = arith.constant dense<0.000000e+00> : vector<2x16xf32>
    %308 = vector.multi_reduction <add>, %307, %cst_83 [1] : vector<2x8x16xf32> to vector<2x16xf32>
    %cst_84 = arith.constant dense<0.000000e+00> : vector<2x32xf32>
    %309 = tpu.matmul %286, %9, %cst_84 {dimension_numbers = #tpu.dot_dimension_numbers<[1], [0], [0], [1], [0, 0, 1, 1], [], []>} : vector<2x32xf32>, vector<32x32xf32>, vector<2x32xf32> -> vector<2x32xf32>
    %cst_85 = arith.constant dense<0.000000e+00> : vector<2x32xf32>
    %310 = tpu.matmul %308, %10, %cst_85 {dimension_numbers = #tpu.dot_dimension_numbers<[1], [0], [0], [1], [0, 0, 1, 1], [], []>} : vector<2x16xf32>, vector<16x32xf32>, vector<2x32xf32> -> vector<2x32xf32>
    %311 = arith.addf %309, %310 : vector<2x32xf32>
    %312 = arith.addf %311, %28 : vector<2x32xf32>
    %cst_86 = arith.constant 0.000000e+00 : f32
    %313 = vector.broadcast %cst_86 : f32 to vector<2x32xf32>
    %314 = arith.cmpf oge, %312, %313 : vector<2x32xf32>
    %cst_87 = arith.constant 0.00999999977 : f32
    %315 = vector.broadcast %cst_87 : f32 to vector<2x32xf32>
    %316 = arith.mulf %315, %312 : vector<2x32xf32>
    %317 = arith.select %314, %312, %316 : vector<2x32xi1>, vector<2x32xf32>
    %cst_88 = arith.constant dense<0.000000e+00> : vector<2x32xf32>
    %318 = tpu.matmul %317, %11, %cst_88 {dimension_numbers = #tpu.dot_dimension_numbers<[1], [0], [0], [1], [0, 0, 1, 1], [], []>} : vector<2x32xf32>, vector<32x32xf32>, vector<2x32xf32> -> vector<2x32xf32>
    %319 = arith.addf %318, %31 : vector<2x32xf32>
    %c1_89 = arith.constant 1 : index
    %c0_90 = arith.constant 0 : index
    %c0_91 = arith.constant 0 : index
    %320 = vector.load %arg1[%c1_89, %c0_90, %c0_91] : memref<4x2x32xf32, #tpu.memory_space<vmem>>, vector<1x2x32xf32>
    %321 = vector.shape_cast %320 : vector<1x2x32xf32> to vector<2x32xf32>
    %322 = arith.addf %319, %321 : vector<2x32xf32>
    %cst_92 = arith.constant dense<0xFF800000> : vector<2xf32>
    %323 = vector.multi_reduction <maximumf>, %322, %cst_92 [1] : vector<2x32xf32> to vector<2xf32>
    %324 = vector.shape_cast %323 : vector<2xf32> to vector<2x1xf32>
    %325 = vector.broadcast %324 : vector<2x1xf32> to vector<2x32xf32>
    %326 = arith.cmpf oge, %322, %325 : vector<2x32xf32>
    %c32_i32_93 = arith.constant 32 : i32
    %327 = vector.broadcast %c32_i32_93 : i32 to vector<2x32xi32>
    %328 = arith.select %326, %41, %327 : vector<2x32xi1>, vector<2x32xi32>
    %cst_94 = arith.constant dense<2147483647> : vector<2xi32>
    %329 = vector.multi_reduction <minsi>, %328, %cst_94 [1] : vector<2x32xi32> to vector<2xi32>
    %330 = vector.shape_cast %329 : vector<2xi32> to vector<2x1xi32>
    %c1_95 = arith.constant 1 : index
    %c0_96 = arith.constant 0 : index
    %c0_97 = arith.constant 0 : index
    %331 = vector.load %arg8[%c1_95, %c0_96, %c0_97] : memref<4x2x32xf32, #tpu.memory_space<vmem>>, vector<1x2x32xf32>
    %332 = vector.shape_cast %331 : vector<1x2x32xf32> to vector<2x32xf32>
    %333 = vector.shape_cast %319 : vector<2x32xf32> to vector<1x2x32xf32>
    tpu.vector_store %arg8[%c1_95, %c0_96, %c0_97], %333 {strides = array<i32>} : memref<4x2x32xf32, #tpu.memory_space<vmem>>, vector<1x2x32xf32>,
    %c1_98 = arith.constant 1 : index
    %c0_99 = arith.constant 0 : index
    %c0_100 = arith.constant 0 : index
    %334 = vector.load %arg9[%c1_98, %c0_99, %c0_100] : memref<4x2x8xf32, #tpu.memory_space<vmem>>, vector<1x2x8xf32>
    %335 = vector.shape_cast %334 : vector<1x2x8xf32> to vector<2x8xf32>
    %336 = vector.shape_cast %304 : vector<2x8xf32> to vector<1x2x8xf32>
    tpu.vector_store %arg9[%c1_98, %c0_99, %c0_100], %336 {strides = array<i32>} : memref<4x2x8xf32, #tpu.memory_space<vmem>>, vector<1x2x8xf32>,
    %c2 = arith.constant 2 : index
    %c0_101 = arith.constant 0 : index
    %c0_102 = arith.constant 0 : index
    %337 = vector.load %arg0[%c2, %c0_101, %c0_102] : memref<4x2x32xf32, #tpu.memory_space<vmem>>, vector<1x2x32xf32>
    %338 = vector.shape_cast %337 : vector<1x2x32xf32> to vector<2x32xf32>
    %cst_103 = arith.constant dense<0.000000e+00> : vector<2x32xf32>
    %339 = tpu.matmul %338, %6, %cst_103 {dimension_numbers = #tpu.dot_dimension_numbers<[1], [0], [0], [1], [0, 0, 1, 1], [], []>} : vector<2x32xf32>, vector<32x32xf32>, vector<2x32xf32> -> vector<2x32xf32>
    %340 = tpu.concatenate %339, %308, %230 in 1 : vector<2x32xf32>, vector<2x16xf32>, vector<2x32xf32> -> vector<2x80xf32>
    %cst_104 = arith.constant dense<0.000000e+00> : vector<2x128xf32>
    %341 = tpu.matmul %340, %3, %cst_104 {dimension_numbers = #tpu.dot_dimension_numbers<[1], [0], [0], [1], [0, 0, 1, 1], [], []>} : vector<2x80xf32>, vector<80x128xf32>, vector<2x128xf32> -> vector<2x128xf32>
    %342 = arith.addf %341, %15 : vector<2x128xf32>
    %343 = vector.extract_strided_slice %342 {offsets = [0, 0], sizes = [2, 32], strides = [1, 1]} : vector<2x128xf32> to vector<2x32xf32>
    %344 = arith.negf %343 : vector<2x32xf32>
    %345 = math.exp %344 : vector<2x32xf32>
    %cst_105 = arith.constant 1.000000e+00 : f32
    %346 = vector.broadcast %cst_105 : f32 to vector<2x32xf32>
    %347 = arith.addf %346, %345 : vector<2x32xf32>
    %348 = arith.divf %346, %347 : vector<2x32xf32>
    %349 = vector.extract_strided_slice %342 {offsets = [0, 32], sizes = [2, 32], strides = [1, 1]} : vector<2x128xf32> to vector<2x32xf32>
    %350 = arith.negf %349 : vector<2x32xf32>
    %351 = math.exp %350 : vector<2x32xf32>
    %cst_106 = arith.constant 1.000000e+00 : f32
    %352 = vector.broadcast %cst_106 : f32 to vector<2x32xf32>
    %353 = arith.addf %352, %351 : vector<2x32xf32>
    %354 = arith.divf %352, %353 : vector<2x32xf32>
    %355 = vector.extract_strided_slice %342 {offsets = [0, 64], sizes = [2, 32], strides = [1, 1]} : vector<2x128xf32> to vector<2x32xf32>
    %356 = math.tanh %355 : vector<2x32xf32>
    %357 = vector.extract_strided_slice %342 {offsets = [0, 96], sizes = [2, 32], strides = [1, 1]} : vector<2x128xf32> to vector<2x32xf32>
    %358 = arith.negf %357 : vector<2x32xf32>
    %359 = math.exp %358 : vector<2x32xf32>
    %cst_107 = arith.constant 1.000000e+00 : f32
    %360 = vector.broadcast %cst_107 : f32 to vector<2x32xf32>
    %361 = arith.addf %360, %359 : vector<2x32xf32>
    %362 = arith.divf %360, %361 : vector<2x32xf32>
    %363 = arith.mulf %354, %228 : vector<2x32xf32>
    %364 = arith.mulf %348, %356 : vector<2x32xf32>
    %365 = arith.addf %363, %364 : vector<2x32xf32>
    %366 = math.tanh %365 : vector<2x32xf32>
    %367 = arith.mulf %362, %366 : vector<2x32xf32>
    %368 = tpu.concatenate %367, %258 in 1 : vector<2x32xf32>, vector<2x32xf32> -> vector<2x64xf32>
    %cst_108 = arith.constant dense<0.000000e+00> : vector<2x128xf32>
    %369 = tpu.matmul %368, %4, %cst_108 {dimension_numbers = #tpu.dot_dimension_numbers<[1], [0], [0], [1], [0, 0, 1, 1], [], []>} : vector<2x64xf32>, vector<64x128xf32>, vector<2x128xf32> -> vector<2x128xf32>
    %370 = arith.addf %369, %18 : vector<2x128xf32>
    %371 = vector.extract_strided_slice %370 {offsets = [0, 0], sizes = [2, 32], strides = [1, 1]} : vector<2x128xf32> to vector<2x32xf32>
    %372 = arith.negf %371 : vector<2x32xf32>
    %373 = math.exp %372 : vector<2x32xf32>
    %cst_109 = arith.constant 1.000000e+00 : f32
    %374 = vector.broadcast %cst_109 : f32 to vector<2x32xf32>
    %375 = arith.addf %374, %373 : vector<2x32xf32>
    %376 = arith.divf %374, %375 : vector<2x32xf32>
    %377 = vector.extract_strided_slice %370 {offsets = [0, 32], sizes = [2, 32], strides = [1, 1]} : vector<2x128xf32> to vector<2x32xf32>
    %378 = arith.negf %377 : vector<2x32xf32>
    %379 = math.exp %378 : vector<2x32xf32>
    %cst_110 = arith.constant 1.000000e+00 : f32
    %380 = vector.broadcast %cst_110 : f32 to vector<2x32xf32>
    %381 = arith.addf %380, %379 : vector<2x32xf32>
    %382 = arith.divf %380, %381 : vector<2x32xf32>
    %383 = vector.extract_strided_slice %370 {offsets = [0, 64], sizes = [2, 32], strides = [1, 1]} : vector<2x128xf32> to vector<2x32xf32>
    %384 = math.tanh %383 : vector<2x32xf32>
    %385 = vector.extract_strided_slice %370 {offsets = [0, 96], sizes = [2, 32], strides = [1, 1]} : vector<2x128xf32> to vector<2x32xf32>
    %386 = arith.negf %385 : vector<2x32xf32>
    %387 = math.exp %386 : vector<2x32xf32>
    %cst_111 = arith.constant 1.000000e+00 : f32
    %388 = vector.broadcast %cst_111 : f32 to vector<2x32xf32>
    %389 = arith.addf %388, %387 : vector<2x32xf32>
    %390 = arith.divf %388, %389 : vector<2x32xf32>
    %391 = arith.mulf %382, %256 : vector<2x32xf32>
    %392 = arith.mulf %376, %384 : vector<2x32xf32>
    %393 = arith.addf %391, %392 : vector<2x32xf32>
    %394 = math.tanh %393 : vector<2x32xf32>
    %395 = arith.mulf %390, %394 : vector<2x32xf32>
    %396 = tpu.concatenate %395, %286 in 1 : vector<2x32xf32>, vector<2x32xf32> -> vector<2x64xf32>
    %cst_112 = arith.constant dense<0.000000e+00> : vector<2x128xf32>
    %397 = tpu.matmul %396, %5, %cst_112 {dimension_numbers = #tpu.dot_dimension_numbers<[1], [0], [0], [1], [0, 0, 1, 1], [], []>} : vector<2x64xf32>, vector<64x128xf32>, vector<2x128xf32> -> vector<2x128xf32>
    %398 = arith.addf %397, %21 : vector<2x128xf32>
    %399 = vector.extract_strided_slice %398 {offsets = [0, 0], sizes = [2, 32], strides = [1, 1]} : vector<2x128xf32> to vector<2x32xf32>
    %400 = arith.negf %399 : vector<2x32xf32>
    %401 = math.exp %400 : vector<2x32xf32>
    %cst_113 = arith.constant 1.000000e+00 : f32
    %402 = vector.broadcast %cst_113 : f32 to vector<2x32xf32>
    %403 = arith.addf %402, %401 : vector<2x32xf32>
    %404 = arith.divf %402, %403 : vector<2x32xf32>
    %405 = vector.extract_strided_slice %398 {offsets = [0, 32], sizes = [2, 32], strides = [1, 1]} : vector<2x128xf32> to vector<2x32xf32>
    %406 = arith.negf %405 : vector<2x32xf32>
    %407 = math.exp %406 : vector<2x32xf32>
    %cst_114 = arith.constant 1.000000e+00 : f32
    %408 = vector.broadcast %cst_114 : f32 to vector<2x32xf32>
    %409 = arith.addf %408, %407 : vector<2x32xf32>
    %410 = arith.divf %408, %409 : vector<2x32xf32>
    %411 = vector.extract_strided_slice %398 {offsets = [0, 64], sizes = [2, 32], strides = [1, 1]} : vector<2x128xf32> to vector<2x32xf32>
    %412 = math.tanh %411 : vector<2x32xf32>
    %413 = vector.extract_strided_slice %398 {offsets = [0, 96], sizes = [2, 32], strides = [1, 1]} : vector<2x128xf32> to vector<2x32xf32>
    %414 = arith.negf %413 : vector<2x32xf32>
    %415 = math.exp %414 : vector<2x32xf32>
    %cst_115 = arith.constant 1.000000e+00 : f32
    %416 = vector.broadcast %cst_115 : f32 to vector<2x32xf32>
    %417 = arith.addf %416, %415 : vector<2x32xf32>
    %418 = arith.divf %416, %417 : vector<2x32xf32>
    %419 = arith.mulf %410, %284 : vector<2x32xf32>
    %420 = arith.mulf %404, %412 : vector<2x32xf32>
    %421 = arith.addf %419, %420 : vector<2x32xf32>
    %422 = math.tanh %421 : vector<2x32xf32>
    %423 = arith.mulf %418, %422 : vector<2x32xf32>
    %cst_116 = arith.constant dense<0.000000e+00> : vector<2x32xf32>
    %424 = tpu.matmul %423, %8, %cst_116 {dimension_numbers = #tpu.dot_dimension_numbers<[1], [0], [0], [1], [0, 0, 1, 1], [], []>} : vector<2x32xf32>, vector<32x32xf32>, vector<2x32xf32> -> vector<2x32xf32>
    %425 = arith.addf %424, %25 : vector<2x32xf32>
    %426 = vector.shape_cast %425 : vector<2x32xf32> to vector<2x1x32xf32>
    %427 = vector.broadcast %426 : vector<2x1x32xf32> to vector<2x8x32xf32>
    %428 = arith.mulf %36, %427 : vector<2x8x32xf32>
    %cst_117 = arith.constant dense<0.000000e+00> : vector<2x8xf32>
    %429 = vector.multi_reduction <add>, %428, %cst_117 [2] : vector<2x8x32xf32> to vector<2x8xf32>
    %430 = arith.mulf %429, %2 : vector<2x8xf32>
    %431 = arith.subf %430, %40 : vector<2x8xf32>
    %cst_118 = arith.constant dense<0xFF800000> : vector<2xf32>
    %432 = vector.multi_reduction <maximumf>, %431, %cst_118 [1] : vector<2x8xf32> to vector<2xf32>
    %433 = vector.shape_cast %432 : vector<2xf32> to vector<2x1xf32>
    %434 = vector.broadcast %433 : vector<2x1xf32> to vector<2x8xf32>
    %435 = arith.subf %431, %434 : vector<2x8xf32>
    %436 = math.exp %435 : vector<2x8xf32>
    %437 = arith.mulf %436, %2 : vector<2x8xf32>
    %cst_119 = arith.constant dense<0.000000e+00> : vector<2xf32>
    %438 = vector.multi_reduction <add>, %437, %cst_119 [1] : vector<2x8xf32> to vector<2xf32>
    %439 = vector.shape_cast %438 : vector<2xf32> to vector<2x1xf32>
    %440 = vector.broadcast %439 : vector<2x1xf32> to vector<2x8xf32>
    %441 = arith.divf %437, %440 : vector<2x8xf32>
    %442 = vector.shape_cast %441 : vector<2x8xf32> to vector<2x8x1xf32>
    %443 = vector.broadcast %442 : vector<2x8x1xf32> to vector<2x8x16xf32>
    %444 = arith.mulf %443, %1 : vector<2x8x16xf32>
    %cst_120 = arith.constant dense<0.000000e+00> : vector<2x16xf32>
    %445 = vector.multi_reduction <add>, %444, %cst_120 [1] : vector<2x8x16xf32> to vector<2x16xf32>
    %cst_121 = arith.constant dense<0.000000e+00> : vector<2x32xf32>
    %446 = tpu.matmul %423, %9, %cst_121 {dimension_numbers = #tpu.dot_dimension_numbers<[1], [0], [0], [1], [0, 0, 1, 1], [], []>} : vector<2x32xf32>, vector<32x32xf32>, vector<2x32xf32> -> vector<2x32xf32>
    %cst_122 = arith.constant dense<0.000000e+00> : vector<2x32xf32>
    %447 = tpu.matmul %445, %10, %cst_122 {dimension_numbers = #tpu.dot_dimension_numbers<[1], [0], [0], [1], [0, 0, 1, 1], [], []>} : vector<2x16xf32>, vector<16x32xf32>, vector<2x32xf32> -> vector<2x32xf32>
    %448 = arith.addf %446, %447 : vector<2x32xf32>
    %449 = arith.addf %448, %28 : vector<2x32xf32>
    %cst_123 = arith.constant 0.000000e+00 : f32
    %450 = vector.broadcast %cst_123 : f32 to vector<2x32xf32>
    %451 = arith.cmpf oge, %449, %450 : vector<2x32xf32>
    %cst_124 = arith.constant 0.00999999977 : f32
    %452 = vector.broadcast %cst_124 : f32 to vector<2x32xf32>
    %453 = arith.mulf %452, %449 : vector<2x32xf32>
    %454 = arith.select %451, %449, %453 : vector<2x32xi1>, vector<2x32xf32>
    %cst_125 = arith.constant dense<0.000000e+00> : vector<2x32xf32>
    %455 = tpu.matmul %454, %11, %cst_125 {dimension_numbers = #tpu.dot_dimension_numbers<[1], [0], [0], [1], [0, 0, 1, 1], [], []>} : vector<2x32xf32>, vector<32x32xf32>, vector<2x32xf32> -> vector<2x32xf32>
    %456 = arith.addf %455, %31 : vector<2x32xf32>
    %c2_126 = arith.constant 2 : index
    %c0_127 = arith.constant 0 : index
    %c0_128 = arith.constant 0 : index
    %457 = vector.load %arg1[%c2_126, %c0_127, %c0_128] : memref<4x2x32xf32, #tpu.memory_space<vmem>>, vector<1x2x32xf32>
    %458 = vector.shape_cast %457 : vector<1x2x32xf32> to vector<2x32xf32>
    %459 = arith.addf %456, %458 : vector<2x32xf32>
    %cst_129 = arith.constant dense<0xFF800000> : vector<2xf32>
    %460 = vector.multi_reduction <maximumf>, %459, %cst_129 [1] : vector<2x32xf32> to vector<2xf32>
    %461 = vector.shape_cast %460 : vector<2xf32> to vector<2x1xf32>
    %462 = vector.broadcast %461 : vector<2x1xf32> to vector<2x32xf32>
    %463 = arith.cmpf oge, %459, %462 : vector<2x32xf32>
    %c32_i32_130 = arith.constant 32 : i32
    %464 = vector.broadcast %c32_i32_130 : i32 to vector<2x32xi32>
    %465 = arith.select %463, %41, %464 : vector<2x32xi1>, vector<2x32xi32>
    %cst_131 = arith.constant dense<2147483647> : vector<2xi32>
    %466 = vector.multi_reduction <minsi>, %465, %cst_131 [1] : vector<2x32xi32> to vector<2xi32>
    %467 = vector.shape_cast %466 : vector<2xi32> to vector<2x1xi32>
    %c2_132 = arith.constant 2 : index
    %c0_133 = arith.constant 0 : index
    %c0_134 = arith.constant 0 : index
    %468 = vector.load %arg8[%c2_132, %c0_133, %c0_134] : memref<4x2x32xf32, #tpu.memory_space<vmem>>, vector<1x2x32xf32>
    %469 = vector.shape_cast %468 : vector<1x2x32xf32> to vector<2x32xf32>
    %470 = vector.shape_cast %456 : vector<2x32xf32> to vector<1x2x32xf32>
    tpu.vector_store %arg8[%c2_132, %c0_133, %c0_134], %470 {strides = array<i32>} : memref<4x2x32xf32, #tpu.memory_space<vmem>>, vector<1x2x32xf32>,
    %c2_135 = arith.constant 2 : index
    %c0_136 = arith.constant 0 : index
    %c0_137 = arith.constant 0 : index
    %471 = vector.load %arg9[%c2_135, %c0_136, %c0_137] : memref<4x2x8xf32, #tpu.memory_space<vmem>>, vector<1x2x8xf32>
    %472 = vector.shape_cast %471 : vector<1x2x8xf32> to vector<2x8xf32>
    %473 = vector.shape_cast %441 : vector<2x8xf32> to vector<1x2x8xf32>
    tpu.vector_store %arg9[%c2_135, %c0_136, %c0_137], %473 {strides = array<i32>} : memref<4x2x8xf32, #tpu.memory_space<vmem>>, vector<1x2x8xf32>,
    %c3 = arith.constant 3 : index
    %c0_138 = arith.constant 0 : index
    %c0_139 = arith.constant 0 : index
    %474 = vector.load %arg0[%c3, %c0_138, %c0_139] : memref<4x2x32xf32, #tpu.memory_space<vmem>>, vector<1x2x32xf32>
    %475 = vector.shape_cast %474 : vector<1x2x32xf32> to vector<2x32xf32>
    %cst_140 = arith.constant dense<0.000000e+00> : vector<2x32xf32>
    %476 = tpu.matmul %475, %6, %cst_140 {dimension_numbers = #tpu.dot_dimension_numbers<[1], [0], [0], [1], [0, 0, 1, 1], [], []>} : vector<2x32xf32>, vector<32x32xf32>, vector<2x32xf32> -> vector<2x32xf32>
    %477 = tpu.concatenate %476, %445, %367 in 1 : vector<2x32xf32>, vector<2x16xf32>, vector<2x32xf32> -> vector<2x80xf32>
    %cst_141 = arith.constant dense<0.000000e+00> : vector<2x128xf32>
    %478 = tpu.matmul %477, %3, %cst_141 {dimension_numbers = #tpu.dot_dimension_numbers<[1], [0], [0], [1], [0, 0, 1, 1], [], []>} : vector<2x80xf32>, vector<80x128xf32>, vector<2x128xf32> -> vector<2x128xf32>
    %479 = arith.addf %478, %15 : vector<2x128xf32>
    %480 = vector.extract_strided_slice %479 {offsets = [0, 0], sizes = [2, 32], strides = [1, 1]} : vector<2x128xf32> to vector<2x32xf32>
    %481 = arith.negf %480 : vector<2x32xf32>
    %482 = math.exp %481 : vector<2x32xf32>
    %cst_142 = arith.constant 1.000000e+00 : f32
    %483 = vector.broadcast %cst_142 : f32 to vector<2x32xf32>
    %484 = arith.addf %483, %482 : vector<2x32xf32>
    %485 = arith.divf %483, %484 : vector<2x32xf32>
    %486 = vector.extract_strided_slice %479 {offsets = [0, 32], sizes = [2, 32], strides = [1, 1]} : vector<2x128xf32> to vector<2x32xf32>
    %487 = arith.negf %486 : vector<2x32xf32>
    %488 = math.exp %487 : vector<2x32xf32>
    %cst_143 = arith.constant 1.000000e+00 : f32
    %489 = vector.broadcast %cst_143 : f32 to vector<2x32xf32>
    %490 = arith.addf %489, %488 : vector<2x32xf32>
    %491 = arith.divf %489, %490 : vector<2x32xf32>
    %492 = vector.extract_strided_slice %479 {offsets = [0, 64], sizes = [2, 32], strides = [1, 1]} : vector<2x128xf32> to vector<2x32xf32>
    %493 = math.tanh %492 : vector<2x32xf32>
    %494 = vector.extract_strided_slice %479 {offsets = [0, 96], sizes = [2, 32], strides = [1, 1]} : vector<2x128xf32> to vector<2x32xf32>
    %495 = arith.negf %494 : vector<2x32xf32>
    %496 = math.exp %495 : vector<2x32xf32>
    %cst_144 = arith.constant 1.000000e+00 : f32
    %497 = vector.broadcast %cst_144 : f32 to vector<2x32xf32>
    %498 = arith.addf %497, %496 : vector<2x32xf32>
    %499 = arith.divf %497, %498 : vector<2x32xf32>
    %500 = arith.mulf %491, %365 : vector<2x32xf32>
    %501 = arith.mulf %485, %493 : vector<2x32xf32>
    %502 = arith.addf %500, %501 : vector<2x32xf32>
    %503 = math.tanh %502 : vector<2x32xf32>
    %504 = arith.mulf %499, %503 : vector<2x32xf32>
    %505 = tpu.concatenate %504, %395 in 1 : vector<2x32xf32>, vector<2x32xf32> -> vector<2x64xf32>
    %cst_145 = arith.constant dense<0.000000e+00> : vector<2x128xf32>
    %506 = tpu.matmul %505, %4, %cst_145 {dimension_numbers = #tpu.dot_dimension_numbers<[1], [0], [0], [1], [0, 0, 1, 1], [], []>} : vector<2x64xf32>, vector<64x128xf32>, vector<2x128xf32> -> vector<2x128xf32>
    %507 = arith.addf %506, %18 : vector<2x128xf32>
    %508 = vector.extract_strided_slice %507 {offsets = [0, 0], sizes = [2, 32], strides = [1, 1]} : vector<2x128xf32> to vector<2x32xf32>
    %509 = arith.negf %508 : vector<2x32xf32>
    %510 = math.exp %509 : vector<2x32xf32>
    %cst_146 = arith.constant 1.000000e+00 : f32
    %511 = vector.broadcast %cst_146 : f32 to vector<2x32xf32>
    %512 = arith.addf %511, %510 : vector<2x32xf32>
    %513 = arith.divf %511, %512 : vector<2x32xf32>
    %514 = vector.extract_strided_slice %507 {offsets = [0, 32], sizes = [2, 32], strides = [1, 1]} : vector<2x128xf32> to vector<2x32xf32>
    %515 = arith.negf %514 : vector<2x32xf32>
    %516 = math.exp %515 : vector<2x32xf32>
    %cst_147 = arith.constant 1.000000e+00 : f32
    %517 = vector.broadcast %cst_147 : f32 to vector<2x32xf32>
    %518 = arith.addf %517, %516 : vector<2x32xf32>
    %519 = arith.divf %517, %518 : vector<2x32xf32>
    %520 = vector.extract_strided_slice %507 {offsets = [0, 64], sizes = [2, 32], strides = [1, 1]} : vector<2x128xf32> to vector<2x32xf32>
    %521 = math.tanh %520 : vector<2x32xf32>
    %522 = vector.extract_strided_slice %507 {offsets = [0, 96], sizes = [2, 32], strides = [1, 1]} : vector<2x128xf32> to vector<2x32xf32>
    %523 = arith.negf %522 : vector<2x32xf32>
    %524 = math.exp %523 : vector<2x32xf32>
    %cst_148 = arith.constant 1.000000e+00 : f32
    %525 = vector.broadcast %cst_148 : f32 to vector<2x32xf32>
    %526 = arith.addf %525, %524 : vector<2x32xf32>
    %527 = arith.divf %525, %526 : vector<2x32xf32>
    %528 = arith.mulf %519, %393 : vector<2x32xf32>
    %529 = arith.mulf %513, %521 : vector<2x32xf32>
    %530 = arith.addf %528, %529 : vector<2x32xf32>
    %531 = math.tanh %530 : vector<2x32xf32>
    %532 = arith.mulf %527, %531 : vector<2x32xf32>
    %533 = tpu.concatenate %532, %423 in 1 : vector<2x32xf32>, vector<2x32xf32> -> vector<2x64xf32>
    %cst_149 = arith.constant dense<0.000000e+00> : vector<2x128xf32>
    %534 = tpu.matmul %533, %5, %cst_149 {dimension_numbers = #tpu.dot_dimension_numbers<[1], [0], [0], [1], [0, 0, 1, 1], [], []>} : vector<2x64xf32>, vector<64x128xf32>, vector<2x128xf32> -> vector<2x128xf32>
    %535 = arith.addf %534, %21 : vector<2x128xf32>
    %536 = vector.extract_strided_slice %535 {offsets = [0, 0], sizes = [2, 32], strides = [1, 1]} : vector<2x128xf32> to vector<2x32xf32>
    %537 = arith.negf %536 : vector<2x32xf32>
    %538 = math.exp %537 : vector<2x32xf32>
    %cst_150 = arith.constant 1.000000e+00 : f32
    %539 = vector.broadcast %cst_150 : f32 to vector<2x32xf32>
    %540 = arith.addf %539, %538 : vector<2x32xf32>
    %541 = arith.divf %539, %540 : vector<2x32xf32>
    %542 = vector.extract_strided_slice %535 {offsets = [0, 32], sizes = [2, 32], strides = [1, 1]} : vector<2x128xf32> to vector<2x32xf32>
    %543 = arith.negf %542 : vector<2x32xf32>
    %544 = math.exp %543 : vector<2x32xf32>
    %cst_151 = arith.constant 1.000000e+00 : f32
    %545 = vector.broadcast %cst_151 : f32 to vector<2x32xf32>
    %546 = arith.addf %545, %544 : vector<2x32xf32>
    %547 = arith.divf %545, %546 : vector<2x32xf32>
    %548 = vector.extract_strided_slice %535 {offsets = [0, 64], sizes = [2, 32], strides = [1, 1]} : vector<2x128xf32> to vector<2x32xf32>
    %549 = math.tanh %548 : vector<2x32xf32>
    %550 = vector.extract_strided_slice %535 {offsets = [0, 96], sizes = [2, 32], strides = [1, 1]} : vector<2x128xf32> to vector<2x32xf32>
    %551 = arith.negf %550 : vector<2x32xf32>
    %552 = math.exp %551 : vector<2x32xf32>
    %cst_152 = arith.constant 1.000000e+00 : f32
    %553 = vector.broadcast %cst_152 : f32 to vector<2x32xf32>
    %554 = arith.addf %553, %552 : vector<2x32xf32>
    %555 = arith.divf %553, %554 : vector<2x32xf32>
    %556 = arith.mulf %547, %421 : vector<2x32xf32>
    %557 = arith.mulf %541, %549 : vector<2x32xf32>
    %558 = arith.addf %556, %557 : vector<2x32xf32>
    %559 = math.tanh %558 : vector<2x32xf32>
    %560 = arith.mulf %555, %559 : vector<2x32xf32>
    %cst_153 = arith.constant dense<0.000000e+00> : vector<2x32xf32>
    %561 = tpu.matmul %560, %8, %cst_153 {dimension_numbers = #tpu.dot_dimension_numbers<[1], [0], [0], [1], [0, 0, 1, 1], [], []>} : vector<2x32xf32>, vector<32x32xf32>, vector<2x32xf32> -> vector<2x32xf32>
    %562 = arith.addf %561, %25 : vector<2x32xf32>
    %563 = vector.shape_cast %562 : vector<2x32xf32> to vector<2x1x32xf32>
    %564 = vector.broadcast %563 : vector<2x1x32xf32> to vector<2x8x32xf32>
    %565 = arith.mulf %36, %564 : vector<2x8x32xf32>
    %cst_154 = arith.constant dense<0.000000e+00> : vector<2x8xf32>
    %566 = vector.multi_reduction <add>, %565, %cst_154 [2] : vector<2x8x32xf32> to vector<2x8xf32>
    %567 = arith.mulf %566, %2 : vector<2x8xf32>
    %568 = arith.subf %567, %40 : vector<2x8xf32>
    %cst_155 = arith.constant dense<0xFF800000> : vector<2xf32>
    %569 = vector.multi_reduction <maximumf>, %568, %cst_155 [1] : vector<2x8xf32> to vector<2xf32>
    %570 = vector.shape_cast %569 : vector<2xf32> to vector<2x1xf32>
    %571 = vector.broadcast %570 : vector<2x1xf32> to vector<2x8xf32>
    %572 = arith.subf %568, %571 : vector<2x8xf32>
    %573 = math.exp %572 : vector<2x8xf32>
    %574 = arith.mulf %573, %2 : vector<2x8xf32>
    %cst_156 = arith.constant dense<0.000000e+00> : vector<2xf32>
    %575 = vector.multi_reduction <add>, %574, %cst_156 [1] : vector<2x8xf32> to vector<2xf32>
    %576 = vector.shape_cast %575 : vector<2xf32> to vector<2x1xf32>
    %577 = vector.broadcast %576 : vector<2x1xf32> to vector<2x8xf32>
    %578 = arith.divf %574, %577 : vector<2x8xf32>
    %579 = vector.shape_cast %578 : vector<2x8xf32> to vector<2x8x1xf32>
    %580 = vector.broadcast %579 : vector<2x8x1xf32> to vector<2x8x16xf32>
    %581 = arith.mulf %580, %1 : vector<2x8x16xf32>
    %cst_157 = arith.constant dense<0.000000e+00> : vector<2x16xf32>
    %582 = vector.multi_reduction <add>, %581, %cst_157 [1] : vector<2x8x16xf32> to vector<2x16xf32>
    %cst_158 = arith.constant dense<0.000000e+00> : vector<2x32xf32>
    %583 = tpu.matmul %560, %9, %cst_158 {dimension_numbers = #tpu.dot_dimension_numbers<[1], [0], [0], [1], [0, 0, 1, 1], [], []>} : vector<2x32xf32>, vector<32x32xf32>, vector<2x32xf32> -> vector<2x32xf32>
    %cst_159 = arith.constant dense<0.000000e+00> : vector<2x32xf32>
    %584 = tpu.matmul %582, %10, %cst_159 {dimension_numbers = #tpu.dot_dimension_numbers<[1], [0], [0], [1], [0, 0, 1, 1], [], []>} : vector<2x16xf32>, vector<16x32xf32>, vector<2x32xf32> -> vector<2x32xf32>
    %585 = arith.addf %583, %584 : vector<2x32xf32>
    %586 = arith.addf %585, %28 : vector<2x32xf32>
    %cst_160 = arith.constant 0.000000e+00 : f32
    %587 = vector.broadcast %cst_160 : f32 to vector<2x32xf32>
    %588 = arith.cmpf oge, %586, %587 : vector<2x32xf32>
    %cst_161 = arith.constant 0.00999999977 : f32
    %589 = vector.broadcast %cst_161 : f32 to vector<2x32xf32>
    %590 = arith.mulf %589, %586 : vector<2x32xf32>
    %591 = arith.select %588, %586, %590 : vector<2x32xi1>, vector<2x32xf32>
    %cst_162 = arith.constant dense<0.000000e+00> : vector<2x32xf32>
    %592 = tpu.matmul %591, %11, %cst_162 {dimension_numbers = #tpu.dot_dimension_numbers<[1], [0], [0], [1], [0, 0, 1, 1], [], []>} : vector<2x32xf32>, vector<32x32xf32>, vector<2x32xf32> -> vector<2x32xf32>
    %593 = arith.addf %592, %31 : vector<2x32xf32>
    %c3_163 = arith.constant 3 : index
    %c0_164 = arith.constant 0 : index
    %c0_165 = arith.constant 0 : index
    %594 = vector.load %arg1[%c3_163, %c0_164, %c0_165] : memref<4x2x32xf32, #tpu.memory_space<vmem>>, vector<1x2x32xf32>
    %595 = vector.shape_cast %594 : vector<1x2x32xf32> to vector<2x32xf32>
    %596 = arith.addf %593, %595 : vector<2x32xf32>
    %cst_166 = arith.constant dense<0xFF800000> : vector<2xf32>
    %597 = vector.multi_reduction <maximumf>, %596, %cst_166 [1] : vector<2x32xf32> to vector<2xf32>
    %598 = vector.shape_cast %597 : vector<2xf32> to vector<2x1xf32>
    %599 = vector.broadcast %598 : vector<2x1xf32> to vector<2x32xf32>
    %600 = arith.cmpf oge, %596, %599 : vector<2x32xf32>
    %c32_i32_167 = arith.constant 32 : i32
    %601 = vector.broadcast %c32_i32_167 : i32 to vector<2x32xi32>
    %602 = arith.select %600, %41, %601 : vector<2x32xi1>, vector<2x32xi32>
    %cst_168 = arith.constant dense<2147483647> : vector<2xi32>
    %603 = vector.multi_reduction <minsi>, %602, %cst_168 [1] : vector<2x32xi32> to vector<2xi32>
    %604 = vector.shape_cast %603 : vector<2xi32> to vector<2x1xi32>
    %c3_169 = arith.constant 3 : index
    %c0_170 = arith.constant 0 : index
    %c0_171 = arith.constant 0 : index
    %605 = vector.load %arg8[%c3_169, %c0_170, %c0_171] : memref<4x2x32xf32, #tpu.memory_space<vmem>>, vector<1x2x32xf32>
    %606 = vector.shape_cast %605 : vector<1x2x32xf32> to vector<2x32xf32>
    %607 = vector.shape_cast %593 : vector<2x32xf32> to vector<1x2x32xf32>
    tpu.vector_store %arg8[%c3_169, %c0_170, %c0_171], %607 {strides = array<i32>} : memref<4x2x32xf32, #tpu.memory_space<vmem>>, vector<1x2x32xf32>,
    %c3_172 = arith.constant 3 : index
    %c0_173 = arith.constant 0 : index
    %c0_174 = arith.constant 0 : index
    %608 = vector.load %arg9[%c3_172, %c0_173, %c0_174] : memref<4x2x8xf32, #tpu.memory_space<vmem>>, vector<1x2x8xf32>
    %609 = vector.shape_cast %608 : vector<1x2x8xf32> to vector<2x8xf32>
    %610 = vector.shape_cast %578 : vector<2x8xf32> to vector<1x2x8xf32>
    tpu.vector_store %arg9[%c3_172, %c0_173, %c0_174], %610 {strides = array<i32>} : memref<4x2x8xf32, #tpu.memory_space<vmem>>, vector<1x2x8xf32>,
    %611 = tpu.concatenate %193, %330, %467, %604 in 1 : vector<2x1xi32>, vector<2x1xi32>, vector<2x1xi32>, vector<2x1xi32> -> vector<2x4xi32>
    %c0_175 = arith.constant 0 : index
    %c0_176 = arith.constant 0 : index
    %612 = vector.load %arg10[%c0_175, %c0_176] : memref<2x4xi32, #tpu.memory_space<vmem>>, vector<2x4xi32>
    tpu.vector_store %arg10[%c0_175, %c0_176], %611 {strides = array<i32>} : memref<2x4xi32, #tpu.memory_space<vmem>>, vector<2x4xi32>,
    return
  }
}

</mosaic_0001>

<bundles_post_ra>
// kernel: tpu_custom_call.1
= control target key start
LH: loop header
LB: loop body
LE: loop exit
PB: predicated region body
PF: predicated region fallthrough
CT: control target
= control target key end

     0   :  { %16 = vsyncpa [#allocation3], 0  ;;  %s6276_s0 = inlined_call_operand.vmem [shape: f32[4,2,32], index: 0, kind: input, shape index: {}]   ;;  %s6277_s1 = inlined_call_operand.hbm [shape: f32[4,2,32], index: 1, kind: input, shape index: {}]   ;;  %s6278_s2 = inlined_call_operand.vmem [shape: f32[2,8,24], index: 2, kind: input, shape index: {}]   ;;  %s6279_s3 = inlined_call_operand.vmem [shape: f32[2,8,16], index: 3, kind: input, shape index: {}]   ;;  %s6280_s4 = inlined_call_operand.vmem [shape: f32[2,8], index: 4, kind: input, shape index: {}]   ;;  %s6281_s5 = inlined_call_operand.vmem [shape: f32[208,128], index: 5, kind: input, shape index: {}]   ;;  %s6282_s6 = inlined_call_operand.vmem [shape: f32[168,32], index: 6, kind: input, shape index: {}]   ;;  %s6283_s7 = inlined_call_operand.vmem [shape: f32[8,128], index: 7, kind: input, shape index: {}]   ;;  %s6284_s8 = inlined_call_operand.hbm [shape: f32[4,2,32], index: 8, kind: output, shape index: {0}]   ;;  %s6285_s9 = inlined_call_operand.hbm [shape: f32[4,2,8], index: 9, kind: output, shape index: {1}]   ;;  %s6286_s10 = inlined_call_operand.hbm [shape: s32[2,4], index: 10, kind: output, shape index: {2}]  }
   0x1   :  { %17 = vsyncpa [#allocation4], 0 }
   0x2   :  { %18 = vsyncpa [#allocation7], 0  ;;  %s5168_s13 = smov [#allocation2]   ;;  %s5074_s17 = scalar_lea.hbm %s6277_s1, 128 }
   0x3   :  { %s26_s14 = sshll.u32 %s5168_s13, 4  ;;  %p5075_p0 = scmp.ne.s32.totalorder %s6277_s1, %s5074_s17  ;;  %s27_s14 = int_to_ptr.vmem [resolvable:$true] %s26_s14 }
   0x4   :  { %p5078_p1 = scmp.lt.u32.totalorder %s5074_s17, %s6277_s1 }
   0x6   :  { %p5080_p2 = pnand %p5078_p1, %p5075_p0 }
   0x8   :  { %5083 = shalt.err (!%p5080_p2)
}
   0x9   :  { %s5084_s22 = scalar_lea.vmem %s27_s14, 128  ;;  %p5089_p4 = scmp.lt.s32.totalorder %s27_s14, %s27_s14 }
   0xa   :  { %p5085_p3 = scmp.ne.s32.totalorder %s27_s14, %s5084_s22  ;;  %p5090_p5 = scmp.lt.s32.totalorder %s5084_s22, %s5084_s22 }
   0xc   :  { %p5091_p6 = por %p5090_p5, %p5089_p4 }
   0xe   :  { %p5092_p7 = pnand %p5091_p6, %p5085_p3 }
  0x10   :  { %5095 = shalt.err (!%p5092_p7)
}
  0x11   :  { %s5169_s23 = smov 32   ;;  %s5170_s24 = smov 2  }
  0x12   :  { %32 = dma.hbm_to_vmem [thread:$0]  %s6277_s1, 128, %s27_s14, [#allocation3], %s5169_s23, %s5169_s23, %s5170_s24  }
  0x13   :  { %5162 = dma.done.wait [#allocation3], 128  }
  0x14   :  { %5163 = vsyncadd [#allocation3], 4294967168  ;;  %v101_v0 = vlaneseq  ;;  %v5171_v1 = vmov 1966171168   ;;  %vm117_vm0 = vcmask 195584   ;;  %v83_v6 = vld [vmem:[%s6282_s6 + $0x20] sm:$0xff] }
  0x15   :  { %v205_v2 = vunpack.c.l.s4 %v5171_v1  ;;  %v84_v7 = vld [vmem:[%s6282_s6 + $0x28] sm:$0xff]  ;;  %v48_v10 = vld [vmem:[%s6278_s2] sm:$0xff]  ;;  %v85_v12 = vld [vmem:[%s6282_s6 + $0x30] sm:$0xff]  ;;  %s5172_s17 = smov 96   ;;  %vm242_vm1 = vcmask 261120   ;;  %v5173_v40 = vmov 0  }
  0x16   :  { %v5253_v3 = vshrl.u32 %v101_v0, 7  ;;  %v4652_v9 = vpack.c.bf16 %v84_v7, %v83_v6  ;;  %v5271_v11 = vld [vmem:[%s6283_s7] sm:$0xff]  ;;  %4201 = vmatprep.mubr.msk.f32.mxu0 %vm117_vm0, %v48_v10  ;;  %v49_v16 = vld [vmem:[%s6278_s2 + $0x8] sm:$0xff]  ;;  %4934 = vset.pattern.permute.xlu0 %v5173_v40  ;;  %v5328_v51 = vand.u32 127, %v101_v0  ;;  %vm303_vm2 = vcmask 1041409   ;;  %s5177_s12 = smov 64  }
  0x17   :  { %v206_v4 = vunpack.c.0.s8 %v205_v2  ;;  %v52_v22 = vld [vmem:[%s6280_s4] sm:$0x3]  ;;  %4935 = vset.pattern.permute.xlu1 %v5173_v40  ;;  %vm306_vm3 = vcmask 58368   ;;  %vm5175_vm4 = vmmov 0   ;;  %v56_v40 = vld [vmem:[%s6281_s5 + $0x18] sm:$0xff]  ;;  %vm377_vm5 = vcmask 130048  }
  0x18   :  { %v115_v5 = vsub.s32 3, %v5253_v3  ;;  %4653 = vmatprep.subr.bf16.mxu0 %v4652_v9  ;;  %v5281_v14 = vsub.s32 0, %v5253_v3  ;;  %v199_v24 = vsub.f32 1.0, %v52_v22  ;;  %v5301_v27 = vsub.s32 1, %v5253_v3  ;;  %6300 = vst [vmem:[#allocation14_spill] sm:$0xff] %v5328_v51  ;;  %s5178_s21 = smov 80  }
  0x19   :  { %v5263_v8 = vsub.s32 %v206_v4, %v5253_v3  ;;  %4655 = vmatpush3.bf16.msra.mxu0 %v4652_v9  ;;  %v5332_v52 = vsub.s32 %v5328_v51, %v5253_v3  ;;  %vm473_vm6 = vcmask 392192   ;;  %vm475_vm7 = vcmask 654336   ;;  %s5180_s18 = smov [#allocation5]  }
  0x1a   :  { %v5278_v13 = vrot.slane %v5271_v11, %v115_v5  ;;  %4199 = vmatprep.subr.mxu0 %v85_v12  ;;  %v253_v23 = vrot.slane %v52_v22, %v5281_v14  ;;  %v200_v25 = vmul.f32 10000.0, %v199_v24  ;;  %6299 = vst [vmem:[#allocation13_spill] sm:$0xff] %v5301_v27  ;;  %v260_v39 = vrot.slane %v52_v22, %v5301_v27  ;;  %v82_v22 = vld [vmem:[%s6282_s6 + $0x18] sm:$0xff]  ;;  %s3892_s19 = sshll.u32 %s5180_s18, 4  ;;  %s6225_s19 = int_to_ptr.vmem [resolvable:$true] %s3892_s19 }
  0x1b   :  { %vm578_vm8 = vcmask 523264   ;;  %vm1233_vm12 = vcmask 254976  }
  0x1c   :  { %6298 = vst [vmem:[#allocation12_spill] sm:$0xff] %v5278_v13  ;;  %v210_v15 = vrot.slane %v5278_v13, %v5263_v8  ;;  %v272_v26 = vrot.slane %v200_v25, %v5281_v14  ;;  %v279_v28 = vrot.slane %v200_v25, %v5301_v27  ;;  %v392_v25 = vld [vmem:[%s6276_s0] sm:$0x3] }
  0x1d   :  { %4200 = vmatpush3.msra.mxu0 %v85_v12 }
  0x1e   :  { %v218_v17 = vrot.slane %v210_v15, %v5263_v8  ;;  %v211_v18 = vcombine.high %v210_v15, %v210_v15  ;;  %4202 = vmatmul.mubr.msk.f32.vlgmr.msra.gmra.mrb[0].mxu0 %vm117_vm0, %v49_v16 }
  0x20   :  { %v229_v19 = vrot.slane %v218_v17, %v5281_v14  ;;  %v225_v20 = vrot.slane %v211_v18, %v5263_v8  ;;  %v79_v17 = vld [vmem:[%s6282_s6] sm:$0xff]  ;;  %v80_v18 = vld [vmem:[%s6282_s6 + $0x8] sm:$0xff] }
  0x22   :  { %234 = vrot.lane.b32.xlu0 %v229_v19, %s5172_s17  ;;  %v233_v21 = vrot.slane %v225_v20, %v5281_v14  ;;  %v81_v19 = vld [vmem:[%s6282_s6 + $0x10] sm:$0xff]  ;;  %v6287_v20 = vmov 0.0|0.0  }
  0x23   :  { %4656 = vmatprep.subr.bf16.mxu1 %v6287_v20  ;;  %4662 = vmatprep.subr.bf16.mxu0 %v6287_v20  ;;  %v5367_v24 = vpack.c.bf16 %v82_v22, %v81_v19 }
  0x26   :  { %236 = vrot.lane.b32.xlu0 %v233_v21, %s5172_s17  ;;  %v5356_v21 = vpack.c.bf16 %v80_v18, %v79_v17 }
  0x28   :  { %4658 = vmatpush3.bf16.msra.mxu1 %v5356_v21 }
  0x29   :  { %4659 = vmatprep.subr.bf16.mxu1 %v6287_v20 }
  0x2a   :  { %255 = vbcast.lane.b32.xlu0 %v253_v23, 256  ;;  %v6289_v23 = vmov 0.0  }
  0x2b   :  { %4212 = vmatprep.mubr.msk.f32.mxu1 %vm5175_vm4, %v6289_v23  ;;  %4235 = vmatprep.mubr.msk.f32.mxu0 %vm5175_vm4, %v6289_v23 }
  0x2c   :  { %4661 = vmatpush3.bf16.msra.mxu1 %v5367_v24 }
  0x2d   :  { %4677 = vmatprep.subr.bf16.mxu1 %v6287_v20 }
  0x2e   :  { %274 = vbcast.lane.b32.xlu0 %v272_v26, 256 }
  0x2f   :  { %4213 = vmatmul.mubr.msk.f32.vlgmr.msra.gmra.mrb[0].mxu1 %vm242_vm1, %v392_v25 }
  0x30   :  { %4254 = vmatprep.mubr.msk.f32.mxu1 %vm5175_vm4, %v6289_v23 }
  0x32   :  { %281 = vbcast.lane.b32.xlu0 %v279_v28, 256 }
  0x94   :  { %v235_v29 = vpop.permute.xlu0 %234 }
  0x98   :  { %v237_v31 = vpop.permute.xlu0 %236 }
  0x9c   :  { %v5315_v41 = vpop.permute.xlu0 %255 }
  0xa0   :  { %v5317_v43 = vpop.permute.xlu0 %274 }
  0xa4   :  { %v5323_v48 = vpop.permute.xlu0 %281 }
  0xf1   :  { %v4203_v30 = vpop.f32.mrb[0].mxu0 }
  0xf2   :  { %v5305_v32 = vadd.f32 %v4203_v30, %v5278_v13  ;;  %v190_v33 = vpop.f32.mrb[1].mxu0 }
  0xf3   :  { %v5308_v34 = vadd.f32 %v190_v33, %v5278_v13 }
  0xf4   :  { %v241_v35 = vmul.f32 %v237_v31, %v5305_v32 }
  0xf5   :  { %v240_v37 = vmul.f32 %v235_v29, %v5308_v34 }
  0xf6   :  { %v246_v36 = vsel %vm242_vm1, %v241_v35, 0.0 }
  0xf7   :  { %247 = vadd.xlane.f32.xlu1 %v246_v36  ;;  %v243_v38 = vsel %vm242_vm1, %v240_v37, 0.0  ;;  %v53_v36 = vld [vmem:[%s6281_s5] sm:$0xff]  ;;  %v54_v37 = vld [vmem:[%s6281_s5 + $0x8] sm:$0xff] }
  0xfb   :  { %244 = vadd.xlane.f32.xlu1 %v243_v38  ;;  %v55_v38 = vld [vmem:[%s6281_s5 + $0x10] sm:$0xff] }
 0x10c   :  { %262 = vbcast.lane.b32.xlu1 %v260_v39, 256  ;;  %v5389_v39 = vpack.c.bf16 %v54_v37, %v53_v36 }
 0x10e   :  { %4664 = vmatpush3.bf16.msra.mxu0 %v5389_v39 }
 0x10f   :  { %4665 = vmatprep.subr.bf16.mxu0 %v6287_v20 }
 0x184   :  { %v248_v42 = vpop.xlane.xlu1 %247 }
 0x188   :  { %v245_v44 = vpop.xlane.xlu1 %244 }
 0x189   :  { %v266_v45 = vmul.f32 %v5315_v41, %v245_v44  ;;  %v57_v44 = vld [vmem:[%s6281_s5 + $0x20] sm:$0xff] }
 0x18b   :  { %v285_v46 = vsub.f32 %v266_v45, %v5317_v43  ;;  %v58_v45 = vld [vmem:[%s6281_s5 + $0x28] sm:$0xff] }
 0x18c   :  { %v5321_v47 = vpop.permute.xlu1 %262 }
 0x18d   :  { %290 = vperm.xlu0 %4934, %v285_v46   ;;  %v267_v49 = vmul.f32 %v5321_v47, %v248_v42  ;;  %v5395_v42 = vpack.c.bf16 %v56_v40, %v55_v38 }
 0x18f   :  { %v286_v50 = vsub.f32 %v267_v49, %v5323_v48  ;;  %4667 = vmatpush3.bf16.msra.mxu0 %v5395_v42  ;;  %v59_v49 = vld [vmem:[%s6281_s5 + $0x30] sm:$0xff] }
 0x190   :  { %4668 = vmatprep.subr.bf16.mxu0 %v6287_v20 }
 0x191   :  { %293 = vperm.xlu1 %4935, %v286_v50  }
 0x20c   :  { %v291_v53 = vpop.permute.xlu0 %290 }
 0x20d   :  { %v298_v55 = vrot.slane %v291_v53, %v5332_v52 }
 0x210   :  { %v294_v54 = vpop.permute.xlu1 %293 }
 0x211   :  { %v302_v56 = vrot.slane %v294_v54, %v5332_v52  ;;  %v61_v54 = vld [vmem:[%s6281_s5 + $0x40] sm:$0xff] }
 0x213   :  { %v304_v57 = vsel %vm303_vm2, %v302_v56, %v298_v55  ;;  %v62_v55 = vld [vmem:[%s6281_s5 + $0x48] sm:$0xff] }
 0x214   :  { %v307_v58 = vsel %vm306_vm3, %v304_v57, -inf  ;;  %v5425_v56 = vpack.c.bf16 %v62_v55, %v61_v54  ;;  %v462_v57 = vpop.f32.mrb[0].mxu1  ;;  %v63_v55 = vld [vmem:[%s6281_s5 + $0x50] sm:$0xff] }
 0x215   :  { %308 = vmax.xlane.f32.xlu0 %v307_v58  ;;  %v4214_v58 = vpop.f32.mrb[1].mxu1 }
 0x216   :  { %v65_v58 = vld [vmem:[%s6281_s5 + $0x60] sm:$0xff] }
 0x2a2   :  { %v309_v59 = vpop.xlane.xlu0 %308 }
 0x2a3   :  { %v314_v60 = vrot.slane %v309_v59, %v5281_v14  ;;  %v318_v61 = vrot.slane %v309_v59, %v5301_v27  ;;  %v5433_v59 = vld [vmem:[%s6279_s3] sm:$0xff] }
 0x2a5   :  { %v321_v62 = vsub.f32 %v285_v46, %v314_v60  ;;  %v322_v63 = vsub.f32 %v286_v50, %v318_v61  ;;  %v5405_v46 = vpack.c.bf16 %v58_v45, %v57_v44  ;;  %v60_v50 = vld [vmem:[%s6281_s5 + $0x38] sm:$0xff]  ;;  %v5438_v60 = vld [vmem:[%s6279_s3 + $0x8] sm:$0xff] }
 0x2a6   :  { %v5415_v53 = vpack.c.bf16 %v60_v50, %v59_v49 }
 0x2a7   :  { %v323_v0 = vmul.f32 1.442695, %v321_v62  ;;  %v325_v1 = vmul.f32 1.442695, %v322_v63  ;;  %4670 = vmatpush3.bf16.msra.mxu0 %v5405_v46 }
 0x2a8   :  { %4671 = vmatprep.subr.bf16.mxu0 %v6287_v20 }
 0x2a9   :  { %4936 = vpow2.f32 %v323_v0 }
 0x2aa   :  { %4938 = vpow2.f32 %v325_v1 }
 0x2ab   :  { %4673 = vmatpush3.bf16.msra.mxu0 %v5415_v53 }
 0x2ac   :  { %4674 = vmatprep.subr.bf16.mxu0 %v6287_v20 }
 0x2af   :  { %4676 = vmatpush3.bf16.msra.mxu0 %v5425_v56 }
 0x2b0   :  { %4701 = vmatprep.subr.bf16.mxu0 %v6287_v20 }
 0x2b3   :  { %v4937_v2 = vpop.eup %4936 }
 0x2b4   :  { %v327_v4 = vmul.f32 %v4937_v2, %v5315_v41  ;;  %v4939_v5 = vpop.eup %4938 }
 0x2b5   :  { %v328_v6 = vmul.f32 %v4939_v5, %v5321_v47 }
 0x2b6   :  { %332 = vperm.xlu1 %4935, %v327_v4  }
 0x2ba   :  { %335 = vperm.xlu1 %4935, %v328_v6  }
 0x335   :  { %v333_v7 = vpop.permute.xlu1 %332 }
 0x336   :  { %v340_v10 = vrot.slane %v333_v7, %v5332_v52 }
 0x339   :  { %v336_v9 = vpop.permute.xlu1 %335 }
 0x33a   :  { %v344_v12 = vrot.slane %v336_v9, %v5332_v52 }
 0x33c   :  { %v345_v15 = vsel %vm303_vm2, %v344_v12, %v340_v10 }
 0x33d   :  { %v347_v16 = vsel %vm306_vm3, %v345_v15, 0.0 }
 0x33e   :  { %348 = vadd.xlane.f32.xlu1 %v347_v16 }
 0x3cb   :  { %v349_v26 = vpop.xlane.xlu1 %348 }
 0x3cc   :  { %v354_v28 = vrot.slane %v349_v26, %v5281_v14  ;;  %v358_v29 = vrot.slane %v349_v26, %v5301_v27 }
 0x3ce   :  { %4940 = vrcp.f32 %v354_v28 }
 0x3cf   :  { %4942 = vrcp.f32 %v358_v29  ;;  %v5453_v29 = vrot.slane %v5271_v11, %v5281_v14 }
 0x3d8   :  { %v4941_v30 = vpop.eup %4940 }
 0x3d9   :  { %v4943_v31 = vpop.eup %4942  ;;  %v362_v33 = vmul.f32 %v4941_v30, %v327_v4 }
 0x3da   :  { %v364_v35 = vmul.f32 %v4943_v31, %v328_v6 }
 0x3db   :  { %367 = vperm.xlu0 %4934, %v362_v33  }
 0x3dc   :  { %372 = vperm.xlu1 %4935, %v364_v35  }
 0x45a   :  { %v368_v61 = vpop.permute.xlu0 %367 }
 0x45b   :  { %v373_v62 = vpop.permute.xlu1 %372  ;;  %v375_v63 = vmul.f32 %v368_v61, %v5433_v59 }
 0x45c   :  { %v376_v0 = vmul.f32 %v373_v62, %v5438_v60  ;;  %v66_v62 = vld [vmem:[%s6281_s5 + $0x68] sm:$0xff] }
 0x45d   :  { %v378_v1 = vsel %vm377_vm5, %v375_v63, 0.0  ;;  %v5476_v63 = vpack.c.bf16 %v66_v62, %v65_v58  ;;  %v77_v62 = vld [vmem:[%s6281_s5 + $0xc0] sm:$0xff] }
 0x45e   :  { %v385_v2 = vsel %vm377_vm5, %v376_v0, 0.0  ;;  %v379_v4 = vrot.slane %v378_v1, 4  ;;  %v67_v0 = vld [vmem:[%s6281_s5 + $0x70] sm:$0xff] }
 0x45f   :  { %v386_v5 = vrot.slane %v385_v2, 4 }
 0x460   :  { %v380_v6 = vadd.f32 %v379_v4, %v378_v1  ;;  %v68_v1 = vld [vmem:[%s6281_s5 + $0x78] sm:$0xff]  ;;  %v69_v4 = vld [vmem:[%s6281_s5 + $0x80] sm:$0xff] }
 0x461   :  { %v387_v7 = vadd.f32 %v386_v5, %v385_v2  ;;  %v5486_v2 = vpack.c.bf16 %v68_v1, %v67_v0  ;;  %v70_v5 = vld [vmem:[%s6281_s5 + $0x88] sm:$0xff] }
 0x462   :  { %v381_v9 = vrot.slane %v380_v6, 2  ;;  %v78_v0 = vld [vmem:[%s6281_s5 + $0xc8] sm:$0xff] }
 0x463   :  { %v388_v10 = vrot.slane %v387_v7, 2 }
 0x464   :  { %v382_v12 = vadd.f32 %v381_v9, %v380_v6 }
 0x465   :  { %v389_v15 = vadd.f32 %v388_v10, %v387_v7  ;;  %v5497_v7 = vpack.c.bf16 %v70_v5, %v69_v4  ;;  %v5556_v4 = vpack.c.bf16 %v78_v0, %v77_v62 }
 0x466   :  { %v383_v16 = vrot.slane %v382_v12, 1 }
 0x467   :  { %v390_v17 = vrot.slane %v389_v15, 1 }
 0x468   :  { %v384_v18 = vadd.f32 %v383_v16, %v382_v12  ;;  %v5512_v16 = vrot.slane %v5271_v11, %v5301_v27 }
 0x469   :  { %v391_v19 = vadd.f32 %v390_v17, %v389_v15 }
 0x46b   :  { %v468_v22 = vsel %vm303_vm2, %v391_v19, %v384_v18 }
 0x46c   :  { %469 = vrot.lane.b32.xlu0 %v468_v22, %s5169_s23 }
 0x4de   :  { %v470_v25 = vpop.permute.xlu0 %469 }
 0x4df   :  { %v472_v26 = vsel %vm242_vm1, %v462_v57, %v470_v25  ;;  %v64_v57 = vld [vmem:[%s6281_s5 + $0x58] sm:$0xff] }
 0x4e0   :  { %v474_v28 = vsel %vm473_vm6, %v472_v26, 0.0  ;;  %v5470_v61 = vpack.c.bf16 %v64_v57, %v63_v55  ;;  %v75_v55 = vld [vmem:[%s6281_s5 + $0xb0] sm:$0xff]  ;;  %v76_v57 = vld [vmem:[%s6281_s5 + $0xb8] sm:$0xff] }
 0x4e1   :  { %4236 = vmatmul.mubr.msk.f32.vlgmr.msra.gmra.mrb[2].mxu0 %vm475_vm7, %v474_v28  ;;  %v5545_v58 = vpack.c.bf16 %v76_v57, %v75_v55  ;;  %v89_v55 = vld [vmem:[%s6282_s6 + $0x50] sm:$0xff] }
 0x4e2   :  { %4284 = vmatprep.mubr.msk.f32.mxu0 %vm5175_vm4, %v6289_v23  ;;  %4679 = vmatpush3.bf16.msra.mxu1 %v5470_v61 }
 0x4e3   :  { %4680 = vmatprep.subr.bf16.mxu1 %v6287_v20 }
 0x4e6   :  { %4682 = vmatpush3.bf16.msra.mxu1 %v5476_v63 }
 0x4e7   :  { %4683 = vmatprep.subr.bf16.mxu1 %v6287_v20 }
 0x4ea   :  { %4685 = vmatpush3.bf16.msra.mxu1 %v5486_v2 }
 0x4eb   :  { %4686 = vmatprep.subr.bf16.mxu1 %v6287_v20 }
 0x4ee   :  { %4688 = vmatpush3.bf16.msra.mxu1 %v5497_v7 }
 0x4ef   :  { %4689 = vmatprep.subr.bf16.mxu1 %v6287_v20 }
 0x5b4   :  { %v545_v30 = vpop.f32.mrb[2].mxu0 }
 0x5b5   :  { %v546_v31 = vadd.f32 %v545_v30, %v5453_v29  ;;  %v4237_v33 = vpop.f32.mrb[3].mxu0 }
 0x5b7   :  { %4944 = vtanh.f32 %v546_v31  ;;  %v3937_v36 = vmul.f32 -1.442695, %v546_v31 }
 0x5b9   :  { %4946 = vpow2.f32 %v3937_v36 }
 0x5c1   :  { %v4945_v35 = vpop.eup %4944 }
 0x5c2   :  { %558 = vrot.lane.b32.xlu0 %v4945_v35, %s5177_s12 }
 0x5c3   :  { %v4947_v37 = vpop.eup %4946 }
 0x5c4   :  { %v552_v38 = vadd.f32 1.0, %v4947_v37 }
 0x5c6   :  { %4948 = vrcp.f32 %v552_v38  ;;  %v71_v38 = vld [vmem:[%s6281_s5 + $0x90] sm:$0xff] }
 0x5d0   :  { %v4949_v40 = vpop.eup %4948 }
 0x5d1   :  { %v556_v49 = vmul.f32 0.0, %v4949_v40 }
 0x634   :  { %v559_v44 = vpop.permute.xlu0 %558 }
 0x635   :  { %v561_v45 = vmul.f32 %v4949_v40, %v559_v44  ;;  %v73_v44 = vld [vmem:[%s6281_s5 + $0xa0] sm:$0xff] }
 0x637   :  { %563 = vrot.lane.b32.xlu0 %v561_v45, %s5169_s23 }
 0x6a9   :  { %v564_v50 = vpop.permute.xlu0 %563 }
 0x6aa   :  { %v5458_v54 = vadd.f32 %v564_v50, %v556_v49  ;;  %v74_v49 = vld [vmem:[%s6281_s5 + $0xa8] sm:$0xff] }
 0x6ab   :  { %v5535_v50 = vpack.c.bf16 %v74_v49, %v73_v44  ;;  %v88_v44 = vld [vmem:[%s6282_s6 + $0x48] sm:$0xff] }
 0x6ac   :  { %4950 = vtanh.f32 %v5458_v54  ;;  %v5594_v57 = vpack.c.bf16 %v89_v55, %v88_v44 }
 0x6b6   :  { %v4951_v6 = vpop.eup %4950 }
 0x6b7   :  { %569 = vrot.lane.b32.xlu1 %v4951_v6, %s5177_s12 }
 0x729   :  { %v570_v9 = vpop.permute.xlu1 %569 }
 0x72a   :  { %v5502_v10 = vmul.f32 %v4949_v40, %v570_v9  ;;  %v72_v40 = vld [vmem:[%s6281_s5 + $0x98] sm:$0xff] }
 0x72b   :  { %v5529_v45 = vpack.c.bf16 %v72_v40, %v71_v38  ;;  %v86_v38 = vld [vmem:[%s6282_s6 + $0x38] sm:$0xff]  ;;  %v87_v40 = vld [vmem:[%s6282_s6 + $0x40] sm:$0xff] }
 0x72c   :  { %574 = vrot.lane.b32.xlu0 %v5502_v10, %s5169_s23  ;;  %v5588_v49 = vpack.c.bf16 %v87_v40, %v86_v38 }
 0x72e   :  { %4703 = vmatpush3.bf16.msra.mxu0 %v5588_v49 }
 0x72f   :  { %4704 = vmatprep.subr.bf16.mxu0 %v6287_v20 }
 0x732   :  { %4706 = vmatpush3.bf16.msra.mxu0 %v5594_v57 }
 0x733   :  { %4707 = vmatprep.subr.bf16.mxu0 %v6287_v20 }
 0x79e   :  { %v575_v12 = vpop.permute.xlu0 %574 }
 0x79f   :  { %v577_v15 = vsel %vm242_vm1, %v575_v12, 0.0 }
 0x7a0   :  { %4255 = vmatmul.mubr.msk.f32.vlgmr.msra.gmra.mrb[2].mxu1 %vm578_vm8, %v577_v15  ;;  %v111_v15 = vsub.s32 2, %v5253_v3 }
 0x7a1   :  { %4273 = vmatprep.mubr.msk.f32.mxu1 %vm5175_vm4, %v6289_v23  ;;  %4691 = vmatpush3.bf16.msra.mxu1 %v5529_v45 }
 0x7a2   :  { %4692 = vmatprep.subr.bf16.mxu1 %v6287_v20 }
 0x7a5   :  { %4694 = vmatpush3.bf16.msra.mxu1 %v5535_v50 }
 0x7a6   :  { %4695 = vmatprep.subr.bf16.mxu1 %v6287_v20 }
 0x7a9   :  { %4697 = vmatpush3.bf16.msra.mxu1 %v5545_v58 }
 0x7aa   :  { %4698 = vmatprep.subr.bf16.mxu1 %v6287_v20 }
 0x7ad   :  { %4700 = vmatpush3.bf16.msra.mxu1 %v5556_v4 }
 0x7ae   :  { %4716 = vmatprep.subr.bf16.mxu1 %v6287_v20 }
 0x873   :  { %v648_v17 = vpop.f32.mrb[2].mxu1 }
 0x874   :  { %v649_v18 = vadd.f32 %v648_v17, %v5512_v16  ;;  %v4256_v19 = vpop.f32.mrb[3].mxu1  ;;  %v5571_v17 = vrot.slane %v5271_v11, %v111_v15 }
 0x876   :  { %4952 = vtanh.f32 %v649_v18  ;;  %v3939_v25 = vmul.f32 -1.442695, %v649_v18 }
 0x878   :  { %4954 = vpow2.f32 %v3939_v25 }
 0x880   :  { %v4953_v22 = vpop.eup %4952 }
 0x881   :  { %661 = vrot.lane.b32.xlu1 %v4953_v22, %s5177_s12 }
 0x882   :  { %v4955_v26 = vpop.eup %4954 }
 0x883   :  { %v655_v28 = vadd.f32 1.0, %v4955_v26 }
 0x885   :  { %4956 = vrcp.f32 %v655_v28 }
 0x88f   :  { %v4957_v30 = vpop.eup %4956 }
 0x890   :  { %v659_v35 = vmul.f32 0.0, %v4957_v30 }
 0x8f3   :  { %v662_v31 = vpop.permute.xlu1 %661 }
 0x8f4   :  { %v664_v33 = vmul.f32 %v4957_v30, %v662_v31 }
 0x8f6   :  { %666 = vrot.lane.b32.xlu0 %v664_v33, %s5169_s23 }
 0x968   :  { %v667_v36 = vpop.permute.xlu0 %666 }
 0x969   :  { %v5517_v37 = vadd.f32 %v667_v36, %v659_v35 }
 0x96b   :  { %4958 = vtanh.f32 %v5517_v37 }
 0x975   :  { %v4959_v1 = vpop.eup %4958 }
 0x976   :  { %672 = vrot.lane.b32.xlu1 %v4959_v1, %s5177_s12 }
 0x9e8   :  { %v673_v5 = vpop.permute.xlu1 %672 }
 0x9e9   :  { %v5561_v6 = vmul.f32 %v4957_v30, %v673_v5 }
 0x9eb   :  { %677 = vrot.lane.b32.xlu0 %v5561_v6, %s5169_s23 }
 0xa5d   :  { %v678_v9 = vpop.permute.xlu0 %677 }
 0xa5e   :  { %v680_v12 = vsel %vm242_vm1, %v678_v9, 0.0 }
 0xa5f   :  { %4274 = vmatmul.mubr.msk.f32.vlgmr.msra.gmra.mrb[4].mxu1 %vm578_vm8, %v680_v12 }
 0xa60   :  { %4313 = vmatprep.mubr.msk.f32.mxu1 %vm5175_vm4, %v6289_v23 }
 0xb32   :  { %v750_v18 = vpop.f32.mrb[4].mxu1 }
 0xb33   :  { %v751_v19 = vadd.f32 %v750_v18, %v5571_v17  ;;  %v4275_v22 = vpop.f32.mrb[5].mxu1 }
 0xb35   :  { %4960 = vtanh.f32 %v751_v19  ;;  %v3941_v26 = vmul.f32 -1.442695, %v751_v19 }
 0xb37   :  { %4962 = vpow2.f32 %v3941_v26 }
 0xb3f   :  { %v4961_v25 = vpop.eup %4960 }
 0xb40   :  { %763 = vrot.lane.b32.xlu1 %v4961_v25, %s5177_s12 }
 0xb41   :  { %v4963_v28 = vpop.eup %4962 }
 0xb42   :  { %v757_v30 = vadd.f32 1.0, %v4963_v28 }
 0xb44   :  { %4964 = vrcp.f32 %v757_v30 }
 0xb4e   :  { %v4965_v31 = vpop.eup %4964 }
 0xb4f   :  { %v761_v3 = vmul.f32 0.0, %v4965_v31 }
 0xbb2   :  { %v764_v33 = vpop.permute.xlu1 %763 }
 0xbb3   :  { %v766_v35 = vmul.f32 %v4965_v31, %v764_v33 }
 0xbb5   :  { %768 = vrot.lane.b32.xlu0 %v766_v35, %s5169_s23 }
 0xc27   :  { %v769_v11 = vpop.permute.xlu0 %768 }
 0xc28   :  { %v5576_v36 = vadd.f32 %v769_v11, %v761_v3 }
 0xc2a   :  { %4966 = vtanh.f32 %v5576_v36 }
 0xc34   :  { %v4967_v62 = vpop.eup %4966 }
 0xc35   :  { %774 = vrot.lane.b32.xlu1 %v4967_v62, %s5177_s12 }
 0xc39   :  { %781 = vrot.lane.b32.xlu1 %v5278_v13, %s5172_s17 }
 0xca7   :  { %v775_v0 = vpop.permute.xlu1 %774 }
 0xca8   :  { %v5602_v1 = vmul.f32 %v4965_v31, %v775_v0 }
 0xcaa   :  { %779 = vrot.lane.b32.xlu0 %v5602_v1, %s5169_s23 }
 0xcab   :  { %v5612_v9 = vpop.permute.xlu1 %781 }
 0xd1c   :  { %v5606_v5 = vpop.permute.xlu0 %779 }
 0xd1d   :  { %4285 = vmatmul.mubr.msk.f32.vlgmr.msra.gmra.mrb[4].mxu0 %vm242_vm1, %v5606_v5 }
 0xd1e   :  { %4291 = vmatprep.mubr.msk.f32.mxu0 %vm5175_vm4, %v6289_v23 }
 0xdf0   :  { %v852_v12 = vpop.f32.mrb[4].mxu0 }
 0xdf1   :  { %v853_v15 = vadd.f32 %v852_v12, %v5612_v9  ;;  %v4286_v18 = vpop.f32.mrb[5].mxu0 }
 0xdf3   :  { %v863_v19 = vrot.slane %v853_v15, %v5263_v8 }
 0xdf5   :  { %v864_v22 = vcombine.high %v863_v19, %v863_v19  ;;  %v871_v25 = vrot.slane %v863_v19, %v5263_v8 }
 0xdf7   :  { %v882_v26 = vrot.slane %v871_v25, %v5281_v14  ;;  %v878_v28 = vrot.slane %v864_v22, %v5263_v8 }
 0xdf9   :  { %v889_v30 = vmul.f32 %v882_v26, %v5308_v34  ;;  %v886_v31 = vrot.slane %v878_v28, %v5281_v14 }
 0xdfb   :  { %v891_v33 = vsel %vm242_vm1, %v889_v30, 0.0  ;;  %v890_v35 = vmul.f32 %v886_v31, %v5305_v32 }
 0xdfc   :  { %892 = vadd.xlane.f32.xlu0 %v891_v33 }
 0xdfd   :  { %v894_v3 = vsel %vm242_vm1, %v890_v35, 0.0 }
 0xdfe   :  { %895 = vadd.xlane.f32.xlu1 %v894_v3 }
 0xe89   :  { %v893_v11 = vpop.xlane.xlu0 %892 }
 0xe8a   :  { %v897_v38 = vmul.f32 %v893_v11, %v5315_v41 }
 0xe8b   :  { %v896_v40 = vpop.xlane.xlu1 %895 }
 0xe8c   :  { %v899_v44 = vsub.f32 %v897_v38, %v5317_v43  ;;  %v898_v55 = vmul.f32 %v896_v40, %v5321_v47 }
 0xe8e   :  { %v900_v62 = vsub.f32 %v898_v55, %v5323_v48  ;;  %904 = vperm.xlu0 %4934, %v899_v44  }
 0xe90   :  { %907 = vperm.xlu1 %4935, %v900_v62  }
 0xf0d   :  { %v905_v0 = vpop.permute.xlu0 %904 }
 0xf0e   :  { %v912_v15 = vrot.slane %v905_v0, %v5332_v52 }
 0xf0f   :  { %v908_v12 = vpop.permute.xlu1 %907 }
 0xf10   :  { %v916_v18 = vrot.slane %v908_v12, %v5332_v52 }
 0xf12   :  { %v917_v19 = vsel %vm303_vm2, %v916_v18, %v912_v15 }
 0xf13   :  { %v919_v22 = vsel %vm306_vm3, %v917_v19, -inf }
 0xf14   :  { %920 = vmax.xlane.f32.xlu0 %v919_v22 }
 0xfa1   :  { %v921_v25 = vpop.xlane.xlu0 %920 }
 0xfa2   :  { %v926_v26 = vrot.slane %v921_v25, %v5281_v14  ;;  %v930_v28 = vrot.slane %v921_v25, %v5301_v27 }
 0xfa4   :  { %v933_v30 = vsub.f32 %v899_v44, %v926_v26  ;;  %v934_v31 = vsub.f32 %v900_v62, %v930_v28 }
 0xfa6   :  { %v935_v33 = vmul.f32 1.442695, %v933_v30  ;;  %v937_v35 = vmul.f32 1.442695, %v934_v31  ;;  %v94_v31 = vld [vmem:[%s6282_s6 + $0x78] sm:$0xff] }
 0xfa8   :  { %4968 = vpow2.f32 %v935_v33  ;;  %v95_v33 = vld [vmem:[%s6282_s6 + $0x80] sm:$0xff] }
 0xfa9   :  { %4970 = vpow2.f32 %v937_v35  ;;  %v5650_v35 = vpack.c.bf16 %v95_v33, %v94_v31  ;;  %v90_v33 = vld [vmem:[%s6282_s6 + $0x58] sm:$0xff] }
 0xfab   :  { %4709 = vmatpush3.bf16.msra.mxu0 %v5650_v35 }
 0xfac   :  { %4710 = vmatprep.subr.bf16.mxu0 %v6287_v20 }
 0xfb2   :  { %v4969_v3 = vpop.eup %4968 }
 0xfb3   :  { %v939_v11 = vmul.f32 %v4969_v3, %v5315_v41  ;;  %v4971_v38 = vpop.eup %4970 }
 0xfb4   :  { %v940_v40 = vmul.f32 %v4971_v38, %v5321_v47 }
 0xfb5   :  { %944 = vperm.xlu1 %4935, %v939_v11  }
 0xfb9   :  { %947 = vperm.xlu1 %4935, %v940_v40  }
0x1034   :  { %v945_v55 = vpop.permute.xlu1 %944 }
0x1035   :  { %v952_v12 = vrot.slane %v945_v55, %v5332_v52 }
0x1038   :  { %v948_v0 = vpop.permute.xlu1 %947 }
0x1039   :  { %v956_v15 = vrot.slane %v948_v0, %v5332_v52 }
0x103b   :  { %v957_v44 = vsel %vm303_vm2, %v956_v15, %v952_v12 }
0x103c   :  { %v959_v62 = vsel %vm306_vm3, %v957_v44, 0.0 }
0x103d   :  { %960 = vadd.xlane.f32.xlu1 %v959_v62 }
0x10ca   :  { %v961_v18 = vpop.xlane.xlu1 %960 }
0x10cb   :  { %v966_v19 = vrot.slane %v961_v18, %v5281_v14  ;;  %v970_v22 = vrot.slane %v961_v18, %v5301_v27 }
0x10cd   :  { %4972 = vrcp.f32 %v966_v19 }
0x10ce   :  { %4974 = vrcp.f32 %v970_v22 }
0x10d7   :  { %v4973_v25 = vpop.eup %4972 }
0x10d8   :  { %v4975_v26 = vpop.eup %4974  ;;  %v974_v28 = vmul.f32 %v4973_v25, %v939_v11 }
0x10d9   :  { %v976_v30 = vmul.f32 %v4975_v26, %v940_v40 }
0x10da   :  { %979 = vperm.xlu0 %4934, %v974_v28  }
0x10db   :  { %984 = vperm.xlu1 %4935, %v976_v30  }
0x10de   :  { %1148 = vrot.lane.b32.xlu0 %v5278_v13, %s5177_s12 }
0x1159   :  { %v980_v3 = vpop.permute.xlu0 %979 }
0x115a   :  { %v985_v11 = vpop.permute.xlu1 %984  ;;  %v987_v38 = vmul.f32 %v980_v3, %v5433_v59  ;;  %v1258_v40 = vrot.slane %v980_v3, %v5332_v52  ;;  %v91_v3 = vld [vmem:[%s6282_s6 + $0x60] sm:$0xff] }
0x115b   :  { %v988_v55 = vmul.f32 %v985_v11, %v5438_v60  ;;  %v1262_v0 = vrot.slane %v985_v11, %v5332_v52 }
0x115c   :  { %v989_v12 = vsel %vm377_vm5, %v987_v38, 0.0 }
0x115d   :  { %v996_v15 = vsel %vm377_vm5, %v988_v55, 0.0  ;;  %v990_v44 = vrot.slane %v989_v12, 4  ;;  %v1263_v62 = vsel %vm303_vm2, %v1262_v0, %v1258_v40  ;;  %v5668_v55 = vpack.c.bf16 %v91_v3, %v90_v33  ;;  %v92_v0 = vld [vmem:[%s6282_s6 + $0x68] sm:$0xff]  ;;  %v5731_v3 = vpop.permute.xlu0 %1148 }
0x115e   :  { %v997_v18 = vrot.slane %v996_v15, 4  ;;  %1265 = vst.msk [vmem:[#allocation6] sm:$0x3] %vm306_vm3, %v1263_v62  ;;  %v97_v62 = vld [vmem:[%s6282_s6 + $0x90] sm:$0xff] }
0x115f   :  { %v991_v19 = vadd.f32 %v990_v44, %v989_v12  ;;  %v93_v12 = vld [vmem:[%s6282_s6 + $0x70] sm:$0xff] }
0x1160   :  { %v998_v22 = vadd.f32 %v997_v18, %v996_v15  ;;  %v5680_v44 = vpack.c.bf16 %v93_v12, %v92_v0 }
0x1161   :  { %v992_v25 = vrot.slane %v991_v19, 2 }
0x1162   :  { %v999_v26 = vrot.slane %v998_v22, 2 }
0x1163   :  { %v993_v28 = vadd.f32 %v992_v25, %v991_v19  ;;  %v98_v19 = vld [vmem:[%s6282_s6 + $0x98] sm:$0xff] }
0x1164   :  { %v1000_v30 = vadd.f32 %v999_v26, %v998_v22  ;;  %v99_v22 = vld [vmem:[%s6282_s6 + $0xa0] sm:$0xff] }
0x1165   :  { %v994_v31 = vrot.slane %v993_v28, 1  ;;  %v5727_v25 = vpack.c.bf16 %v99_v22, %v98_v19 }
0x1166   :  { %v1001_v11 = vrot.slane %v1000_v30, 1 }
0x1167   :  { %v995_v38 = vadd.f32 %v994_v31, %v993_v28 }
0x1168   :  { %v1002_v40 = vadd.f32 %v1001_v11, %v1000_v30 }
0x116a   :  { %v1005_v15 = vsel %vm303_vm2, %v1002_v40, %v995_v38 }
0x116b   :  { %1341 = vrot.lane.b32.xlu0 %v1005_v15, %s5169_s23  ;;  %4292 = vmatmul.mubr.msk.f32.vlgmr.msra.gmra.mrb[6].mxu0 %vm377_vm5, %v1005_v15 }
0x116c   :  { %4712 = vmatpush3.bf16.msra.mxu0 %v5668_v55  ;;  %4302 = vmatprep.mubr.msk.f32.mxu0 %vm5175_vm4, %v6289_v23 }
0x116d   :  { %4713 = vmatprep.subr.bf16.mxu0 %v6287_v20 }
0x116f   :  { %1344 = vrot.lane.b32.xlu0 %v5502_v10, %s5178_s21  ;;  %v3946_v10 = vld [vmem:[%s6276_s0 + $0x2] sm:$0x3] }
0x1170   :  { %4715 = vmatpush3.bf16.msra.mxu0 %v5680_v44 }
0x1171   :  { %4722 = vmatprep.subr.bf16.mxu0 %v6287_v20 }
0x1173   :  { %4303 = vmatmul.mubr.msk.f32.vlgmr.msra.gmra.mrb[8].mxu0 %vm242_vm1, %v5606_v5  ;;  %v96_v5 = vld [vmem:[%s6282_s6 + $0x88] sm:$0xff] }
0x1174   :  { %4724 = vmatpush3.bf16.msra.mxu0 %v5356_v21  ;;  %4324 = vmatprep.mubr.msk.f32.mxu0 %vm5175_vm4, %v6289_v23  ;;  %v5717_v18 = vpack.c.bf16 %v97_v62, %v96_v5 }
0x1175   :  { %4725 = vmatprep.subr.bf16.mxu0 %v6287_v20 }
0x1176   :  { %4718 = vmatpush3.bf16.msra.mxu1 %v5717_v18 }
0x1177   :  { %4719 = vmatprep.subr.bf16.mxu1 %v6287_v20 }
0x1178   :  { %4727 = vmatpush3.bf16.msra.mxu0 %v5367_v24 }
0x1179   :  { %4743 = vmatprep.subr.bf16.mxu0 %v6287_v20 }
0x117a   :  { %4721 = vmatpush3.bf16.msra.mxu1 %v5727_v25 }
0x117b   :  { %4325 = vmatmul.mubr.msk.f32.vlgmr.msra.gmra.mrb[10].mxu0 %vm242_vm1, %v3946_v10  ;;  %4728 = vmatprep.subr.bf16.mxu1 %v6287_v20 }
0x117c   :  { %4745 = vmatpush3.bf16.msra.mxu0 %v5470_v61  ;;  %4366 = vmatprep.mubr.msk.f32.mxu0 %vm5175_vm4, %v6289_v23 }
0x117d   :  { %4746 = vmatprep.subr.bf16.mxu0 %v6287_v20 }
0x1180   :  { %4748 = vmatpush3.bf16.msra.mxu0 %v5476_v63 }
0x1181   :  { %4749 = vmatprep.subr.bf16.mxu0 %v6287_v20 }
0x1184   :  { %4751 = vmatpush3.bf16.msra.mxu0 %v5486_v2 }
0x1185   :  { %4752 = vmatprep.subr.bf16.mxu0 %v6287_v20 }
0x1188   :  { %4754 = vmatpush3.bf16.msra.mxu0 %v5497_v7 }
0x1189   :  { %4767 = vmatprep.subr.bf16.mxu0 %v6287_v20 }
0x11dd   :  { %v1342_v15 = vpop.permute.xlu0 %1341 }
0x11e1   :  { %v1345_v5 = vpop.permute.xlu0 %1344 }
0x123e   :  { %v1074_v26 = vpop.f32.mrb[6].mxu0 }
0x123f   :  { %v4293_v28 = vpop.f32.mrb[7].mxu0 }
0x1246   :  { %v1144_v30 = vpop.f32.mrb[8].mxu0 }
0x1247   :  { %v1145_v31 = vadd.f32 %v1144_v30, %v1074_v26  ;;  %v4304_v33 = vpop.f32.mrb[9].mxu0 }
0x1249   :  { %v1151_v11 = vadd.f32 %v5731_v3, %v1145_v31 }
0x124b   :  { %vm1152_vm9 = vcmp.ge.f32.partialorder %v1151_v11, 0.0  ;;  %v1153_v38 = vmul.f32 0.01, %v1151_v11 }
0x124d   :  { %v1154_v40 = vsel %vm1152_vm9, %v1151_v11, %v1153_v38 }
0x124e   :  { %4314 = vmatmul.mubr.msk.f32.vlgmr.msra.gmra.mrb[6].mxu1 %vm242_vm1, %v1154_v40  ;;  %v1337_v0 = vpop.f32.mrb[10].mxu0 }
0x124f   :  { %4730 = vmatpush3.bf16.msra.mxu1 %v5389_v39  ;;  %v4326_v12 = vpop.f32.mrb[11].mxu0  ;;  %4347 = vmatprep.mubr.msk.f32.mxu1 %vm5175_vm4, %v6289_v23  ;;  %v1347_v10 = vsel %vm242_vm1, %v1337_v0, %v1342_v15 }
0x1250   :  { %4731 = vmatprep.subr.bf16.mxu1 %v6287_v20  ;;  %v1348_v62 = vsel %vm473_vm6, %v1347_v10, %v1345_v5 }
0x1253   :  { %4733 = vmatpush3.bf16.msra.mxu1 %v5395_v42 }
0x1254   :  { %4734 = vmatprep.subr.bf16.mxu1 %v6287_v20 }
0x1257   :  { %4736 = vmatpush3.bf16.msra.mxu1 %v5405_v46 }
0x1258   :  { %4737 = vmatprep.subr.bf16.mxu1 %v6287_v20 }
0x125b   :  { %4739 = vmatpush3.bf16.msra.mxu1 %v5415_v53 }
0x125c   :  { %4740 = vmatprep.subr.bf16.mxu1 %v6287_v20 }
0x125f   :  { %4742 = vmatpush3.bf16.msra.mxu1 %v5425_v56 }
0x1260   :  { %4755 = vmatprep.subr.bf16.mxu1 %v6287_v20 }
0x1262   :  { %4348 = vmatmul.mubr.msk.f32.vlgmr.msra.gmra.mrb[8].mxu1 %vm475_vm7, %v1348_v62 }
0x1263   :  { %4757 = vmatpush3.bf16.msra.mxu1 %v5529_v45  ;;  %4385 = vmatprep.mubr.msk.f32.mxu1 %vm5175_vm4, %v6289_v23 }
0x1264   :  { %4758 = vmatprep.subr.bf16.mxu1 %v6287_v20 }
0x1267   :  { %4760 = vmatpush3.bf16.msra.mxu1 %v5535_v50 }
0x1268   :  { %4761 = vmatprep.subr.bf16.mxu1 %v6287_v20 }
0x126b   :  { %4763 = vmatpush3.bf16.msra.mxu1 %v5545_v58 }
0x126c   :  { %4764 = vmatprep.subr.bf16.mxu1 %v6287_v20 }
0x126f   :  { %4766 = vmatpush3.bf16.msra.mxu1 %v5556_v4 }
0x1270   :  { %4782 = vmatprep.subr.bf16.mxu1 %v6287_v20 }
0x1321   :  { %v5760_v19 = vpop.f32.mrb[6].mxu1 }
0x1322   :  { %6301 = vst [vmem:[#allocation15_spill] sm:$0xff] %v5760_v19  ;;  %v4315_v22 = vpop.f32.mrb[7].mxu1 }
0x1335   :  { %v1418_v26 = vpop.f32.mrb[8].mxu1 }
0x1336   :  { %v1419_v28 = vadd.f32 %v1418_v26, %v5453_v29  ;;  %v4349_v30 = vpop.f32.mrb[9].mxu1 }
0x1338   :  { %4976 = vtanh.f32 %v1419_v28  ;;  %v3949_v33 = vmul.f32 -1.442695, %v1419_v28 }
0x133a   :  { %4978 = vpow2.f32 %v3949_v33 }
0x1342   :  { %v4977_v31 = vpop.eup %4976 }
0x1343   :  { %1431 = vrot.lane.b32.xlu1 %v4977_v31, %s5177_s12 }
0x1344   :  { %v4979_v11 = vpop.eup %4978 }
0x1345   :  { %v1425_v38 = vadd.f32 1.0, %v4979_v11 }
0x1347   :  { %4980 = vrcp.f32 %v1425_v38 }
0x1351   :  { %v4981_v40 = vpop.eup %4980 }
0x1352   :  { %v1429_v15 = vmul.f32 %v4981_v40, %v5458_v54 }
0x13b5   :  { %v1432_v0 = vpop.permute.xlu1 %1431 }
0x13b6   :  { %v1434_v12 = vmul.f32 %v4981_v40, %v1432_v0 }
0x13b8   :  { %1436 = vrot.lane.b32.xlu0 %v1434_v12, %s5169_s23 }
0x142a   :  { %v1437_v10 = vpop.permute.xlu0 %1436 }
0x142b   :  { %v5766_v5 = vadd.f32 %v1437_v10, %v1429_v15 }
0x142d   :  { %4982 = vtanh.f32 %v5766_v5 }
0x1437   :  { %v4983_v62 = vpop.eup %4982 }
0x1438   :  { %1442 = vrot.lane.b32.xlu1 %v4983_v62, %s5177_s12 }
0x143c   :  { %1450 = vrot.lane.b32.xlu1 %v5561_v6, %s5177_s12 }
0x14aa   :  { %v1443_v22 = vpop.permute.xlu1 %1442 }
0x14ab   :  { %v5772_v26 = vmul.f32 %v4981_v40, %v1443_v22 }
0x14ad   :  { %1447 = vrot.lane.b32.xlu0 %v5772_v26, %s5169_s23 }
0x14ae   :  { %v1451_v28 = vpop.permute.xlu1 %1450 }
0x151f   :  { %v1448_v30 = vpop.permute.xlu0 %1447 }
0x1520   :  { %v1453_v54 = vsel %vm242_vm1, %v1448_v30, %v1451_v28 }
0x1521   :  { %4367 = vmatmul.mubr.msk.f32.vlgmr.msra.gmra.mrb[12].mxu0 %vm578_vm8, %v1453_v54 }
0x1522   :  { %4769 = vmatpush3.bf16.msra.mxu0 %v5588_v49  ;;  %4396 = vmatprep.mubr.msk.f32.mxu0 %vm5175_vm4, %v6289_v23 }
0x1523   :  { %4770 = vmatprep.subr.bf16.mxu0 %v6287_v20 }
0x1526   :  { %4772 = vmatpush3.bf16.msra.mxu0 %v5594_v57 }
0x1527   :  { %4773 = vmatprep.subr.bf16.mxu0 %v6287_v20 }
0x15f4   :  { %v1523_v6 = vpop.f32.mrb[12].mxu0 }
0x15f5   :  { %v1524_v31 = vadd.f32 %v1523_v6, %v5512_v16  ;;  %v4368_v33 = vpop.f32.mrb[13].mxu0 }
0x15f7   :  { %4984 = vtanh.f32 %v1524_v31  ;;  %v3951_v38 = vmul.f32 -1.442695, %v1524_v31 }
0x15f9   :  { %4986 = vpow2.f32 %v3951_v38 }
0x1601   :  { %v4985_v11 = vpop.eup %4984 }
0x1602   :  { %1536 = vrot.lane.b32.xlu0 %v4985_v11, %s5177_s12 }
0x1603   :  { %v4987_v40 = vpop.eup %4986 }
0x1604   :  { %v1530_v0 = vadd.f32 1.0, %v4987_v40 }
0x1606   :  { %4988 = vrcp.f32 %v1530_v0 }
0x1610   :  { %v4989_v12 = vpop.eup %4988 }
0x1611   :  { %v1534_v62 = vmul.f32 %v4989_v12, %v5517_v37 }
0x1674   :  { %v1537_v15 = vpop.permute.xlu0 %1536 }
0x1675   :  { %v1539_v10 = vmul.f32 %v4989_v12, %v1537_v15 }
0x1677   :  { %1541 = vrot.lane.b32.xlu1 %v1539_v10, %s5169_s23 }
0x16e9   :  { %v1542_v22 = vpop.permute.xlu1 %1541 }
0x16ea   :  { %v5788_v28 = vadd.f32 %v1542_v22, %v1534_v62 }
0x16ec   :  { %4990 = vtanh.f32 %v5788_v28 }
0x16f6   :  { %v4991_v30 = vpop.eup %4990 }
0x16f7   :  { %1547 = vrot.lane.b32.xlu0 %v4991_v30, %s5177_s12 }
0x16fb   :  { %1555 = vrot.lane.b32.xlu0 %v5602_v1, %s5177_s12 }
0x1769   :  { %v1548_v54 = vpop.permute.xlu0 %1547 }
0x176a   :  { %v5794_v6 = vmul.f32 %v4989_v12, %v1548_v54 }
0x176c   :  { %1552 = vrot.lane.b32.xlu1 %v5794_v6, %s5169_s23 }
0x176d   :  { %v1556_v31 = vpop.permute.xlu0 %1555 }
0x17de   :  { %v1553_v33 = vpop.permute.xlu1 %1552 }
0x17df   :  { %v1558_v37 = vsel %vm242_vm1, %v1553_v33, %v1556_v31 }
0x17e0   :  { %4386 = vmatmul.mubr.msk.f32.vlgmr.msra.gmra.mrb[10].mxu1 %vm578_vm8, %v1558_v37 }
0x17e1   :  { %4784 = vmatpush3.bf16.msra.mxu1 %v5717_v18  ;;  %4425 = vmatprep.mubr.msk.f32.mxu1 %vm5175_vm4, %v6289_v23 }
0x17e2   :  { %4785 = vmatprep.subr.bf16.mxu1 %v6287_v20 }
0x17e5   :  { %4787 = vmatpush3.bf16.msra.mxu1 %v5727_v25 }
0x17e6   :  { %4794 = vmatprep.subr.bf16.mxu1 %v6287_v20 }
0x18b3   :  { %v1628_v1 = vpop.f32.mrb[10].mxu1 }
0x18b4   :  { %v1629_v11 = vadd.f32 %v1628_v1, %v5571_v17  ;;  %v4387_v38 = vpop.f32.mrb[11].mxu1 }
0x18b6   :  { %4992 = vtanh.f32 %v1629_v11  ;;  %v3953_v0 = vmul.f32 -1.442695, %v1629_v11 }
0x18b8   :  { %4994 = vpow2.f32 %v3953_v0 }
0x18c0   :  { %v4993_v40 = vpop.eup %4992 }
0x18c1   :  { %1641 = vrot.lane.b32.xlu1 %v4993_v40, %s5177_s12 }
0x18c2   :  { %v4995_v12 = vpop.eup %4994 }
0x18c3   :  { %v1635_v15 = vadd.f32 1.0, %v4995_v12 }
0x18c5   :  { %4996 = vrcp.f32 %v1635_v15 }
0x18cf   :  { %v4997_v10 = vpop.eup %4996 }
0x18d0   :  { %v1639_v30 = vmul.f32 %v4997_v10, %v5576_v36 }
0x1933   :  { %v1642_v62 = vpop.permute.xlu1 %1641 }
0x1934   :  { %v1644_v22 = vmul.f32 %v4997_v10, %v1642_v62 }
0x1936   :  { %1646 = vrot.lane.b32.xlu0 %v1644_v22, %s5169_s23 }
0x19a8   :  { %v1647_v54 = vpop.permute.xlu0 %1646 }
0x19a9   :  { %v5810_v31 = vadd.f32 %v1647_v54, %v1639_v30 }
0x19ab   :  { %4998 = vtanh.f32 %v5810_v31 }
0x19b5   :  { %v4999_v33 = vpop.eup %4998 }
0x19b6   :  { %1652 = vrot.lane.b32.xlu1 %v4999_v33, %s5177_s12 }
0x1a28   :  { %v1653_v37 = vpop.permute.xlu1 %1652 }
0x1a29   :  { %v5814_v1 = vmul.f32 %v4997_v10, %v1653_v37 }
0x1a2b   :  { %1657 = vrot.lane.b32.xlu0 %v5814_v1, %s5169_s23 }
0x1a9d   :  { %v5818_v11 = vpop.permute.xlu0 %1657 }
0x1a9e   :  { %4397 = vmatmul.mubr.msk.f32.vlgmr.msra.gmra.mrb[14].mxu0 %vm242_vm1, %v5818_v11 }
0x1a9f   :  { %4775 = vmatpush3.bf16.msra.mxu0 %v5650_v35  ;;  %4403 = vmatprep.mubr.msk.f32.mxu0 %vm5175_vm4, %v6289_v23 }
0x1aa0   :  { %4776 = vmatprep.subr.bf16.mxu0 %v6287_v20 }
0x1b71   :  { %v1727_v36 = vpop.f32.mrb[14].mxu0 }
0x1b72   :  { %v1728_v38 = vadd.f32 %v1727_v36, %v5612_v9  ;;  %v4398_v40 = vpop.f32.mrb[15].mxu0 }
0x1b74   :  { %v1738_v0 = vrot.slane %v1728_v38, %v5263_v8 }
0x1b76   :  { %v1739_v12 = vcombine.high %v1738_v0, %v1738_v0  ;;  %v1746_v15 = vrot.slane %v1738_v0, %v5263_v8 }
0x1b78   :  { %v1757_v10 = vrot.slane %v1746_v15, %v5281_v14  ;;  %v1753_v62 = vrot.slane %v1739_v12, %v5263_v8 }
0x1b7a   :  { %v1764_v22 = vmul.f32 %v1757_v10, %v5308_v34  ;;  %v1761_v30 = vrot.slane %v1753_v62, %v5281_v14 }
0x1b7c   :  { %v1766_v54 = vsel %vm242_vm1, %v1764_v22, 0.0  ;;  %v1765_v33 = vmul.f32 %v1761_v30, %v5305_v32 }
0x1b7d   :  { %1767 = vadd.xlane.f32.xlu1 %v1766_v54 }
0x1b7e   :  { %v1769_v37 = vsel %vm242_vm1, %v1765_v33, 0.0 }
0x1b7f   :  { %1770 = vadd.xlane.f32.xlu0 %v1769_v37 }
0x1c0a   :  { %v1768_v36 = vpop.xlane.xlu1 %1767 }
0x1c0b   :  { %v1772_v38 = vmul.f32 %v1768_v36, %v5315_v41 }
0x1c0c   :  { %v1771_v40 = vpop.xlane.xlu0 %1770 }
0x1c0d   :  { %v1774_v0 = vsub.f32 %v1772_v38, %v5317_v43  ;;  %v1773_v12 = vmul.f32 %v1771_v40, %v5321_v47 }
0x1c0f   :  { %v1775_v15 = vsub.f32 %v1773_v12, %v5323_v48  ;;  %1779 = vperm.xlu0 %4934, %v1774_v0  }
0x1c11   :  { %1782 = vperm.xlu1 %4935, %v1775_v15  }
0x1c8e   :  { %v1780_v10 = vpop.permute.xlu0 %1779 }
0x1c8f   :  { %v1787_v22 = vrot.slane %v1780_v10, %v5332_v52 }
0x1c90   :  { %v1783_v62 = vpop.permute.xlu1 %1782 }
0x1c91   :  { %v1791_v30 = vrot.slane %v1783_v62, %v5332_v52 }
0x1c93   :  { %v1792_v54 = vsel %vm303_vm2, %v1791_v30, %v1787_v22 }
0x1c94   :  { %v1794_v33 = vsel %vm306_vm3, %v1792_v54, -inf }
0x1c95   :  { %1795 = vmax.xlane.f32.xlu1 %v1794_v33 }
0x1d22   :  { %v1796_v37 = vpop.xlane.xlu1 %1795 }
0x1d23   :  { %v1801_v36 = vrot.slane %v1796_v37, %v5281_v14  ;;  %v1805_v38 = vrot.slane %v1796_v37, %v5301_v27 }
0x1d25   :  { %v1808_v40 = vsub.f32 %v1774_v0, %v1801_v36  ;;  %v1809_v12 = vsub.f32 %v1775_v15, %v1805_v38 }
0x1d27   :  { %v1810_v20 = vmul.f32 1.442695, %v1808_v40  ;;  %v1812_v23 = vmul.f32 1.442695, %v1809_v12 }
0x1d29   :  { %5000 = vpow2.f32 %v1810_v20 }
0x1d2a   :  { %5002 = vpow2.f32 %v1812_v23 }
0x1d33   :  { %v5001_v51 = vpop.eup %5000 }
0x1d34   :  { %v1814_v10 = vmul.f32 %v5001_v51, %v5315_v41  ;;  %v5003_v62 = vpop.eup %5002 }
0x1d35   :  { %v1815_v22 = vmul.f32 %v5003_v62, %v5321_v47 }
0x1d36   :  { %1819 = vperm.xlu0 %4934, %v1814_v10  }
0x1d3a   :  { %1822 = vperm.xlu0 %4934, %v1815_v22  }
0x1db5   :  { %v1820_v30 = vpop.permute.xlu0 %1819 }
0x1db6   :  { %v1827_v33 = vrot.slane %v1820_v30, %v5332_v52 }
0x1db9   :  { %v1823_v54 = vpop.permute.xlu0 %1822 }
0x1dba   :  { %v1831_v37 = vrot.slane %v1823_v54, %v5332_v52 }
0x1dbc   :  { %v1832_v0 = vsel %vm303_vm2, %v1831_v37, %v1827_v33 }
0x1dbd   :  { %v1834_v15 = vsel %vm306_vm3, %v1832_v0, 0.0 }
0x1dbe   :  { %1835 = vadd.xlane.f32.xlu0 %v1834_v15 }
0x1e4b   :  { %v1836_v20 = vpop.xlane.xlu0 %1835 }
0x1e4c   :  { %v1841_v23 = vrot.slane %v1836_v20, %v5281_v14  ;;  %v1845_v51 = vrot.slane %v1836_v20, %v5301_v27 }
0x1e4e   :  { %5004 = vrcp.f32 %v1841_v23 }
0x1e4f   :  { %5006 = vrcp.f32 %v1845_v51 }
0x1e58   :  { %v5005_v36 = vpop.eup %5004 }
0x1e59   :  { %v5007_v38 = vpop.eup %5006  ;;  %v1849_v40 = vmul.f32 %v5005_v36, %v1814_v10 }
0x1e5a   :  { %v1851_v12 = vmul.f32 %v5007_v38, %v1815_v22 }
0x1e5b   :  { %1854 = vperm.xlu1 %4935, %v1849_v40  }
0x1e5c   :  { %1859 = vperm.xlu0 %4934, %v1851_v12  }
0x1eda   :  { %v1855_v62 = vpop.permute.xlu1 %1854 }
0x1edb   :  { %v1860_v30 = vpop.permute.xlu0 %1859  ;;  %v1862_v54 = vmul.f32 %v1855_v62, %v5433_v59  ;;  %v2128_v33 = vrot.slane %v1855_v62, %v5332_v52 }
0x1edc   :  { %v1863_v37 = vmul.f32 %v1860_v30, %v5438_v60  ;;  %v2132_v0 = vrot.slane %v1860_v30, %v5332_v52 }
0x1edd   :  { %v1864_v15 = vsel %vm377_vm5, %v1862_v54, 0.0 }
0x1ede   :  { %v1871_v20 = vsel %vm377_vm5, %v1863_v37, 0.0  ;;  %v1865_v23 = vrot.slane %v1864_v15, 4  ;;  %v2133_v10 = vsel %vm303_vm2, %v2132_v0, %v2128_v33  ;;  %v6302_v33 = vmov 0.0  }
0x1edf   :  { %v1872_v22 = vrot.slane %v1871_v20, 4  ;;  %2136 = vst.msk [vmem:[#allocation6 + $0x2] sm:$0x3] %vm306_vm3, %v2133_v10  ;;  %v6303_v37 = vmov 0.0|0.0  }
0x1ee0   :  { %v1866_v51 = vadd.f32 %v1865_v23, %v1864_v15 }
0x1ee1   :  { %v1873_v36 = vadd.f32 %v1872_v22, %v1871_v20 }
0x1ee2   :  { %v1867_v38 = vrot.slane %v1866_v51, 2 }
0x1ee3   :  { %v1874_v59 = vrot.slane %v1873_v36, 2 }
0x1ee4   :  { %v1868_v40 = vadd.f32 %v1867_v38, %v1866_v51 }
0x1ee5   :  { %v1875_v12 = vadd.f32 %v1874_v59, %v1873_v36 }
0x1ee6   :  { %v1869_v62 = vrot.slane %v1868_v40, 1 }
0x1ee7   :  { %v1876_v60 = vrot.slane %v1875_v12, 1 }
0x1ee8   :  { %v1870_v19 = vadd.f32 %v1869_v62, %v1868_v40 }
0x1ee9   :  { %v1877_v30 = vadd.f32 %v1876_v60, %v1875_v12 }
0x1eeb   :  { %v1880_v54 = vsel %vm303_vm2, %v1877_v30, %v1870_v19  ;;  %v3958_v19 = vld [vmem:[%s6276_s0 + $0x4] sm:$0x3] }
0x1eec   :  { %2212 = vrot.lane.b32.xlu1 %v1880_v54, %s5169_s23  ;;  %4404 = vmatmul.mubr.msk.f32.vlgmr.msra.gmra.mrb[16].mxu0 %vm377_vm5, %v1880_v54 }
0x1eed   :  { %4778 = vmatpush3.bf16.msra.mxu0 %v5668_v55  ;;  %4414 = vmatprep.mubr.msk.f32.mxu0 %vm5175_vm4, %v6302_v33 }
0x1eee   :  { %4779 = vmatprep.subr.bf16.mxu0 %v6303_v37 }
0x1ef0   :  { %2215 = vrot.lane.b32.xlu1 %v5772_v26, %s5178_s21 }
0x1ef1   :  { %4781 = vmatpush3.bf16.msra.mxu0 %v5680_v44 }
0x1ef2   :  { %4788 = vmatprep.subr.bf16.mxu0 %v6303_v37 }
0x1ef4   :  { %4415 = vmatmul.mubr.msk.f32.vlgmr.msra.gmra.mrb[18].mxu0 %vm242_vm1, %v5818_v11 }
0x1ef5   :  { %4790 = vmatpush3.bf16.msra.mxu0 %v5356_v21  ;;  %4436 = vmatprep.mubr.msk.f32.mxu0 %vm5175_vm4, %v6302_v33 }
0x1ef6   :  { %4791 = vmatprep.subr.bf16.mxu0 %v6303_v37 }
0x1ef9   :  { %4793 = vmatpush3.bf16.msra.mxu0 %v5367_v24 }
0x1efa   :  { %4809 = vmatprep.subr.bf16.mxu0 %v6303_v37 }
0x1efc   :  { %4437 = vmatmul.mubr.msk.f32.vlgmr.msra.gmra.mrb[20].mxu0 %vm242_vm1, %v3958_v19 }
0x1efd   :  { %4811 = vmatpush3.bf16.msra.mxu0 %v5470_v61  ;;  %4478 = vmatprep.mubr.msk.f32.mxu0 %vm5175_vm4, %v6302_v33 }
0x1efe   :  { %4812 = vmatprep.subr.bf16.mxu0 %v6303_v37 }
0x1f01   :  { %4814 = vmatpush3.bf16.msra.mxu0 %v5476_v63 }
0x1f02   :  { %4815 = vmatprep.subr.bf16.mxu0 %v6303_v37 }
0x1f05   :  { %4817 = vmatpush3.bf16.msra.mxu0 %v5486_v2 }
0x1f06   :  { %4818 = vmatprep.subr.bf16.mxu0 %v6303_v37 }
0x1f09   :  { %4820 = vmatpush3.bf16.msra.mxu0 %v5497_v7 }
0x1f0a   :  { %4833 = vmatprep.subr.bf16.mxu0 %v6303_v37 }
0x1f5e   :  { %v2213_v38 = vpop.permute.xlu1 %2212 }
0x1f62   :  { %v2216_v40 = vpop.permute.xlu1 %2215 }
0x1fbf   :  { %v1949_v26 = vpop.f32.mrb[16].mxu0 }
0x1fc0   :  { %v4405_v11 = vpop.f32.mrb[17].mxu0 }
0x1fc7   :  { %v2019_v0 = vpop.f32.mrb[18].mxu0 }
0x1fc8   :  { %v2020_v15 = vadd.f32 %v2019_v0, %v1949_v26  ;;  %v4416_v20 = vpop.f32.mrb[19].mxu0 }
0x1fca   :  { %v2023_v23 = vadd.f32 %v2020_v15, %v5731_v3 }
0x1fcc   :  { %vm2024_vm10 = vcmp.ge.f32.partialorder %v2023_v23, 0.0  ;;  %v2025_v10 = vmul.f32 0.01, %v2023_v23 }
0x1fce   :  { %v2026_v22 = vsel %vm2024_vm10, %v2023_v23, %v2025_v10 }
0x1fcf   :  { %4426 = vmatmul.mubr.msk.f32.vlgmr.msra.gmra.mrb[12].mxu1 %vm242_vm1, %v2026_v22  ;;  %v2208_v51 = vpop.f32.mrb[20].mxu0 }
0x1fd0   :  { %4796 = vmatpush3.bf16.msra.mxu1 %v5389_v39  ;;  %v4438_v36 = vpop.f32.mrb[21].mxu0  ;;  %4459 = vmatprep.mubr.msk.f32.mxu1 %vm5175_vm4, %v6302_v33  ;;  %v2218_v59 = vsel %vm242_vm1, %v2208_v51, %v2213_v38 }
0x1fd1   :  { %4797 = vmatprep.subr.bf16.mxu1 %v6303_v37  ;;  %v2219_v12 = vsel %vm473_vm6, %v2218_v59, %v2216_v40 }
0x1fd4   :  { %4799 = vmatpush3.bf16.msra.mxu1 %v5395_v42 }
0x1fd5   :  { %4800 = vmatprep.subr.bf16.mxu1 %v6303_v37 }
0x1fd8   :  { %4802 = vmatpush3.bf16.msra.mxu1 %v5405_v46 }
0x1fd9   :  { %4803 = vmatprep.subr.bf16.mxu1 %v6303_v37 }
0x1fdc   :  { %4805 = vmatpush3.bf16.msra.mxu1 %v5415_v53 }
0x1fdd   :  { %4806 = vmatprep.subr.bf16.mxu1 %v6303_v37 }
0x1fe0   :  { %4808 = vmatpush3.bf16.msra.mxu1 %v5425_v56 }
0x1fe1   :  { %4821 = vmatprep.subr.bf16.mxu1 %v6303_v37 }
0x1fe3   :  { %4460 = vmatmul.mubr.msk.f32.vlgmr.msra.gmra.mrb[14].mxu1 %vm475_vm7, %v2219_v12 }
0x1fe4   :  { %4823 = vmatpush3.bf16.msra.mxu1 %v5529_v45  ;;  %4497 = vmatprep.mubr.msk.f32.mxu1 %vm5175_vm4, %v6302_v33 }
0x1fe5   :  { %4824 = vmatprep.subr.bf16.mxu1 %v6303_v37 }
0x1fe8   :  { %4826 = vmatpush3.bf16.msra.mxu1 %v5535_v50 }
0x1fe9   :  { %4827 = vmatprep.subr.bf16.mxu1 %v6303_v37 }
0x1fec   :  { %4829 = vmatpush3.bf16.msra.mxu1 %v5545_v58 }
0x1fed   :  { %4830 = vmatprep.subr.bf16.mxu1 %v6303_v37 }
0x1ff0   :  { %4832 = vmatpush3.bf16.msra.mxu1 %v5556_v4 }
0x1ff1   :  { %4848 = vmatprep.subr.bf16.mxu1 %v6303_v37 }
0x20a2   :  { %v5922_v62 = vpop.f32.mrb[12].mxu1 }
0x20a3   :  { %6304 = vst [vmem:[#allocation16_spill] sm:$0xff] %v5922_v62  ;;  %v4427_v60 = vpop.f32.mrb[13].mxu1 }
0x20b6   :  { %v2289_v30 = vpop.f32.mrb[14].mxu1 }
0x20b7   :  { %v2290_v54 = vadd.f32 %v2289_v30, %v5453_v29  ;;  %v4461_v19 = vpop.f32.mrb[15].mxu1 }
0x20b9   :  { %5008 = vtanh.f32 %v2290_v54  ;;  %v3961_v11 = vmul.f32 -1.442695, %v2290_v54 }
0x20bb   :  { %5010 = vpow2.f32 %v3961_v11 }
0x20c3   :  { %v5009_v26 = vpop.eup %5008 }
0x20c4   :  { %2302 = vrot.lane.b32.xlu1 %v5009_v26, %s5177_s12 }
0x20c5   :  { %v5011_v0 = vpop.eup %5010 }
0x20c6   :  { %v2296_v15 = vadd.f32 1.0, %v5011_v0 }
0x20c8   :  { %5012 = vrcp.f32 %v2296_v15 }
0x20d2   :  { %v5013_v20 = vpop.eup %5012 }
0x20d3   :  { %v2300_v22 = vmul.f32 %v5013_v20, %v5766_v5 }
0x2136   :  { %v2303_v23 = vpop.permute.xlu1 %2302 }
0x2137   :  { %v2305_v10 = vmul.f32 %v5013_v20, %v2303_v23 }
0x2139   :  { %2307 = vrot.lane.b32.xlu0 %v2305_v10, %s5169_s23 }
0x21ab   :  { %v2308_v51 = vpop.permute.xlu0 %2307 }
0x21ac   :  { %v5928_v36 = vadd.f32 %v2308_v51, %v2300_v22 }
0x21ae   :  { %5014 = vtanh.f32 %v5928_v36 }
0x21b8   :  { %v5015_v38 = vpop.eup %5014 }
0x21b9   :  { %2313 = vrot.lane.b32.xlu1 %v5015_v38, %s5177_s12 }
0x21bd   :  { %2321 = vrot.lane.b32.xlu1 %v5794_v6, %s5177_s12 }
0x222b   :  { %v2314_v59 = vpop.permute.xlu1 %2313 }
0x222c   :  { %v5934_v40 = vmul.f32 %v5013_v20, %v2314_v59 }
0x222e   :  { %2318 = vrot.lane.b32.xlu0 %v5934_v40, %s5169_s23 }
0x222f   :  { %v2322_v12 = vpop.permute.xlu1 %2321 }
0x22a0   :  { %v2319_v60 = vpop.permute.xlu0 %2318 }
0x22a1   :  { %v2324_v5 = vsel %vm242_vm1, %v2319_v60, %v2322_v12 }
0x22a2   :  { %4479 = vmatmul.mubr.msk.f32.vlgmr.msra.gmra.mrb[22].mxu0 %vm578_vm8, %v2324_v5 }
0x22a3   :  { %4835 = vmatpush3.bf16.msra.mxu0 %v5588_v49  ;;  %4508 = vmatprep.mubr.msk.f32.mxu0 %vm5175_vm4, %v6302_v33 }
0x22a4   :  { %4836 = vmatprep.subr.bf16.mxu0 %v6303_v37 }
0x22a7   :  { %4838 = vmatpush3.bf16.msra.mxu0 %v5594_v57 }
0x22a8   :  { %4839 = vmatprep.subr.bf16.mxu0 %v6303_v37 }
0x2375   :  { %v2394_v6 = vpop.f32.mrb[22].mxu0 }
0x2376   :  { %v2395_v30 = vadd.f32 %v2394_v6, %v5512_v16  ;;  %v4480_v54 = vpop.f32.mrb[23].mxu0 }
0x2378   :  { %5016 = vtanh.f32 %v2395_v30  ;;  %v3963_v26 = vmul.f32 -1.442695, %v2395_v30 }
0x237a   :  { %5018 = vpow2.f32 %v3963_v26 }
0x2382   :  { %v5017_v19 = vpop.eup %5016 }
0x2383   :  { %2407 = vrot.lane.b32.xlu0 %v5017_v19, %s5177_s12 }
0x2384   :  { %v5019_v11 = vpop.eup %5018 }
0x2385   :  { %v2401_v0 = vadd.f32 1.0, %v5019_v11 }
0x2387   :  { %5020 = vrcp.f32 %v2401_v0 }
0x2391   :  { %v5021_v15 = vpop.eup %5020 }
0x2392   :  { %v2405_v10 = vmul.f32 %v5021_v15, %v5788_v28 }
0x23f5   :  { %v2408_v20 = vpop.permute.xlu0 %2407 }
0x23f6   :  { %v2410_v23 = vmul.f32 %v5021_v15, %v2408_v20 }
0x23f8   :  { %2412 = vrot.lane.b32.xlu1 %v2410_v23, %s5169_s23 }
0x246a   :  { %v2413_v22 = vpop.permute.xlu1 %2412 }
0x246b   :  { %v5950_v51 = vadd.f32 %v2413_v22, %v2405_v10 }
0x246d   :  { %5022 = vtanh.f32 %v5950_v51 }
0x2477   :  { %v5023_v38 = vpop.eup %5022 }
0x2478   :  { %2418 = vrot.lane.b32.xlu0 %v5023_v38, %s5177_s12 }
0x247c   :  { %2426 = vrot.lane.b32.xlu0 %v5814_v1, %s5177_s12 }
0x24ea   :  { %v2419_v59 = vpop.permute.xlu0 %2418 }
0x24eb   :  { %v5956_v12 = vmul.f32 %v5021_v15, %v2419_v59 }
0x24ed   :  { %2423 = vrot.lane.b32.xlu1 %v5956_v12, %s5169_s23 }
0x24ee   :  { %v2427_v60 = vpop.permute.xlu0 %2426 }
0x255f   :  { %v2424_v5 = vpop.permute.xlu1 %2423 }
0x2560   :  { %v2429_v28 = vsel %vm242_vm1, %v2424_v5, %v2427_v60 }
0x2561   :  { %4498 = vmatmul.mubr.msk.f32.vlgmr.msra.gmra.mrb[16].mxu1 %vm578_vm8, %v2429_v28 }
0x2562   :  { %4850 = vmatpush3.bf16.msra.mxu1 %v5717_v18  ;;  %4537 = vmatprep.mubr.msk.f32.mxu1 %vm5175_vm4, %v6302_v33 }
0x2563   :  { %4851 = vmatprep.subr.bf16.mxu1 %v6303_v37 }
0x2566   :  { %4853 = vmatpush3.bf16.msra.mxu1 %v5727_v25 }
0x2567   :  { %4860 = vmatprep.subr.bf16.mxu1 %v6303_v37 }
0x2634   :  { %v2499_v1 = vpop.f32.mrb[16].mxu1 }
0x2635   :  { %v2500_v6 = vadd.f32 %v2499_v1, %v5571_v17  ;;  %v4499_v30 = vpop.f32.mrb[17].mxu1 }
0x2637   :  { %5024 = vtanh.f32 %v2500_v6  ;;  %v3965_v19 = vmul.f32 -1.442695, %v2500_v6 }
0x2639   :  { %5026 = vpow2.f32 %v3965_v19 }
0x2641   :  { %v5025_v54 = vpop.eup %5024 }
0x2642   :  { %2512 = vrot.lane.b32.xlu1 %v5025_v54, %s5177_s12 }
0x2643   :  { %v5027_v26 = vpop.eup %5026 }
0x2644   :  { %v2506_v11 = vadd.f32 1.0, %v5027_v26 }
0x2646   :  { %5028 = vrcp.f32 %v2506_v11 }
0x2650   :  { %v5029_v0 = vpop.eup %5028 }
0x2651   :  { %v2510_v23 = vmul.f32 %v5029_v0, %v5810_v31 }
0x26b4   :  { %v2513_v15 = vpop.permute.xlu1 %2512 }
0x26b5   :  { %v2515_v20 = vmul.f32 %v5029_v0, %v2513_v15 }
0x26b7   :  { %2517 = vrot.lane.b32.xlu0 %v2515_v20, %s5169_s23 }
0x2729   :  { %v2518_v10 = vpop.permute.xlu0 %2517 }
0x272a   :  { %v5972_v22 = vadd.f32 %v2518_v10, %v2510_v23 }
0x272c   :  { %5030 = vtanh.f32 %v5972_v22 }
0x2736   :  { %v5031_v38 = vpop.eup %5030 }
0x2737   :  { %2523 = vrot.lane.b32.xlu1 %v5031_v38, %s5177_s12 }
0x27a9   :  { %v2524_v59 = vpop.permute.xlu1 %2523 }
0x27aa   :  { %v5976_v60 = vmul.f32 %v5029_v0, %v2524_v59 }
0x27ac   :  { %2528 = vrot.lane.b32.xlu0 %v5976_v60, %s5169_s23 }
0x281e   :  { %v5980_v5 = vpop.permute.xlu0 %2528 }
0x281f   :  { %4509 = vmatmul.mubr.msk.f32.vlgmr.msra.gmra.mrb[24].mxu0 %vm242_vm1, %v5980_v5 }
0x2820   :  { %4841 = vmatpush3.bf16.msra.mxu0 %v5650_v35  ;;  %4515 = vmatprep.mubr.msk.f32.mxu0 %vm5175_vm4, %v6302_v33 }
0x2821   :  { %4842 = vmatprep.subr.bf16.mxu0 %v6303_v37 }
0x28f2   :  { %v2598_v31 = vpop.f32.mrb[24].mxu0 }
0x28f3   :  { %v2599_v28 = vadd.f32 %v2598_v31, %v5612_v9  ;;  %v4510_v1 = vpop.f32.mrb[25].mxu0 }
0x28f5   :  { %v2609_v6 = vrot.slane %v2599_v28, %v5263_v8 }
0x28f7   :  { %v2610_v30 = vcombine.high %v2609_v6, %v2609_v6  ;;  %v2617_v54 = vrot.slane %v2609_v6, %v5263_v8 }
0x28f9   :  { %v2628_v19 = vrot.slane %v2617_v54, %v5281_v14  ;;  %v2624_v26 = vrot.slane %v2610_v30, %v5263_v8 }
0x28fb   :  { %v2635_v11 = vmul.f32 %v2628_v19, %v5308_v34  ;;  %v2632_v0 = vrot.slane %v2624_v26, %v5281_v14 }
0x28fd   :  { %v2637_v15 = vsel %vm242_vm1, %v2635_v11, 0.0  ;;  %v2636_v20 = vmul.f32 %v2632_v0, %v5305_v32 }
0x28fe   :  { %2638 = vadd.xlane.f32.xlu1 %v2637_v15 }
0x28ff   :  { %v2640_v23 = vsel %vm242_vm1, %v2636_v20, 0.0 }
0x2900   :  { %2641 = vadd.xlane.f32.xlu0 %v2640_v23 }
0x298b   :  { %v2639_v10 = vpop.xlane.xlu1 %2638 }
0x298c   :  { %v2643_v38 = vmul.f32 %v2639_v10, %v5315_v41 }
0x298d   :  { %v2642_v59 = vpop.xlane.xlu0 %2641 }
0x298e   :  { %v2645_v31 = vsub.f32 %v2643_v38, %v5317_v43  ;;  %v2644_v28 = vmul.f32 %v2642_v59, %v5321_v47 }
0x2990   :  { %v2646_v1 = vsub.f32 %v2644_v28, %v5323_v48  ;;  %2650 = vperm.xlu0 %4934, %v2645_v31  }
0x2992   :  { %2653 = vperm.xlu1 %4935, %v2646_v1  }
0x2a0f   :  { %v2651_v6 = vpop.permute.xlu0 %2650 }
0x2a10   :  { %v2658_v54 = vrot.slane %v2651_v6, %v5332_v52 }
0x2a11   :  { %v2654_v30 = vpop.permute.xlu1 %2653 }
0x2a12   :  { %v2662_v19 = vrot.slane %v2654_v30, %v5332_v52 }
0x2a14   :  { %v2663_v26 = vsel %vm303_vm2, %v2662_v19, %v2658_v54 }
0x2a15   :  { %v2665_v11 = vsel %vm306_vm3, %v2663_v26, -inf }
0x2a16   :  { %2666 = vmax.xlane.f32.xlu1 %v2665_v11 }
0x2aa3   :  { %v2667_v0 = vpop.xlane.xlu1 %2666 }
0x2aa4   :  { %v2672_v15 = vrot.slane %v2667_v0, %v5281_v14  ;;  %v2676_v20 = vrot.slane %v2667_v0, %v5301_v27 }
0x2aa6   :  { %v2679_v23 = vsub.f32 %v2645_v31, %v2672_v15  ;;  %v2680_v10 = vsub.f32 %v2646_v1, %v2676_v20 }
0x2aa8   :  { %v2681_v38 = vmul.f32 1.442695, %v2679_v23  ;;  %v2683_v59 = vmul.f32 1.442695, %v2680_v10 }
0x2aaa   :  { %5032 = vpow2.f32 %v2681_v38 }
0x2aab   :  { %5034 = vpow2.f32 %v2683_v59 }
0x2ab4   :  { %v5033_v28 = vpop.eup %5032 }
0x2ab5   :  { %v2685_v6 = vmul.f32 %v5033_v28, %v5315_v41  ;;  %v5035_v30 = vpop.eup %5034 }
0x2ab6   :  { %v2686_v54 = vmul.f32 %v5035_v30, %v5321_v47 }
0x2ab7   :  { %2690 = vperm.xlu0 %4934, %v2685_v6  }
0x2abb   :  { %2693 = vperm.xlu0 %4934, %v2686_v54  }
0x2b36   :  { %v2691_v19 = vpop.permute.xlu0 %2690 }
0x2b37   :  { %v2698_v11 = vrot.slane %v2691_v19, %v5332_v52 }
0x2b3a   :  { %v2694_v26 = vpop.permute.xlu0 %2693 }
0x2b3b   :  { %v2702_v0 = vrot.slane %v2694_v26, %v5332_v52  ;;  %v6019_v26 = vld [vmem:[%s6279_s3] sm:$0xff] }
0x2b3c   :  { %6305 = vst [vmem:[#allocation17_spill] sm:$0xff] %v6019_v26 }
0x2b3d   :  { %v2703_v31 = vsel %vm303_vm2, %v2702_v0, %v2698_v11 }
0x2b3e   :  { %v2705_v1 = vsel %vm306_vm3, %v2703_v31, 0.0  ;;  %v6026_v31 = vld [vmem:[%s6279_s3 + $0x8] sm:$0xff] }
0x2b3f   :  { %2706 = vadd.xlane.f32.xlu0 %v2705_v1  ;;  %6306 = vst [vmem:[#allocation18_spill] sm:$0xff] %v6026_v31 }
0x2bcc   :  { %v2707_v15 = vpop.xlane.xlu0 %2706 }
0x2bcd   :  { %v2712_v20 = vrot.slane %v2707_v15, %v5281_v14  ;;  %v2716_v23 = vrot.slane %v2707_v15, %v5301_v27 }
0x2bcf   :  { %5036 = vrcp.f32 %v2712_v20 }
0x2bd0   :  { %5038 = vrcp.f32 %v2716_v23 }
0x2bd9   :  { %v5037_v10 = vpop.eup %5036 }
0x2bda   :  { %v5039_v38 = vpop.eup %5038  ;;  %v2720_v59 = vmul.f32 %v5037_v10, %v2685_v6 }
0x2bdb   :  { %v2722_v28 = vmul.f32 %v5039_v38, %v2686_v54 }
0x2bdc   :  { %2725 = vperm.xlu1 %4935, %v2720_v59  }
0x2bdd   :  { %2730 = vperm.xlu0 %4934, %v2722_v28  }
0x2c5b   :  { %v2726_v30 = vpop.permute.xlu1 %2725 }
0x2c5c   :  { %v2731_v19 = vpop.permute.xlu0 %2730  ;;  %v2733_v11 = vmul.f32 %v6019_v26, %v2726_v30  ;;  %v2999_v0 = vrot.slane %v2726_v30, %v5332_v52 }
0x2c5d   :  { %v2734_v6 = vmul.f32 %v6026_v31, %v2731_v19  ;;  %v3003_v54 = vrot.slane %v2731_v19, %v5332_v52 }
0x2c5e   :  { %v2735_v1 = vsel %vm377_vm5, %v2733_v11, 0.0 }
0x2c5f   :  { %v2742_v15 = vsel %vm377_vm5, %v2734_v6, 0.0  ;;  %v2736_v20 = vrot.slane %v2735_v1, 4  ;;  %v3004_v23 = vsel %vm303_vm2, %v3003_v54, %v2999_v0 }
0x2c60   :  { %v2743_v10 = vrot.slane %v2742_v15, 4  ;;  %3007 = vst.msk [vmem:[#allocation6 + $0x4] sm:$0x3] %vm306_vm3, %v3004_v23 }
0x2c61   :  { %v2737_v38 = vadd.f32 %v2736_v20, %v2735_v1 }
0x2c62   :  { %v2744_v59 = vadd.f32 %v2743_v10, %v2742_v15 }
0x2c63   :  { %v2738_v28 = vrot.slane %v2737_v38, 2 }
0x2c64   :  { %v2745_v30 = vrot.slane %v2744_v59, 2 }
0x2c65   :  { %v2739_v62 = vadd.f32 %v2738_v28, %v2737_v38 }
0x2c66   :  { %v2746_v26 = vadd.f32 %v2745_v30, %v2744_v59 }
0x2c67   :  { %v2740_v13 = vrot.slane %v2739_v62, 1 }
0x2c68   :  { %v2747_v31 = vrot.slane %v2746_v26, 1 }
0x2c69   :  { %v2741_v27 = vadd.f32 %v2740_v13, %v2739_v62  ;;  %v3970_v13 = vld [vmem:[%s6276_s0 + $0x6] sm:$0x3]  ;;  %s5179_s0 = smov [#allocation6]  }
0x2c6a   :  { %v2748_v19 = vadd.f32 %v2747_v31, %v2746_v26 }
0x2c6c   :  { %v2751_v11 = vsel %vm303_vm2, %v2748_v19, %v2741_v27 }
0x2c6d   :  { %3083 = vrot.lane.b32.xlu1 %v2751_v11, %s5169_s23  ;;  %4516 = vmatmul.mubr.msk.f32.vlgmr.msra.gmra.mrb[26].mxu0 %vm377_vm5, %v2751_v11 }
0x2c6e   :  { %4844 = vmatpush3.bf16.msra.mxu0 %v5668_v55  ;;  %4526 = vmatprep.mubr.msk.f32.mxu0 %vm5175_vm4, %v6302_v33 }
0x2c6f   :  { %4845 = vmatprep.subr.bf16.mxu0 %v6303_v37 }
0x2c71   :  { %3086 = vrot.lane.b32.xlu1 %v5934_v40, %s5178_s21 }
0x2c72   :  { %4847 = vmatpush3.bf16.msra.mxu0 %v5680_v44 }
0x2c73   :  { %4854 = vmatprep.subr.bf16.mxu0 %v6303_v37 }
0x2c75   :  { %4527 = vmatmul.mubr.msk.f32.vlgmr.msra.gmra.mrb[28].mxu0 %vm242_vm1, %v5980_v5 }
0x2c76   :  { %4856 = vmatpush3.bf16.msra.mxu0 %v5356_v21  ;;  %4548 = vmatprep.mubr.msk.f32.mxu0 %vm5175_vm4, %v6302_v33 }
0x2c77   :  { %4857 = vmatprep.subr.bf16.mxu0 %v6303_v37 }
0x2c7a   :  { %4859 = vmatpush3.bf16.msra.mxu0 %v5367_v24 }
0x2c7b   :  { %4875 = vmatprep.subr.bf16.mxu0 %v6303_v37 }
0x2c7d   :  { %4549 = vmatmul.mubr.msk.f32.vlgmr.msra.gmra.mrb[30].mxu0 %vm242_vm1, %v3970_v13 }
0x2c7e   :  { %4877 = vmatpush3.bf16.msra.mxu0 %v5470_v61  ;;  %4590 = vmatprep.mubr.msk.f32.mxu0 %vm5175_vm4, %v6302_v33 }
0x2c7f   :  { %4878 = vmatprep.subr.bf16.mxu0 %v6303_v37 }
0x2c82   :  { %4880 = vmatpush3.bf16.msra.mxu0 %v5476_v63 }
0x2c83   :  { %4881 = vmatprep.subr.bf16.mxu0 %v6303_v37 }
0x2c86   :  { %4883 = vmatpush3.bf16.msra.mxu0 %v5486_v2 }
0x2c87   :  { %4884 = vmatprep.subr.bf16.mxu0 %v6303_v37 }
0x2c8a   :  { %4886 = vmatpush3.bf16.msra.mxu0 %v5497_v7 }
0x2c8b   :  { %4899 = vmatprep.subr.bf16.mxu0 %v6303_v37 }
0x2cdf   :  { %v3084_v7 = vpop.permute.xlu1 %3083 }
0x2ce3   :  { %v3087_v0 = vpop.permute.xlu1 %3086 }
0x2d40   :  { %v2820_v27 = vpop.f32.mrb[26].mxu0 }
0x2d41   :  { %v4517_v21 = vpop.f32.mrb[27].mxu0 }
0x2d48   :  { %v2890_v24 = vpop.f32.mrb[28].mxu0 }
0x2d49   :  { %v2891_v61 = vadd.f32 %v2890_v24, %v2820_v27  ;;  %v4528_v62 = vpop.f32.mrb[29].mxu0 }
0x2d4b   :  { %v2894_v40 = vadd.f32 %v2891_v61, %v5731_v3 }
0x2d4d   :  { %vm2895_vm11 = vcmp.ge.f32.partialorder %v2894_v40, 0.0  ;;  %v2896_v5 = vmul.f32 0.01, %v2894_v40 }
0x2d4f   :  { %v2897_v63 = vsel %vm2895_vm11, %v2894_v40, %v2896_v5 }
0x2d50   :  { %4538 = vmatmul.mubr.msk.f32.vlgmr.msra.gmra.mrb[18].mxu1 %vm242_vm1, %v2897_v63  ;;  %v3079_v26 = vpop.f32.mrb[30].mxu0 }
0x2d51   :  { %4862 = vmatpush3.bf16.msra.mxu1 %v5389_v39  ;;  %v4550_v2 = vpop.f32.mrb[31].mxu0  ;;  %4571 = vmatprep.mubr.msk.f32.mxu1 %vm5175_vm4, %v6302_v33  ;;  %v3089_v39 = vsel %vm242_vm1, %v3079_v26, %v3084_v7 }
0x2d52   :  { %4863 = vmatprep.subr.bf16.mxu1 %v6303_v37 }
0x2d55   :  { %4865 = vmatpush3.bf16.msra.mxu1 %v5395_v42  ;;  %v3090_v42 = vsel %vm473_vm6, %v3089_v39, %v3087_v0 }
0x2d56   :  { %4866 = vmatprep.subr.bf16.mxu1 %v6303_v37 }
0x2d59   :  { %4868 = vmatpush3.bf16.msra.mxu1 %v5405_v46 }
0x2d5a   :  { %4869 = vmatprep.subr.bf16.mxu1 %v6303_v37 }
0x2d5d   :  { %4871 = vmatpush3.bf16.msra.mxu1 %v5415_v53 }
0x2d5e   :  { %4872 = vmatprep.subr.bf16.mxu1 %v6303_v37 }
0x2d61   :  { %4874 = vmatpush3.bf16.msra.mxu1 %v5425_v56 }
0x2d62   :  { %4887 = vmatprep.subr.bf16.mxu1 %v6303_v37 }
0x2d64   :  { %4572 = vmatmul.mubr.msk.f32.vlgmr.msra.gmra.mrb[20].mxu1 %vm475_vm7, %v3090_v42 }
0x2d65   :  { %4889 = vmatpush3.bf16.msra.mxu1 %v5529_v45  ;;  %4609 = vmatprep.mubr.msk.f32.mxu1 %vm5175_vm4, %v6302_v33 }
0x2d66   :  { %4890 = vmatprep.subr.bf16.mxu1 %v6303_v37 }
0x2d69   :  { %4892 = vmatpush3.bf16.msra.mxu1 %v5535_v50 }
0x2d6a   :  { %4893 = vmatprep.subr.bf16.mxu1 %v6303_v37 }
0x2d6d   :  { %4895 = vmatpush3.bf16.msra.mxu1 %v5545_v58 }
0x2d6e   :  { %4896 = vmatprep.subr.bf16.mxu1 %v6303_v37 }
0x2d71   :  { %4898 = vmatpush3.bf16.msra.mxu1 %v5556_v4 }
0x2d72   :  { %4914 = vmatprep.subr.bf16.mxu1 %v6303_v37 }
0x2e23   :  { %v6094_v46 = vpop.f32.mrb[18].mxu1 }
0x2e24   :  { %v4539_v53 = vpop.f32.mrb[19].mxu1 }
0x2e37   :  { %v3160_v56 = vpop.f32.mrb[20].mxu1 }
0x2e38   :  { %v3161_v45 = vadd.f32 %v3160_v56, %v5453_v29  ;;  %v4573_v31 = vpop.f32.mrb[21].mxu1 }
0x2e3a   :  { %5040 = vtanh.f32 %v3161_v45  ;;  %v3973_v50 = vmul.f32 -1.442695, %v3161_v45 }
0x2e3c   :  { %5042 = vpow2.f32 %v3973_v50 }
0x2e44   :  { %v5041_v6 = vpop.eup %5040 }
0x2e45   :  { %3173 = vrot.lane.b32.xlu1 %v5041_v6, %s5177_s12 }
0x2e46   :  { %v5043_v58 = vpop.eup %5042 }
0x2e47   :  { %v3167_v54 = vadd.f32 1.0, %v5043_v58 }
0x2e49   :  { %5044 = vrcp.f32 %v3167_v54 }
0x2e53   :  { %v5045_v1 = vpop.eup %5044 }
0x2e54   :  { %v3171_v20 = vmul.f32 %v5045_v1, %v5928_v36 }
0x2eb7   :  { %v3174_v4 = vpop.permute.xlu1 %3173 }
0x2eb8   :  { %v3176_v15 = vmul.f32 %v5045_v1, %v3174_v4 }
0x2eba   :  { %3178 = vrot.lane.b32.xlu0 %v3176_v15, %s5169_s23 }
0x2f2c   :  { %v3179_v23 = vpop.permute.xlu0 %3178 }
0x2f2d   :  { %v3181_v10 = vadd.f32 %v3179_v23, %v3171_v20 }
0x2f2f   :  { %5046 = vtanh.f32 %v3181_v10 }
0x2f39   :  { %v5047_v29 = vpop.eup %5046 }
0x2f3a   :  { %3184 = vrot.lane.b32.xlu1 %v5047_v29, %s5177_s12 }
0x2f3e   :  { %3192 = vrot.lane.b32.xlu1 %v5956_v12, %s5177_s12 }
0x2fac   :  { %v3185_v38 = vpop.permute.xlu1 %3184 }
0x2fad   :  { %v3187_v59 = vmul.f32 %v5045_v1, %v3185_v38 }
0x2faf   :  { %3189 = vrot.lane.b32.xlu0 %v3187_v59, %s5169_s23 }
0x2fb0   :  { %v3193_v28 = vpop.permute.xlu1 %3192 }
0x3021   :  { %v3190_v30 = vpop.permute.xlu0 %3189 }
0x3022   :  { %v3195_v19 = vsel %vm242_vm1, %v3190_v30, %v3193_v28 }
0x3023   :  { %4591 = vmatmul.mubr.msk.f32.vlgmr.msra.gmra.mrb[32].mxu0 %vm578_vm8, %v3195_v19 }
0x3024   :  { %4901 = vmatpush3.bf16.msra.mxu0 %v5588_v49  ;;  %4620 = vmatprep.mubr.msk.f32.mxu0 %vm5175_vm4, %v6302_v33 }
0x3025   :  { %4902 = vmatprep.subr.bf16.mxu0 %v6303_v37 }
0x3028   :  { %4904 = vmatpush3.bf16.msra.mxu0 %v5594_v57 }
0x3029   :  { %4905 = vmatprep.subr.bf16.mxu0 %v6303_v37 }
0x30f6   :  { %v3265_v36 = vpop.f32.mrb[32].mxu0 }
0x30f7   :  { %v3266_v12 = vadd.f32 %v3265_v36, %v5512_v16  ;;  %v4592_v11 = vpop.f32.mrb[33].mxu0 }
0x30f9   :  { %5048 = vtanh.f32 %v3266_v12  ;;  %v3975_v27 = vmul.f32 -1.442695, %v3266_v12 }
0x30fb   :  { %5050 = vpow2.f32 %v3975_v27 }
0x3103   :  { %v5049_v13 = vpop.eup %5048 }
0x3104   :  { %3278 = vrot.lane.b32.xlu0 %v5049_v13, %s5177_s12 }
0x3105   :  { %v5051_v49 = vpop.eup %5050 }
0x3106   :  { %v3272_v21 = vadd.f32 1.0, %v5051_v49 }
0x3108   :  { %5052 = vrcp.f32 %v3272_v21 }
0x3112   :  { %v5053_v24 = vpop.eup %5052 }
0x3113   :  { %v3276_v57 = vmul.f32 %v5053_v24, %v5950_v51 }
0x3176   :  { %v3279_v61 = vpop.permute.xlu0 %3278 }
0x3177   :  { %v3281_v62 = vmul.f32 %v5053_v24, %v3279_v61 }
0x3179   :  { %3283 = vrot.lane.b32.xlu1 %v3281_v62, %s5169_s23 }
0x31eb   :  { %v3284_v40 = vpop.permute.xlu1 %3283 }
0x31ec   :  { %v3286_v5 = vadd.f32 %v3284_v40, %v3276_v57  ;;  %v6307_v57 = vld [vmem:[#allocation13_spill] sm:$0xff] }
0x31ee   :  { %5054 = vtanh.f32 %v3286_v5 }
0x31f8   :  { %v5055_v16 = vpop.eup %5054 }
0x31f9   :  { %3289 = vrot.lane.b32.xlu0 %v5055_v16, %s5177_s12 }
0x31fd   :  { %3297 = vrot.lane.b32.xlu0 %v5976_v60, %s5177_s12 }
0x326b   :  { %v3290_v63 = vpop.permute.xlu0 %3289 }
0x326c   :  { %v3292_v26 = vmul.f32 %v5053_v24, %v3290_v63 }
0x326e   :  { %3294 = vrot.lane.b32.xlu1 %v3292_v26, %s5169_s23 }
0x326f   :  { %v3298_v2 = vpop.permute.xlu0 %3297 }
0x32e0   :  { %v3295_v7 = vpop.permute.xlu1 %3294 }
0x32e1   :  { %v3300_v39 = vsel %vm242_vm1, %v3295_v7, %v3298_v2 }
0x32e2   :  { %4610 = vmatmul.mubr.msk.f32.vlgmr.msra.gmra.mrb[22].mxu1 %vm578_vm8, %v3300_v39 }
0x32e3   :  { %4916 = vmatpush3.bf16.msra.mxu1 %v5717_v18  ;;  %4649 = vmatprep.mubr.msk.f32.mxu1 %vm5175_vm4, %v6302_v33 }
0x32e4   :  { %4917 = vmatprep.subr.bf16.mxu1 %v6303_v37 }
0x32e7   :  { %4919 = vmatpush3.bf16.msra.mxu1 %v5727_v25 }
0x33b5   :  { %v3370_v51 = vpop.f32.mrb[22].mxu1 }
0x33b6   :  { %v3371_v60 = vadd.f32 %v3370_v51, %v5571_v17  ;;  %v4611_v0 = vpop.f32.mrb[23].mxu1 }
0x33b8   :  { %5056 = vtanh.f32 %v3371_v60  ;;  %v3977_v53 = vmul.f32 -1.442695, %v3371_v60 }
0x33ba   :  { %5058 = vpow2.f32 %v3977_v53 }
0x33c2   :  { %v5057_v42 = vpop.eup %5056 }
0x33c3   :  { %3383 = vrot.lane.b32.xlu1 %v5057_v42, %s5177_s12 }
0x33c4   :  { %v5059_v56 = vpop.eup %5058 }
0x33c5   :  { %v3377_v45 = vadd.f32 1.0, %v5059_v56 }
0x33c7   :  { %5060 = vrcp.f32 %v3377_v45 }
0x33d1   :  { %v5061_v18 = vpop.eup %5060 }
0x33d2   :  { %v3381_v25 = vmul.f32 %v5061_v18, %v5972_v22 }
0x3435   :  { %v3384_v31 = vpop.permute.xlu1 %3383 }
0x3436   :  { %v3386_v6 = vmul.f32 %v5061_v18, %v3384_v31 }
0x3438   :  { %3388 = vrot.lane.b32.xlu0 %v3386_v6, %s5169_s23 }
0x34aa   :  { %v3389_v50 = vpop.permute.xlu0 %3388 }
0x34ab   :  { %v3391_v58 = vadd.f32 %v3389_v50, %v3381_v25  ;;  %v6308_v50 = vld [vmem:[#allocation12_spill] sm:$0xff] }
0x34ad   :  { %5062 = vtanh.f32 %v3391_v58 }
0x34b7   :  { %v5063_v17 = vpop.eup %5062 }
0x34b8   :  { %3394 = vrot.lane.b32.xlu1 %v5063_v17, %s5177_s12  ;;  %s3904_s12 = sshll.u32 %s5179_s0, 4  ;;  %s3905_s12 = int_to_ptr.vmem [resolvable:$true] %s3904_s12 }
0x34b9   :  { %s5096_s2 = scalar_lea.vmem %s3905_s12, 128  ;;  %p5101_p9 = scmp.lt.s32.totalorder %s3905_s12, %s3905_s12 }
0x34ba   :  { %p5097_p8 = scmp.ne.s32.totalorder %s3905_s12, %s5096_s2  ;;  %p5102_p10 = scmp.lt.s32.totalorder %s5096_s2, %s5096_s2 }
0x34bc   :  { %p5103_p11 = por %p5102_p10, %p5101_p9 }
0x34be   :  { %p5104_p12 = pnand %p5103_p11, %p5097_p8 }
0x352a   :  { %v3395_v54 = vpop.permute.xlu1 %3394 }
0x352b   :  { %v3397_v1 = vmul.f32 %v5061_v18, %v3395_v54  ;;  %v6309_v54 = vld [vmem:[#allocation17_spill] sm:$0xff] }
0x352d   :  { %3399 = vrot.lane.b32.xlu0 %v3397_v1, %s5169_s23 }
0x359f   :  { %v6133_v4 = vpop.permute.xlu0 %3399 }
0x35a0   :  { %4621 = vmatmul.mubr.msk.f32.vlgmr.msra.gmra.mrb[34].mxu0 %vm242_vm1, %v6133_v4 }
0x35a1   :  { %4907 = vmatpush3.bf16.msra.mxu0 %v5650_v35  ;;  %4627 = vmatprep.mubr.msk.f32.mxu0 %vm5175_vm4, %v6302_v33 }
0x35a2   :  { %4908 = vmatprep.subr.bf16.mxu0 %v6303_v37 }
0x3673   :  { %v3469_v22 = vpop.f32.mrb[34].mxu0 }
0x3674   :  { %v3470_v15 = vadd.f32 %v3469_v22, %v5612_v9  ;;  %v4622_v20 = vpop.f32.mrb[35].mxu0 }
0x3676   :  { %v3480_v23 = vrot.slane %v3470_v15, %v5263_v8 }
0x3678   :  { %v3481_v10 = vcombine.high %v3480_v23, %v3480_v23  ;;  %v3488_v29 = vrot.slane %v3480_v23, %v5263_v8 }
0x367a   :  { %v3495_v38 = vrot.slane %v3481_v10, %v5263_v8  ;;  %v3499_v59 = vrot.slane %v3488_v29, %v5281_v14 }
0x367c   :  { %v3506_v35 = vmul.f32 %v3499_v59, %v5308_v34  ;;  %v3503_v28 = vrot.slane %v3495_v38, %v5281_v14 }
0x367e   :  { %v3508_v30 = vsel %vm242_vm1, %v3506_v35, 0.0  ;;  %v3507_v19 = vmul.f32 %v3503_v28, %v5305_v32  ;;  %v2101_v35 = vld [vmem:[#allocation2 + $0x2] sm:$0x3]  ;;  %v1231_v28 = vld [vmem:[#allocation2] sm:$0x3] }
0x367f   :  { %3509 = vadd.xlane.f32.xlu1 %v3508_v30 }
0x3680   :  { %v3511_v9 = vsel %vm242_vm1, %v3507_v19, 0.0  ;;  %v6311_v19 = vld [vmem:[#allocation16_spill] sm:$0xff] }
0x3681   :  { %3512 = vadd.xlane.f32.xlu0 %v3511_v9 }
0x370c   :  { %v3510_v36 = vpop.xlane.xlu1 %3509 }
0x370d   :  { %v3514_v12 = vmul.f32 %v3510_v36, %v5315_v41 }
0x370e   :  { %v3513_v11 = vpop.xlane.xlu0 %3512 }
0x370f   :  { %v3516_v8 = vsub.f32 %v3514_v12, %v5317_v43  ;;  %v3515_v13 = vmul.f32 %v3513_v11, %v5321_v47 }
0x3711   :  { %v3517_v34 = vsub.f32 %v3515_v13, %v5323_v48  ;;  %3521 = vperm.xlu0 %4934, %v3516_v8  }
0x3713   :  { %3524 = vperm.xlu1 %4935, %v3517_v34  }
0x3790   :  { %v3522_v27 = vpop.permute.xlu0 %3521 }
0x3791   :  { %v3529_v32 = vrot.slane %v3522_v27, %v5332_v52 }
0x3792   :  { %v3525_v49 = vpop.permute.xlu1 %3524 }
0x3793   :  { %v3533_v21 = vrot.slane %v3525_v49, %v5332_v52 }
0x3795   :  { %v3534_v24 = vsel %vm303_vm2, %v3533_v21, %v3529_v32 }
0x3796   :  { %v3536_v61 = vsel %vm306_vm3, %v3534_v24, -inf }
0x3797   :  { %3537 = vmax.xlane.f32.xlu1 %v3536_v61 }
0x3824   :  { %v3538_v62 = vpop.xlane.xlu1 %3537 }
0x3825   :  { %v3543_v43 = vrot.slane %v3538_v62, %v5281_v14  ;;  %v3547_v40 = vrot.slane %v3538_v62, %v6307_v57 }
0x3827   :  { %v3550_v5 = vsub.f32 %v3516_v8, %v3543_v43  ;;  %v3551_v48 = vsub.f32 %v3517_v34, %v3547_v40  ;;  %v2972_v8 = vld [vmem:[#allocation2 + $0x4] sm:$0x3] }
0x3829   :  { %v3552_v16 = vmul.f32 1.442695, %v3550_v5  ;;  %v3554_v63 = vmul.f32 1.442695, %v3551_v48 }
0x382b   :  { %5064 = vpow2.f32 %v3552_v16 }
0x382c   :  { %5066 = vpow2.f32 %v3554_v63 }
0x3835   :  { %v5065_v26 = vpop.eup %5064 }
0x3836   :  { %v3556_v2 = vmul.f32 %v5065_v26, %v5315_v41  ;;  %v5067_v7 = vpop.eup %5066  ;;  %v6313_v26 = vld [vmem:[#allocation14_spill] sm:$0xff] }
0x3837   :  { %v3557_v39 = vmul.f32 %v5067_v7, %v5321_v47 }
0x3838   :  { %3561 = vperm.xlu0 %4934, %v3556_v2  }
0x383c   :  { %3564 = vperm.xlu0 %4934, %v3557_v39  }
0x38b7   :  { %v3562_v51 = vpop.permute.xlu0 %3561 }
0x38b8   :  { %v3569_v0 = vrot.slane %v3562_v51, %v5332_v52 }
0x38bb   :  { %v3565_v60 = vpop.permute.xlu0 %3564 }
0x38bc   :  { %v3573_v42 = vrot.slane %v3565_v60, %v5332_v52 }
0x38be   :  { %v3574_v53 = vsel %vm303_vm2, %v3573_v42, %v3569_v0 }
0x38bf   :  { %v3576_v56 = vsel %vm306_vm3, %v3574_v53, 0.0 }
0x38c0   :  { %3577 = vadd.xlane.f32.xlu0 %v3576_v56 }
0x394d   :  { %v3578_v45 = vpop.xlane.xlu0 %3577 }
0x394e   :  { %v3583_v18 = vrot.slane %v3578_v45, %v5281_v14  ;;  %v3587_v41 = vrot.slane %v3578_v45, %v6307_v57  ;;  %v6310_v14 = vld [vmem:[#allocation18_spill] sm:$0xff] }
0x3950   :  { %5068 = vrcp.f32 %v3583_v18 }
0x3951   :  { %5070 = vrcp.f32 %v3587_v41 }
0x395a   :  { %v5069_v47 = vpop.eup %5068 }
0x395b   :  { %v5071_v31 = vpop.eup %5070  ;;  %v3591_v6 = vmul.f32 %v5069_v47, %v3556_v2 }
0x395c   :  { %v3593_v25 = vmul.f32 %v5071_v31, %v3557_v39 }
0x395d   :  { %3596 = vperm.xlu1 %4935, %v3591_v6  }
0x395e   :  { %3601 = vperm.xlu0 %4934, %v3593_v25  }
0x3961   :  { %1155 = vrot.lane.b32.xlu1 %v6308_v50, %s5169_s23 }
0x39dc   :  { %v3597_v58 = vpop.permute.xlu1 %3596 }
0x39dd   :  { %v3602_v17 = vpop.permute.xlu0 %3601  ;;  %v3604_v1 = vmul.f32 %v6309_v54, %v3597_v58  ;;  %v3870_v22 = vrot.slane %v3597_v58, %v5332_v52 }
0x39de   :  { %v3605_v15 = vmul.f32 %v6310_v14, %v3602_v17  ;;  %v3874_v20 = vrot.slane %v3602_v17, %v5332_v52  ;;  %v6312_v52 = vld [vmem:[#allocation15_spill] sm:$0xff]  ;;  %v3843_v14 = vld [vmem:[#allocation2 + $0x6] sm:$0x3] }
0x39df   :  { %v3606_v23 = vsel %vm377_vm5, %v3604_v1, 0.0 }
0x39e0   :  { %v3613_v10 = vsel %vm377_vm5, %v3605_v15, 0.0  ;;  %v3607_v29 = vrot.slane %v3606_v23, 4  ;;  %v3875_v38 = vsel %vm303_vm2, %v3874_v20, %v3870_v22  ;;  %v6178_v59 = vpop.permute.xlu1 %1155 }
0x39e1   :  { %v3614_v30 = vrot.slane %v3613_v10, 4  ;;  %3878 = vst.msk [vmem:[#allocation6 + $0x6] sm:$0x3] %vm306_vm3, %v3875_v38  ;;  %v2097_v9 = vadd.f32 %v6311_v19, %v6178_v59  ;;  %v1228_v36 = vadd.f32 %v6312_v52, %v6178_v59  ;;  %v2968_v12 = vadd.f32 %v6094_v46, %v6178_v59 }
0x39e2   :  { %v3608_v11 = vadd.f32 %v3607_v29, %v3606_v23 }
0x39e3   :  { %v3615_v13 = vadd.f32 %v3614_v30, %v3613_v10  ;;  %v6187_v34 = vadd.f32 %v2101_v35, %v2097_v9  ;;  %2124 = vst.msk [vmem:[#allocation5 + $0x2] sm:$0x3] %vm1233_vm12, %v2097_v9  ;;  %v1232_v27 = vadd.f32 %v1231_v28, %v1228_v36  ;;  %1254 = vst.msk [vmem:[#allocation5] sm:$0x3] %vm1233_vm12, %v1228_v36 }
0x39e4   :  { %2995 = vst.msk [vmem:[#allocation5 + $0x4] sm:$0x3] %vm1233_vm12, %v2968_v12  ;;  %v3609_v49 = vrot.slane %v3608_v11, 2  ;;  %v2973_v46 = vadd.f32 %v2972_v8, %v2968_v12 }
0x39e5   :  { %v3616_v32 = vrot.slane %v3615_v13, 2  ;;  %v2103_v21 = vsel %vm1233_vm12, %v6187_v34, -inf  ;;  %v1234_v24 = vsel %vm1233_vm12, %v1232_v27, -inf }
0x39e6   :  { %v3610_v61 = vadd.f32 %v3609_v49, %v3608_v11  ;;  %2104 = vmax.xlane.f32.xlu0 %v2103_v21  ;;  %1235 = vmax.xlane.f32.xlu1 %v1234_v24  ;;  %v2974_v40 = vsel %vm1233_vm12, %v2973_v46, -inf }
0x39e7   :  { %v3617_v62 = vadd.f32 %v3616_v32, %v3615_v13 }
0x39e8   :  { %v3611_v43 = vrot.slane %v3610_v61, 1 }
0x39e9   :  { %v3618_v57 = vrot.slane %v3617_v62, 1 }
0x39ea   :  { %v3612_v5 = vadd.f32 %v3611_v43, %v3610_v61  ;;  %2975 = vmax.xlane.f32.xlu1 %v2974_v40 }
0x39eb   :  { %v3619_v48 = vadd.f32 %v3618_v57, %v3617_v62 }
0x39ed   :  { %v3622_v16 = vsel %vm303_vm2, %v3619_v48, %v3612_v5 }
0x39ee   :  { %4628 = vmatmul.mubr.msk.f32.vlgmr.msra.gmra.mrb[36].mxu0 %vm377_vm5, %v3622_v16 }
0x39ef   :  { %4910 = vmatpush3.bf16.msra.mxu0 %v5668_v55  ;;  %4638 = vmatprep.mubr.msk.f32.mxu0 %vm5175_vm4, %v6302_v33 }
0x39f0   :  { %4911 = vmatprep.subr.bf16.mxu0 %v6303_v37 }
0x39f3   :  { %4913 = vmatpush3.bf16.msra.mxu0 %v5680_v44 }
0x39f6   :  { %4639 = vmatmul.mubr.msk.f32.vlgmr.msra.gmra.mrb[38].mxu0 %vm242_vm1, %v6133_v4 }
0x3a73   :  { %v1236_v63 = vpop.xlane.xlu1 %1235  ;;  %v2105_v54 = vpop.xlane.xlu0 %2104 }
0x3a74   :  { %vm1237_vm13 = vcmp.ge.f32.partialorder %v1232_v27, %v1236_v63  ;;  %vm2106_vm3 = vcmp.ge.f32.partialorder %v6187_v34, %v2105_v54 }
0x3a75   :  { %v1238_v2 = vsel %vm1237_vm13, %v6313_v26, 32  ;;  %v2107_v1 = vsel %vm2106_vm3, %v6313_v26, 32 }
0x3a76   :  { %v1239_v7 = vsel %vm1233_vm12, %v1238_v2, 2147483647  ;;  %v2108_v15 = vsel %vm1233_vm12, %v2107_v1, 2147483647 }
0x3a77   :  { %v1241_v39 = vshra.s32 %v1239_v7, 16  ;;  %v2976_v51 = vpop.xlane.xlu1 %2975  ;;  %v1240_v47 = vand.u32 65535, %v1239_v7  ;;  %v2110_v29 = vshra.s32 %v2108_v15, 16  ;;  %v2109_v52 = vand.u32 65535, %v2108_v15 }
0x3a78   :  { %vm2977_vm14 = vcmp.ge.f32.partialorder %v2973_v46, %v2976_v51 }
0x3a79   :  { %v2978_v55 = vsel %vm2977_vm14, %v6313_v26, 32  ;;  %v1243_v60 = vcvt.s32.f32 %v1241_v39  ;;  %v1242_v25 = vcvt.s32.f32 %v1240_v47  ;;  %v2112_v35 = vcvt.s32.f32 %v2110_v29 }
0x3a7a   :  { %v2979_v33 = vsel %vm1233_vm12, %v2978_v55, 2147483647  ;;  %v2111_v12 = vcvt.s32.f32 %v2109_v52 }
0x3a7b   :  { %v2981_v37 = vshra.s32 %v2979_v33, 16  ;;  %1244 = vmin.xlane.f32.xlu1 %v1243_v60  ;;  %v2980_v31 = vand.u32 65535, %v2979_v33 }
0x3a7d   :  { %v2983_v44 = vcvt.s32.f32 %v2981_v37  ;;  %v2982_v17 = vcvt.s32.f32 %v2980_v31 }
0x3a7f   :  { %2984 = vmin.xlane.f32.xlu1 %v2983_v44 }
0x3ac1   :  { %v3691_v0 = vpop.f32.mrb[36].mxu0 }
0x3ac2   :  { %v4629_v4 = vpop.f32.mrb[37].mxu0 }
0x3ac9   :  { %v3761_v42 = vpop.f32.mrb[38].mxu0 }
0x3aca   :  { %v3762_v53 = vadd.f32 %v3761_v42, %v3691_v0  ;;  %v4640_v56 = vpop.f32.mrb[39].mxu0 }
0x3acc   :  { %v3765_v45 = vadd.f32 %v3762_v53, %v5731_v3 }
0x3ace   :  { %vm3766_vm15 = vcmp.ge.f32.partialorder %v3765_v45, 0.0  ;;  %v3767_v18 = vmul.f32 0.01, %v3765_v45 }
0x3ad0   :  { %v3768_v41 = vsel %vm3766_vm15, %v3765_v45, %v3767_v18 }
0x3ad1   :  { %4650 = vmatmul.mubr.msk.f32.vlgmr.msra.gmra.mrb[24].mxu1 %vm242_vm1, %v3768_v41 }
0x3b08   :  { %v6211_v6 = vpop.xlane.xlu1 %1244 }
0x3b09   :  { %vm1246_vm0 = vcmp.eq.f32.partialorder %v1243_v60, %v6211_v6 }
0x3b0a   :  { %v1247_v50 = vsel %vm1246_vm0, %v1242_v25, inf }
0x3b0b   :  { %1248 = vmin.xlane.f32.xlu1 %v1247_v50 }
0x3b0c   :  { %v6214_v58 = vpop.xlane.xlu1 %2984 }
0x3b0d   :  { %vm2986_vm2 = vcmp.eq.f32.partialorder %v2983_v44, %v6214_v58 }
0x3b0e   :  { %v2987_v3 = vsel %vm2986_vm2, %v2982_v17, inf }
0x3b0f   :  { %2988 = vmin.xlane.f32.xlu1 %v2987_v3 }
0x3ba4   :  { %v3838_v22 = vpop.f32.mrb[24].mxu1 }
0x3ba5   :  { %v3839_v20 = vadd.f32 %v3838_v22, %v6178_v59  ;;  %v4651_v23 = vpop.f32.mrb[25].mxu1 }
0x3ba7   :  { %v3844_v10 = vadd.f32 %v3843_v14, %v3839_v20  ;;  %3866 = vst.msk [vmem:[#allocation5 + $0x6] sm:$0x3] %vm1233_vm12, %v3839_v20 }
0x3ba9   :  { %v3845_v38 = vsel %vm1233_vm12, %v3844_v10, -inf }
0x3baa   :  { %3846 = vmax.xlane.f32.xlu0 %v3845_v38 }
0x3bae   :  { %2113 = vmin.xlane.f32.xlu0 %v2112_v35 }
0x3c37   :  { %v3847_v28 = vpop.xlane.xlu0 %3846 }
0x3c38   :  { %vm3848_vm1 = vcmp.ge.f32.partialorder %v3844_v10, %v3847_v28 }
0x3c39   :  { %v3849_v30 = vsel %vm3848_vm1, %v6313_v26, 32 }
0x3c3a   :  { %v3850_v19 = vsel %vm1233_vm12, %v3849_v30, 2147483647 }
0x3c3b   :  { %v3852_v9 = vshra.s32 %v3850_v19, 16  ;;  %v2114_v36 = vpop.xlane.xlu0 %2113  ;;  %v3851_v8 = vand.u32 65535, %v3850_v19 }
0x3c3c   :  { %vm2115_vm4 = vcmp.eq.f32.partialorder %v2112_v35, %v2114_v36 }
0x3c3d   :  { %v3854_v59 = vcvt.s32.f32 %v3852_v9  ;;  %v2116_v11 = vsel %vm2115_vm4, %v2111_v12, inf  ;;  %v3853_v34 = vcvt.s32.f32 %v3851_v8 }
0x3c3f   :  { %3855 = vmin.xlane.f32.xlu0 %v3854_v59 }
0x3c43   :  { %2117 = vmin.xlane.f32.xlu0 %v2116_v11 }
0x3ccc   :  { %v3856_v13 = vpop.xlane.xlu0 %3855 }
0x3ccd   :  { %vm3857_vm5 = vcmp.eq.f32.partialorder %v3854_v59, %v3856_v13 }
0x3cce   :  { %v3858_v27 = vsel %vm3857_vm5, %v3853_v34, inf }
0x3ccf   :  { %3859 = vmin.xlane.f32.xlu0 %v3858_v27 }
0x3cd0   :  { %5107 = shalt.err (!%p5104_p12)
}
0x3cd1   :  { %s5108_s21 = scalar_lea.hbm %s6285_s9, 128 }
0x3cd2   :  { %p5109_p13 = scmp.ne.s32.totalorder %s6285_s9, %s5108_s21  ;;  %p5112_p0 = scmp.lt.u32.totalorder %s5108_s21, %s6285_s9 }
0x3cd4   :  { %p5114_p1 = pnand %p5112_p0, %p5109_p13 }
0x3cd6   :  { %5117 = shalt.err (!%p5114_p1)
}
0x3cd7   :  { %3910 = dma.vmem_to_hbm [thread:$0]  %s3905_s12, 128, %s6285_s9, [#allocation7], %s5169_s23, %s5169_s23, %s5170_s24  }
0x3cd8   :  { %s5118_s29 = scalar_lea.vmem %s6225_s19, 128  ;;  %p5123_p3 = scmp.lt.s32.totalorder %s6225_s19, %s6225_s19 }
0x3cd9   :  { %p5119_p2 = scmp.ne.s32.totalorder %s6225_s19, %s5118_s29  ;;  %p5124_p4 = scmp.lt.s32.totalorder %s5118_s29, %s5118_s29 }
0x3cdb   :  { %p5125_p5 = por %p5124_p4, %p5123_p3 }
0x3cdd   :  { %p5126_p6 = pnand %p5125_p5, %p5119_p2 }
0x3cdf   :  { %5129 = shalt.err (!%p5126_p6)
}
0x3ce0   :  { %s5130_s17 = scalar_lea.hbm %s6284_s8, 128 }
0x3ce1   :  { %p5131_p7 = scmp.ne.s32.totalorder %s6284_s8, %s5130_s17  ;;  %p5134_p8 = scmp.lt.u32.totalorder %s5130_s17, %s6284_s8 }
0x3ce3   :  { %p5136_p9 = pnand %p5134_p8, %p5131_p7 }
0x3ce5   :  { %5139 = shalt.err (!%p5136_p9)
}
0x3ce6   :  { %3898 = dma.vmem_to_hbm [thread:$0]  %s6225_s19, 128, %s6284_s8, [#allocation4], %s5169_s23, %s5169_s23, %s5170_s24   ;;  %v1249_v49 = vpop.xlane.xlu1 %1248  ;;  %v2118_v32 = vpop.xlane.xlu0 %2117  ;;  %v2120_v21 = vcvt.f32.s32 %v2114_v36  ;;  %v1251_v24 = vcvt.f32.s32 %v6211_v6  ;;  %v2991_v57 = vcvt.f32.s32 %v6214_v58  ;;  %v3862_v5 = vcvt.f32.s32 %v3856_v13 }
0x3ce7   :  { %v2119_v46 = vcvt.f32.s32 %v2118_v32  ;;  %v1250_v61 = vcvt.f32.s32 %v1249_v49  ;;  %vm3879_vm6 = vcmask 7168   ;;  %vm3881_vm7 = vcmask 15360   ;;  %s5181_s8 = smov [#allocation8]  }
0x3ce8   :  { %v2121_v43 = vshll.u32 %v2120_v21, 16  ;;  %v1252_v40 = vshll.u32 %v1251_v24, 16  ;;  %v2992_v26 = vshll.u32 %v2991_v57, 16  ;;  %v3863_v7 = vshll.u32 %v3862_v5, 16  ;;  %s3917_s23 = sshll.u32 %s5181_s8, 4  ;;  %s3918_s23 = int_to_ptr.vmem [resolvable:$true] %s3917_s23 }
0x3ce9   :  { %vm3883_vm8 = vcmask 23552   ;;  %vm3885_vm9 = vcmask 25600   ;;  %s5140_s24 = scalar_lea.vmem %s3918_s23, 32  ;;  %p5145_p11 = scmp.lt.s32.totalorder %s3918_s23, %s3918_s23 }
0x3cea   :  { %v2989_v62 = vpop.xlane.xlu1 %2988  ;;  %v2122_v48 = vadd.s32 %v2121_v43, %v2119_v46  ;;  %v1253_v63 = vadd.s32 %v1252_v40, %v1250_v61  ;;  %p5141_p10 = scmp.ne.s32.totalorder %s3918_s23, %s5140_s24  ;;  %p5146_p12 = scmp.lt.s32.totalorder %s5140_s24, %s5140_s24 }
0x3ceb   :  { %v2990_v16 = vcvt.f32.s32 %v2989_v62 }
0x3cec   :  { %v3880_v39 = vsel %vm3879_vm6, %v1253_v63, %v2122_v48  ;;  %p5147_p13 = por %p5146_p12, %p5145_p11 }
0x3ced   :  { %v2993_v55 = vadd.s32 %v2992_v26, %v2990_v16 }
0x3cee   :  { %p5148_p0 = pnand %p5147_p13, %p5141_p10 }
0x3cef   :  { %v3882_v33 = vsel %vm3881_vm7, %v3880_v39, %v2993_v55 }
0x3d5c   :  { %v3860_v2 = vpop.xlane.xlu0 %3859 }
0x3d5d   :  { %v3861_v51 = vcvt.f32.s32 %v3860_v2 }
0x3d5f   :  { %v3864_v60 = vadd.s32 %v3863_v7, %v3861_v51 }
0x3d61   :  { %v3884_v37 = vsel %vm3883_vm8, %v3882_v33, %v3864_v60 }
0x3d62   :  { %3886 = vst.msk [vmem:[#allocation8] sm:$0x3] %vm3885_vm9, %v3884_v37 }
0x3d63   :  { %5151 = shalt.err (!%p5148_p0)
}
0x3d64   :  { %s5152_s16 = scalar_lea.hbm %s6286_s10, 32 }
0x3d65   :  { %p5153_p1 = scmp.ne.s32.totalorder %s6286_s10, %s5152_s16  ;;  %p5156_p2 = scmp.lt.u32.totalorder %s5152_s16, %s6286_s10 }
0x3d67   :  { %p5158_p3 = pnand %p5156_p2, %p5153_p1 }
0x3d69   :  { %5161 = shalt.err (!%p5158_p3)
}
0x3d6a   :  { %3920 = dma.vmem_to_hbm [thread:$0]  %s3918_s23, 32, %s6286_s10, [#allocation7]  }
0x3d6b   :  { %5164 = dma.done.wait [#allocation4], 128  }
0x3d6c   :  { %5165 = vsyncadd [#allocation4], 4294967168 }
0x3d6d   :  { %5166 = dma.done.wait [#allocation7], 160  }
0x3d6e   :  { %5167 = vsyncadd [#allocation7], 4294967136 }
0x3d6f   :  { %3930 = vsyncpa [#allocation3], 1 }
0x3d70   :  { %3931 = vsyncpa [#allocation4], 1 }
0x3d71   :  { %3932 = vsyncpa [#allocation7], 1 }

</bundles_post_ra>
